<compile_context>
chip_gen: v6e
topology: v6e:2x2x1
jax: 0.10.0
libtpu: 0.0.40
codegen_flags: <defaults>
</compile_context>

<pallas_src>
import functools

import jax
import jax.numpy as jnp
import numpy as np
from jax.experimental import pallas as pl
from jax.experimental.pallas import tpu as pltpu

K_IN = 150528          # 3 * 224 * 224 (fixed by fc1 of the PyTorch module)
H1, H2, OUT = 128, 32, 2


def _select_config():
    """Chip-aware (K tile, scoped-VMEM limit, #core splits)."""
    kind = jax.devices()[0].device_kind.lower()
    if "v7" in kind:
        # 64 MiB physical VMEM per TC, 2 TCs/chip -> split K across cores.
        return {"tk": 25088, "vmem": 40 * 1024 * 1024, "splits": 2}
    if "v6" in kind:
        # 128 MiB physical VMEM, single TC.
        return {"tk": 25088, "vmem": 64 * 1024 * 1024, "splits": 1}
    if "v5" in kind:
        # v5e: 16 MiB default scoped / 128 MiB physical -> moderate bump only.
        return {"tk": 12544, "vmem": 24 * 1024 * 1024, "splits": 1}
    # Unknown / older chip: original small tile, default scoped VMEM.
    return {"tk": 6272, "vmem": None, "splits": 1}


# ---------------------------------------------------------------------------
# Fused single-kernel path (1 TensorCore): fc1 K-reduction + fused epilogue.
# ---------------------------------------------------------------------------
def fused_mlp_kernel(x_ref, w1_ref, b1_ref, w2_ref, b2_ref, w3_ref, b3_ref,
                     o_ref, acc_ref, *, tk):
    k = pl.program_id(0)

    @pl.when(k == 0)
    def _():
        acc_ref[...] = jnp.zeros_like(acc_ref)

    # x is fully resident in VMEM; slice the current K tile in-kernel.
    start = pl.multiple_of(k * tk, 128)
    x_tile = x_ref[:, pl.ds(start, tk)]
    acc_ref[...] += jnp.dot(x_tile, w1_ref[...],
                            preferred_element_type=jnp.float32)

    @pl.when(k == pl.num_programs(0) - 1)
    def _():
        h1 = jnp.maximum(acc_ref[...] + b1_ref[...], 0.0)                   # ReLU(fc1)
        h2 = jnp.dot(h1, w2_ref[...], preferred_element_type=jnp.float32)
        h2 = jnp.maximum(h2 + b2_ref[...], 0.0)                             # ReLU(fc2)
        logits = jnp.dot(h2, w3_ref[...],
                         preferred_element_type=jnp.float32) + b3_ref[...]  # fc3
        m = jnp.max(logits, axis=-1, keepdims=True)
        s = logits - m
        lse = jnp.log(jnp.sum(jnp.exp(s), axis=-1, keepdims=True))
        o_ref[...] = (s - lse).astype(o_ref.dtype)                          # log_softmax


def _fused_call(x_flat, w1, b1, w2, b2, w3, b3, tk, vmem_limit):
    B = x_flat.shape[0]
    steps = K_IN // tk
    kernel = functools.partial(fused_mlp_kernel, tk=tk)
    return pl.pallas_call(
        kernel,
        out_shape=jax.ShapeDtypeStruct((B, OUT), jnp.float32),
        grid_spec=pltpu.PrefetchScalarGridSpec(
            num_scalar_prefetch=0,
            grid=(steps,),
            in_specs=[
                pl.BlockSpec((B, K_IN), lambda k: (0, 0)),    # x: resident
                pl.BlockSpec((tk, H1), lambda k: (k, 0)),     # w1 K tile
                pl.BlockSpec((1, H1), lambda k: (0, 0)),      # b1
                pl.BlockSpec((H1, H2), lambda k: (0, 0)),     # w2
                pl.BlockSpec((1, H2), lambda k: (0, 0)),      # b2
                pl.BlockSpec((H2, OUT), lambda k: (0, 0)),    # w3
                pl.BlockSpec((1, OUT), lambda k: (0, 0)),     # b3
            ],
            out_specs=pl.BlockSpec((B, OUT), lambda k: (0, 0)),
            scratch_shapes=[pltpu.VMEM((B, H1), jnp.float32)],
        ),
        compiler_params=pltpu.CompilerParams(
            dimension_semantics=("arbitrary",),
            vmem_limit_bytes=vmem_limit),
    )(x_flat, w1, b1, w2, b2, w3, b3)


# ---------------------------------------------------------------------------
# Split-K path (2-TC v7x): parallel leading axis -> per-core fc1 partials,
# then a tiny epilogue kernel combines them and does fc2/fc3/log_softmax.
# ---------------------------------------------------------------------------
def fc1_partial_kernel(x_ref, w1_ref, part_ref, acc_ref, *, tk, steps_per_split):
    c = pl.program_id(0)
    k = pl.program_id(1)

    @pl.when(k == 0)
    def _():
        acc_ref[...] = jnp.zeros_like(acc_ref)

    tile_idx = c * steps_per_split + k
    start = pl.multiple_of(tile_idx * tk, 128)
    acc_ref[...] += jnp.dot(x_ref[:, pl.ds(start, tk)], w1_ref[...],
                            preferred_element_type=jnp.float32)

    @pl.when(k == pl.num_programs(1) - 1)
    def _():
        part_ref[...] = acc_ref[...]


def epilogue_kernel(part_ref, b1_ref, w2_ref, b2_ref, w3_ref, b3_ref, o_ref):
    h1 = jnp.maximum(jnp.sum(part_ref[...], axis=0) + b1_ref[...], 0.0)
    h2 = jnp.dot(h1, w2_ref[...], preferred_element_type=jnp.float32)
    h2 = jnp.maximum(h2 + b2_ref[...], 0.0)
    logits = jnp.dot(h2, w3_ref[...],
                     preferred_element_type=jnp.float32) + b3_ref[...]
    m = jnp.max(logits, axis=-1, keepdims=True)
    s = logits - m
    lse = jnp.log(jnp.sum(jnp.exp(s), axis=-1, keepdims=True))
    o_ref[...] = (s - lse).astype(o_ref.dtype)


def _split_call(x_flat, w1, b1, w2, b2, w3, b3, tk, vmem_limit, splits):
    B = x_flat.shape[0]
    steps_per_split = (K_IN // tk) // splits
    part_kernel = functools.partial(fc1_partial_kernel, tk=tk,
                                    steps_per_split=steps_per_split)
    partials = pl.pallas_call(
        part_kernel,
        out_shape=jax.ShapeDtypeStruct((splits, B, H1), jnp.float32),
        grid_spec=pltpu.PrefetchScalarGridSpec(
            num_scalar_prefetch=0,
            grid=(splits, steps_per_split),
            in_specs=[
                pl.BlockSpec((B, K_IN), lambda c, k: (0, 0)),                  # x resident
                pl.BlockSpec((tk, H1),
                             lambda c, k, _s=steps_per_split: (c * _s + k, 0)),  # w1 tile
            ],
            out_specs=pl.BlockSpec((None, B, H1), lambda c, k: (c, 0, 0)),
            scratch_shapes=[pltpu.VMEM((B, H1), jnp.float32)],
        ),
        compiler_params=pltpu.CompilerParams(
            dimension_semantics=("parallel", "arbitrary"),
            vmem_limit_bytes=vmem_limit),
    )(x_flat, w1)

    return pl.pallas_call(
        epilogue_kernel,
        out_shape=jax.ShapeDtypeStruct((B, OUT), jnp.float32),
        grid_spec=pltpu.PrefetchScalarGridSpec(
            num_scalar_prefetch=0,
            grid=(1,),
            in_specs=[
                pl.BlockSpec((splits, B, H1), lambda i: (0, 0, 0)),
                pl.BlockSpec((1, H1), lambda i: (0, 0)),
                pl.BlockSpec((H1, H2), lambda i: (0, 0)),
                pl.BlockSpec((1, H2), lambda i: (0, 0)),
                pl.BlockSpec((H2, OUT), lambda i: (0, 0)),
                pl.BlockSpec((1, OUT), lambda i: (0, 0)),
            ],
            out_specs=pl.BlockSpec((B, OUT), lambda i: (0, 0)),
        ),
        compiler_params=pltpu.CompilerParams(
            dimension_semantics=("arbitrary",)),
    )(partials, b1, w2, b2, w3, b3)


# ---------------------------------------------------------------------------
# Public forward
# ---------------------------------------------------------------------------
def vanilla_model_forward(x, w1, b1, w2, b2, w3, b3, *, stream_bf16=False,
                          tk=None, vmem_limit_bytes=None, core_splits=None):
    B = x.shape[0]
    x_flat = x.reshape(B, -1)                       # nn.Flatten()
    assert x_flat.shape[1] == K_IN

    cfg = _select_config()
    tk = cfg["tk"] if tk is None else tk
    vmem = cfg["vmem"] if vmem_limit_bytes is None else vmem_limit_bytes
    splits = cfg["splits"] if core_splits is None else core_splits
    assert K_IN % tk == 0 and (K_IN // tk) % splits == 0

    if stream_bf16:
        # ~2x fewer HBM bytes for the dominant fc1 stream; f32 accumulation.
        x_flat = x_flat.astype(jnp.bfloat16)
        w1 = w1.astype(jnp.bfloat16)

    if splits == 1:
        return _fused_call(x_flat, w1, b1, w2, b2, w3, b3, tk, vmem)
    return _split_call(x_flat, w1, b1, w2, b2, w3, b3, tk, vmem, splits)


def _init_linear(key, fan_in, fan_out):
    # PyTorch nn.Linear default init: U(-1/sqrt(fan_in), 1/sqrt(fan_in))
    kw, kb = jax.random.split(key)
    bound = 1.0 / np.sqrt(fan_in)
    w = jax.random.uniform(kw, (fan_in, fan_out), jnp.float32, -bound, bound)
    b = jax.random.uniform(kb, (1, fan_out), jnp.float32, -bound, bound)
    return w, b


if __name__ == "__main__":
    key = jax.random.PRNGKey(0)
    kx, k1, k2, k3 = jax.random.split(key, 4)

    B = 2
    # fc1 in_features=150528 pins the input to (B, 3, 224, 224).
    x = jax.random.normal(kx, (B, 3, 224, 224), jnp.float32)

    w1, b1 = _init_linear(k1, K_IN, H1)
    w2, b2 = _init_linear(k2, H1, H2)
    w3, b3 = _init_linear(k3, H2, OUT)

    # plain-JAX reference (exact f32 semantics of the PyTorch module)
    xf = x.reshape(B, -1)
    h1 = jnp.maximum(xf @ w1 + b1, 0.0)
    h2 = jnp.maximum(h1 @ w2 + b2, 0.0)
    ref = jax.nn.log_softmax(h2 @ w3 + b3, axis=1)

    # 1) default path: exact f32, fused kernel, chip-tuned K tile.
    out = jax.block_until_ready(vanilla_model_forward(x, w1, b1, w2, b2, w3, b3))
    np.testing.assert_allclose(np.asarray(out), np.asarray(ref),
                               rtol=1e-4, atol=1e-4)
    assert out.shape == (B, OUT)

    # 2) split-K path (auto-selected on 2-TC v7x); force it here so it is
    #    validated on whatever chip this runs on (serializes on 1-TC chips).
    out_split = jax.block_until_ready(
        vanilla_model_forward(x, w1, b1, w2, b2, w3, b3, core_splits=2))
    np.testing.assert_allclose(np.asarray(out_split), np.asarray(ref),
                               rtol=1e-4, atol=1e-4)

    # 3) optional bf16 weight streaming: compare against a bf16-streaming JAX
    #    reference (it intentionally changes numerics vs. the f32 module).
    xb = xf.astype(jnp.bfloat16)
    w1b = w1.astype(jnp.bfloat16)
    h1b = jnp.maximum(jnp.dot(xb, w1b, preferred_element_type=jnp.float32) + b1, 0.0)
    h2b = jnp.maximum(h1b @ w2 + b2, 0.0)
    ref_bf16 = jax.nn.log_softmax(h2b @ w3 + b3, axis=1)
    out_bf16 = jax.block_until_ready(
        vanilla_model_forward(x, w1, b1, w2, b2, w3, b3, stream_bf16=True))
    np.testing.assert_allclose(np.asarray(out_bf16), np.asarray(ref_bf16),
                               rtol=5e-3, atol=5e-3)

    print("KERNEL_OK")
</pallas_src>

<mosaic_0001>
module attributes {stable_mosaic.version = 11 : i64} {
  func.func @fused_mlp_kernel(%arg0: i32, %arg1: memref<2x150528xf32, #tpu.memory_space<vmem>>, %arg2: memref<6272x128xf32, #tpu.memory_space<vmem>>, %arg3: memref<1x128xf32, #tpu.memory_space<vmem>>, %arg4: memref<128x32xf32, #tpu.memory_space<vmem>>, %arg5: memref<1x32xf32, #tpu.memory_space<vmem>>, %arg6: memref<32x2xf32, #tpu.memory_space<vmem>>, %arg7: memref<1x2xf32, #tpu.memory_space<vmem>>, %arg8: memref<2x2xf32, #tpu.memory_space<vmem>>, %arg9: memref<2x128xf32, #tpu.memory_space<vmem>>) attributes {dimension_semantics = [#tpu.dimension_semantics<arbitrary>], iteration_bounds = array<i64: 24>, scalar_prefetch = 0 : i64, scratch_operands = 1 : i64, tpu.core_type = #tpu.core_type<tc>, window_params = [{pipeline_mode = #tpu.pipeline_mode<synchronous>, transform_indices = @transform_0, window_bounds = array<i64: 2, 150528>}, {transform_indices = @transform_1, window_bounds = array<i64: 6272, 128>}, {pipeline_mode = #tpu.pipeline_mode<synchronous>, transform_indices = @transform_2, window_bounds = array<i64: 1, 128>}, {pipeline_mode = #tpu.pipeline_mode<synchronous>, transform_indices = @transform_3, window_bounds = array<i64: 128, 32>}, {pipeline_mode = #tpu.pipeline_mode<synchronous>, transform_indices = @transform_4, window_bounds = array<i64: 1, 32>}, {pipeline_mode = #tpu.pipeline_mode<synchronous>, transform_indices = @transform_5, window_bounds = array<i64: 32, 2>}, {pipeline_mode = #tpu.pipeline_mode<synchronous>, transform_indices = @transform_6, window_bounds = array<i64: 1, 2>}, {pipeline_mode = #tpu.pipeline_mode<synchronous>, transform_indices = @transform_7, window_bounds = array<i64: 2, 2>}]} {
    %c0_i32 = arith.constant 0 : i32
    %0 = arith.cmpi eq, %arg0, %c0_i32 : i32
    %1 = arith.extui %0 : i1 to i32
    %c0_i32_0 = arith.constant 0 : i32
    %2 = arith.cmpi ne, %1, %c0_i32_0 : i32
    scf.if %2 {
      %cst_8 = arith.constant 0.000000e+00 : f32
      %15 = vector.broadcast %cst_8 : f32 to vector<2x128xf32>
      %c0_9 = arith.constant 0 : index
      %c0_10 = arith.constant 0 : index
      %16 = vector.load %arg9[%c0_9, %c0_10] : memref<2x128xf32, #tpu.memory_space<vmem>>, vector<2x128xf32>
      tpu.vector_store %arg9[%c0_9, %c0_10], %15 {strides = array<i32>} : memref<2x128xf32, #tpu.memory_space<vmem>>, vector<2x128xf32>,
    } else {
    }
    %c6272_i32 = arith.constant 6272 : i32
    %3 = arith.muli %arg0, %c6272_i32 : i32
    %4 = tpu.assume_multiple %3, 128 : i32
    %c0 = arith.constant 0 : index
    %5 = arith.index_cast %4 : i32 to index
    %6 = vector.load %arg1[%c0, %5] : memref<2x150528xf32, #tpu.memory_space<vmem>>, vector<2x6272xf32>
    %c0_1 = arith.constant 0 : index
    %c0_2 = arith.constant 0 : index
    %7 = vector.load %arg9[%c0_1, %c0_2] : memref<2x128xf32, #tpu.memory_space<vmem>>, vector<2x128xf32>
    %c0_3 = arith.constant 0 : index
    %c0_4 = arith.constant 0 : index
    %8 = vector.load %arg2[%c0_3, %c0_4] : memref<6272x128xf32, #tpu.memory_space<vmem>>, vector<6272x128xf32>
    %cst = arith.constant dense<0.000000e+00> : vector<2x128xf32>
    %9 = tpu.matmul %6, %8, %cst {dimension_numbers = #tpu.dot_dimension_numbers<[1], [0], [0], [1], [0, 0, 1, 1], [], []>} : vector<2x6272xf32>, vector<6272x128xf32>, vector<2x128xf32> -> vector<2x128xf32>
    %10 = arith.addf %7, %9 : vector<2x128xf32>
    %c0_5 = arith.constant 0 : index
    %c0_6 = arith.constant 0 : index
    %11 = vector.load %arg9[%c0_5, %c0_6] : memref<2x128xf32, #tpu.memory_space<vmem>>, vector<2x128xf32>
    tpu.vector_store %arg9[%c0_5, %c0_6], %10 {strides = array<i32>} : memref<2x128xf32, #tpu.memory_space<vmem>>, vector<2x128xf32>,
    %c23_i32 = arith.constant 23 : i32
    %12 = arith.cmpi eq, %arg0, %c23_i32 : i32
    %13 = arith.extui %12 : i1 to i32
    %c0_i32_7 = arith.constant 0 : i32
    %14 = arith.cmpi ne, %13, %c0_i32_7 : i32
    scf.if %14 {
      %c0_8 = arith.constant 0 : index
      %c0_9 = arith.constant 0 : index
      %15 = vector.load %arg9[%c0_8, %c0_9] : memref<2x128xf32, #tpu.memory_space<vmem>>, vector<2x128xf32>
      %c0_10 = arith.constant 0 : index
      %c0_11 = arith.constant 0 : index
      %16 = vector.load %arg3[%c0_10, %c0_11] : memref<1x128xf32, #tpu.memory_space<vmem>>, vector<1x128xf32>
      %17 = vector.broadcast %16 : vector<1x128xf32> to vector<2x128xf32>
      %18 = arith.addf %15, %17 : vector<2x128xf32>
      %cst_12 = arith.constant 0.000000e+00 : f32
      %19 = vector.broadcast %cst_12 : f32 to vector<2x128xf32>
      %20 = arith.maximumf %18, %19 : vector<2x128xf32>
      %c0_13 = arith.constant 0 : index
      %c0_14 = arith.constant 0 : index
      %21 = vector.load %arg4[%c0_13, %c0_14] : memref<128x32xf32, #tpu.memory_space<vmem>>, vector<128x32xf32>
      %cst_15 = arith.constant dense<0.000000e+00> : vector<2x32xf32>
      %22 = tpu.matmul %20, %21, %cst_15 {dimension_numbers = #tpu.dot_dimension_numbers<[1], [0], [0], [1], [0, 0, 1, 1], [], []>} : vector<2x128xf32>, vector<128x32xf32>, vector<2x32xf32> -> vector<2x32xf32>
      %c0_16 = arith.constant 0 : index
      %c0_17 = arith.constant 0 : index
      %23 = vector.load %arg5[%c0_16, %c0_17] : memref<1x32xf32, #tpu.memory_space<vmem>>, vector<1x32xf32>
      %24 = vector.broadcast %23 : vector<1x32xf32> to vector<2x32xf32>
      %25 = arith.addf %22, %24 : vector<2x32xf32>
      %cst_18 = arith.constant 0.000000e+00 : f32
      %26 = vector.broadcast %cst_18 : f32 to vector<2x32xf32>
      %27 = arith.maximumf %25, %26 : vector<2x32xf32>
      %c0_19 = arith.constant 0 : index
      %c0_20 = arith.constant 0 : index
      %28 = vector.load %arg6[%c0_19, %c0_20] : memref<32x2xf32, #tpu.memory_space<vmem>>, vector<32x2xf32>
      %cst_21 = arith.constant dense<0.000000e+00> : vector<2x2xf32>
      %29 = tpu.matmul %27, %28, %cst_21 {dimension_numbers = #tpu.dot_dimension_numbers<[1], [0], [0], [1], [0, 0, 1, 1], [], []>} : vector<2x32xf32>, vector<32x2xf32>, vector<2x2xf32> -> vector<2x2xf32>
      %c0_22 = arith.constant 0 : index
      %c0_23 = arith.constant 0 : index
      %30 = vector.load %arg7[%c0_22, %c0_23] : memref<1x2xf32, #tpu.memory_space<vmem>>, vector<1x2xf32>
      %31 = vector.broadcast %30 : vector<1x2xf32> to vector<2x2xf32>
      %32 = arith.addf %29, %31 : vector<2x2xf32>
      %cst_24 = arith.constant dense<0xFF800000> : vector<2xf32>
      %33 = vector.multi_reduction <maximumf>, %32, %cst_24 [1] : vector<2x2xf32> to vector<2xf32>
      %34 = vector.shape_cast %33 : vector<2xf32> to vector<2x1xf32>
      %35 = vector.broadcast %34 : vector<2x1xf32> to vector<2x2xf32>
      %36 = arith.subf %32, %35 : vector<2x2xf32>
      %37 = math.exp %36 : vector<2x2xf32>
      %cst_25 = arith.constant dense<0.000000e+00> : vector<2xf32>
      %38 = vector.multi_reduction <add>, %37, %cst_25 [1] : vector<2x2xf32> to vector<2xf32>
      %39 = vector.shape_cast %38 : vector<2xf32> to vector<2x1xf32>
      %40 = math.log %39 : vector<2x1xf32>
      %41 = vector.broadcast %40 : vector<2x1xf32> to vector<2x2xf32>
      %42 = arith.subf %36, %41 : vector<2x2xf32>
      %c0_26 = arith.constant 0 : index
      %c0_27 = arith.constant 0 : index
      %43 = vector.load %arg8[%c0_26, %c0_27] : memref<2x2xf32, #tpu.memory_space<vmem>>, vector<2x2xf32>
      tpu.vector_store %arg8[%c0_26, %c0_27], %42 {strides = array<i32>} : memref<2x2xf32, #tpu.memory_space<vmem>>, vector<2x2xf32>,
    } else {
    }
    return
  }
  func.func @transform_0(%arg0: i32) -> (i32, i32) {
    %c0_i32 = arith.constant 0 : i32
    %c0_i32_0 = arith.constant 0 : i32
    %c0_i32_1 = arith.constant 0 : i32
    return %c0_i32, %c0_i32_0 : i32, i32
  }
  func.func @transform_1(%arg0: i32) -> (i32, i32) {
    %c0_i32 = arith.constant 0 : i32
    %c0_i32_0 = arith.constant 0 : i32
    return %arg0, %c0_i32 : i32, i32
  }
  func.func @transform_2(%arg0: i32) -> (i32, i32) {
    %c0_i32 = arith.constant 0 : i32
    %c0_i32_0 = arith.constant 0 : i32
    %c0_i32_1 = arith.constant 0 : i32
    return %c0_i32, %c0_i32_0 : i32, i32
  }
  func.func @transform_3(%arg0: i32) -> (i32, i32) {
    %c0_i32 = arith.constant 0 : i32
    %c0_i32_0 = arith.constant 0 : i32
    %c0_i32_1 = arith.constant 0 : i32
    return %c0_i32, %c0_i32_0 : i32, i32
  }
  func.func @transform_4(%arg0: i32) -> (i32, i32) {
    %c0_i32 = arith.constant 0 : i32
    %c0_i32_0 = arith.constant 0 : i32
    %c0_i32_1 = arith.constant 0 : i32
    return %c0_i32, %c0_i32_0 : i32, i32
  }
  func.func @transform_5(%arg0: i32) -> (i32, i32) {
    %c0_i32 = arith.constant 0 : i32
    %c0_i32_0 = arith.constant 0 : i32
    %c0_i32_1 = arith.constant 0 : i32
    return %c0_i32, %c0_i32_0 : i32, i32
  }
  func.func @transform_6(%arg0: i32) -> (i32, i32) {
    %c0_i32 = arith.constant 0 : i32
    %c0_i32_0 = arith.constant 0 : i32
    %c0_i32_1 = arith.constant 0 : i32
    return %c0_i32, %c0_i32_0 : i32, i32
  }
  func.func @transform_7(%arg0: i32) -> (i32, i32) {
    %c0_i32 = arith.constant 0 : i32
    %c0_i32_0 = arith.constant 0 : i32
    %c0_i32_1 = arith.constant 0 : i32
    return %c0_i32, %c0_i32_0 : i32, i32
  }
}

</mosaic_0001>

<bundles_post_ra>
// kernel: tpu_custom_call.1
= control target key start
LH: loop header
LB: loop body
LE: loop exit
PB: predicated region body
PF: predicated region fallthrough
CT: control target
= control target key end

     0   :  { %12 = vsyncpa [#allocation4], 0  ;;  %s5933_s0 = inlined_call_operand.hbm [shape: f32[2,150528], index: 0, kind: input, shape index: {}]   ;;  %s5934_s1 = inlined_call_operand.hbm [shape: f32[150528,128], index: 1, kind: input, shape index: {}]   ;;  %s5935_s2 = inlined_call_operand.hbm [shape: f32[1,128], index: 2, kind: input, shape index: {}]   ;;  %s5936_s3 = inlined_call_operand.vmem [shape: f32[128,32], index: 3, kind: input, shape index: {}]   ;;  %s5937_s4 = inlined_call_operand.hbm [shape: f32[1,32], index: 4, kind: input, shape index: {}]   ;;  %s5938_s5 = inlined_call_operand.vmem [shape: f32[32,2], index: 5, kind: input, shape index: {}]   ;;  %s5939_s6 = inlined_call_operand.hbm [shape: f32[1,2], index: 6, kind: input, shape index: {}]   ;;  %s5940_s7 = inlined_call_operand.hbm [shape: f32[2,2], index: 7, kind: output, shape index: {}]  }
   0x1   :  { %13 = vsyncpa [#allocation7], 0 }
   0x2   :  { %15 = vsyncpa [#allocation7 + $0x1], 0 }
   0x3   :  { %16 = vsyncpa [#allocation10], 0 }
   0x4   :  { %17 = vsyncpa [#allocation5], 0  ;;  %s4836_s24 = smov 0   ;;  %s4838_s25 = smov 0  }
   0x5   :  { %s4840_s26 = smov 0   ;;  %s4842_s27 = smov 0  }
   0x6 LB: > { %s4855_s28 = sadd.s32 4294967295, %s4780_s27   ;;  %p64_p0 = scmp.ne.s32.totalorder %s4772_s25, %s4768_s24  ;;  %s4780_s27 = sphi %s4842_s27, %s5960_s27   ;;  %s4776_s26 = sphi %s4840_s26, %s5959_s26   ;;  %s4772_s25 = sphi %s4838_s25, %s5958_s25   ;;  %s4768_s24 = sphi %s4836_s24, %s5957_s24  }
   0x7   : > { %p5941_p1 = scmp.eq.s32.totalorder %s4855_s28, 0  ;;  %p3476_p2 = scmp.ge.s32.totalorder %s4780_s27, 1 }
   0x8   : > { %p201_p3 = scmp.lt.s32.totalorder %s4780_s27, 25  ;;  %s4782_s8 = smov [#allocation8]  }
   0x9   : > { %p4864_p5 = por %p5941_p1, %p64_p0  ;;  %s225_s9 = sshll.u32 %s4782_s8, 4  ;;  %s226_s9 = int_to_ptr.vmem [resolvable:$true] %s225_s9 }
   0xa   : > { %p4868_p6 = pnand %p3476_p2, %p201_p3  ;;  %s4783_s10 = smov [#allocation9]  }
   0xb   : > { %s5944_s29 = scalar_select %p4864_p5, 1, 0 }
   0xc   : > { %s5945_s30 = scalar_select %p4868_p6, 1, 0 }
   0xd   : > { %p4485_p7 = pneg %p4868_p6  ;;  %s239_s11 = sshll.u32 %s4783_s10, 4  ;;  %s240_s11 = int_to_ptr.vmem [resolvable:$true] %s239_s11 }
   0xe   : > { %s4784_s13 = smov [#allocation3]   ;;  %s4585_s15 = scalar_lea.vmem %s226_s9, 16 }
   0xf   : > { %p4876_p8 = pnand %p4485_p7, %p5941_p1  ;;  %s214_s14 = sshll.u32 %s4784_s13, 4  ;;  %s4880_s14 = int_to_ptr.vmem [resolvable:$true] %s214_s14 }
  0x10   : > { %p4586_p10 = scmp.ne.s32.totalorder %s226_s9, %s4585_s15  ;;  %s4592_s16 = scalar_lea.vmem %s226_s9, 32 }
  0x11   : > { %p4576_p9 = pneg %p4876_p8  ;;  %p4593_p13 = scmp.lt.s32.totalorder %s226_s9, %s226_s9 }
  0x12   : > { %p4594_p0 = scmp.lt.s32.totalorder %s4592_s16, %s4585_s15 }
  0x13   : > { %p4588_p11 = pnand %p4586_p10, %p4576_p9 }
  0x14   : > { %p4595_p2 = por %p4594_p0, %p4593_p13 }
  0x15   : > { %p4589_p12 = pneg %p4588_p11 }
  0x17   : > { %p4596_p3 = pnand %p4595_p2, %p4589_p12 }
  0x19   : > { %4599 = shalt.err (!%p4596_p3)
}
  0x1a   : > { %4491 = dma.hbm_to_vmem [thread:$0]  (!%p4876_p8), %s5935_s2, 16, %s226_s9, [#allocation7]  }
  0x1b   : > { %s4611_s19 = scalar_lea.vmem %s240_s11, 16  ;;  %s4618_s20 = scalar_lea.vmem %s240_s11, 32 }
  0x1c   : > { %p4612_p7 = scmp.ne.s32.totalorder %s240_s11, %s4611_s19  ;;  %p4619_p11 = scmp.lt.s32.totalorder %s240_s11, %s240_s11 }
  0x1d   : > { %p4620_p1 = scmp.lt.s32.totalorder %s4618_s20, %s4611_s19 }
  0x1e   : > { %p4614_p4 = pnand %p4612_p7, %p4576_p9 }
  0x1f   : > { %p4621_p5 = por %p4620_p1, %p4619_p11 }
  0x20   : > { %p4615_p10 = pneg %p4614_p4 }
  0x22   : > { %p4622_p13 = pnand %p4621_p5, %p4615_p10 }
  0x24   : > { %4625 = shalt.err (!%p4622_p13)
}
  0x25   : > { %4494 = dma.hbm_to_vmem [thread:$0]  (!%p4876_p8), %s5937_s4, 16, %s240_s11, [#allocation10]  }
  0x26   : > { %s4637_s23 = scalar_lea.vmem %s4880_s14, 37632  ;;  %p4645_p1 = scmp.lt.s32.totalorder %s4880_s14, %s4880_s14 }
  0x27   : > { %p4638_p12 = scmp.ne.s32.totalorder %s4880_s14, %s4637_s23  ;;  %p4646_p5 = scmp.lt.s32.totalorder %s4637_s23, %s4637_s23 }
  0x29   : > { %p4640_p4 = pnand %p4638_p12, %p4576_p9  ;;  %p4647_p2 = por %p4646_p5, %p4645_p1 }
  0x2b   : > { %p4641_p0 = pneg %p4640_p4 }
  0x2d   : > { %p4648_p3 = pnand %p4647_p2, %p4641_p0 }
  0x2f   : > { %4651 = shalt.err (!%p4648_p3)
}
  0x30   : > { %4488 = dma.hbm_to_vmem [thread:$0]  (!%p4876_p8), %s5933_s0, 37632, %s4880_s14, [#allocation4]  }
  0x31   : > { %s4785_s9 = smov [#allocation11]  }
  0x32   : > { %s253_s10 = sshll.u32 %s4785_s9, 4  ;;  %s254_s10 = int_to_ptr.vmem [resolvable:$true] %s253_s10 }
  0x33   : > { %s4663_s11 = scalar_lea.vmem %s254_s10, 16  ;;  %s4670_s13 = scalar_lea.vmem %s254_s10, 32 }
  0x34   : > { %p4664_p7 = scmp.ne.s32.totalorder %s254_s10, %s4663_s11  ;;  %p4671_p13 = scmp.lt.s32.totalorder %s254_s10, %s254_s10 }
  0x35   : > { %p4672_p12 = scmp.lt.s32.totalorder %s4670_s13, %s4663_s11 }
  0x36   : > { %p4666_p10 = pnand %p4664_p7, %p4576_p9 }
  0x37   : > { %p4673_p4 = por %p4672_p12, %p4671_p13 }
  0x38   : > { %p4667_p11 = pneg %p4666_p10 }
  0x3a   : > { %p4674_p0 = pnand %p4673_p4, %p4667_p11 }
  0x3c   : > { %4677 = shalt.err (!%p4674_p0)
}
  0x3d   : > { %4497 = dma.hbm_to_vmem [thread:$0]  (!%p4876_p8), %s5939_s6, 16, %s254_s10, [#allocation10]  }
  0x3e   : > { %s4922_s14 = sadd.s32 1, %s4780_s27   ;;  %s51_s17 = sadd.s32 1, %s4776_s26 }
  0x3f   : > { %s48_s12 = ssub.s32 %s4780_s27, %s4922_s14  ;;  %p58_p9 = scmp.ne.s32.totalorder %s4776_s26, %s4772_s25 }
  0x40   : > { %p49_p1 = scmp.eq.s32.totalorder %s48_s12, 0  ;;  %p59_p5 = scmp.eq.s32.totalorder %s4780_s27, 0 }
  0x41   : > { %p4506_p2 = scmp.lt.s32.totalorder %s4780_s27, 24  ;;  %s264_s18 = sand.u32 1, %s4780_s27  }
  0x42   : > { %s4933_s19 = scalar_select %p49_p1, %s4776_s26, %s51_s17  }
  0x43   : > { %p60_p3 = por %p59_p5, %p58_p9  ;;  %s266_s20 = sand.u32 1, %s4776_s26  }
  0x44   : > { %s3500_s21 = smul.u32 100352, %s4780_s27  ;;  %s4948_s13 = scalar_lea.sflag [#allocation7], %s264_s18 }
  0x45   : > { %s4461_s22 = smul.u32 6272, %s266_s20  ;;  %p4937_p7 = pnand %p4506_p2, %p60_p3 }
  0x46   : > { %s4944_s9 = scalar_lea.hbm %s5934_s1, %s3500_s21  ;;  %s4683_s17 = scalar_lea.hbm %s5934_s1, 2408448 }
  0x47   : > { %s268_s10 = scalar_lea.vmem [#allocation6], %s4461_s22  ;;  %s4678_s27 = scalar_lea.hbm %s4944_s9, 100352 }
  0x48   : > { %s275_s11 = sshll.u32 %s268_s10, 4  ;;  %p4679_p8 = scmp.ne.s32.totalorder %s4944_s9, %s4678_s27  ;;  %s4946_s11 = int_to_ptr.vmem [resolvable:$true] %s275_s11 }
  0x49   : > { %p4680_p10 = pneg %p4937_p7  ;;  %p4684_p12 = scmp.lt.s32.totalorder %s4944_s9, %s5934_s1 }
  0x4a   : > { %p4685_p4 = scmp.lt.s32.totalorder %s4683_s17, %s4678_s27 }
  0x4b   : > { %p4681_p11 = pnand %p4680_p10, %p4679_p8 }
  0x4c   : > { %p4686_p0 = por %p4685_p4, %p4684_p12 }
  0x4d   : > { %p4682_p13 = pneg %p4681_p11 }
  0x4f   : > { %p4687_p9 = pnand %p4686_p0, %p4682_p13 }
  0x51   : > { %4690 = shalt.err (!%p4687_p9)
}
  0x52   : > { %s4691_s18 = scalar_lea.vmem %s4946_s11, 100352  ;;  %s4786_s21 = smov [#allocation6]  }
  0x53   : > { %p4692_p1 = scmp.ne.s32.totalorder %s4946_s11, %s4691_s18  ;;  %s4696_s22 = sshll.u32 %s4786_s21, 4  ;;  %s4697_s22 = int_to_ptr.vmem [resolvable:$false] %s4696_s22 }
  0x54   : > { %s4698_s24 = scalar_lea.vmem %s4697_s22, 200704  ;;  %p4699_p3 = scmp.lt.s32.totalorder %s4946_s11, %s4697_s22 }
  0x55   : > { %p4694_p5 = pnand %p4692_p1, %p4680_p10  ;;  %p4700_p8 = scmp.lt.s32.totalorder %s4698_s24, %s4691_s18 }
  0x57   : > { %p4695_p2 = pneg %p4694_p5  ;;  %p4701_p11 = por %p4700_p8, %p4699_p3 }
  0x59   : > { %p4702_p6 = pnand %p4701_p11, %p4695_p2 }
  0x5b   : > { %4705 = shalt.err (!%p4702_p6)
}
  0x5c   : > { %s4787_s8 = smov 128   ;;  %s4788_s10 = smov 8  }
  0x5d   : > { %4501 = dma.hbm_to_vmem [thread:$0]  (!%p4937_p7), %s4944_s9, 100352, %s4946_s11, %s4948_s13, %s4787_s8, %s4787_s8, %s4788_s10  }
  0x5e   : > { %p5948_p10 = scmp.ne.s32.totalorder %s5945_s30, 0 }
  0x5f   : > { %p5949_p13 = scmp.eq.s32.totalorder (!%p5948_p10), %s4855_s28, 0 }
  0x60   : > { %287 = sbr.rel (%p5948_p10) target bundleno = 1517 (0x5ed), region = 48 }
  0x65   : > { %4747 = dma.done.wait (%p5949_p13), [#allocation4], 37632   ;;  %p5950_p12 = pmov %p5949_p13 }
  0x66   : > { %s293_s27 = sand.u32 1, %s4855_s28   ;;  %s295_s15 = sand.u32 1, %s4772_s25  }
  0x67   : > { %4749 = vsyncadd (%p5950_p12), [#allocation4], 4294929664  ;;  %s4462_s16 = smul.u32 6272, %s295_s15  ;;  %s294_s17 = scalar_lea.sflag [#allocation7], %s293_s27 }
  0x68   : > { %p5951_p6 = scmp.ne.s32.totalorder %s5944_s29, 0 }
  0x69   : > { %s4977_s12 = scalar_lea.vmem [#allocation6], %s4462_s16 }
  0x6a   : > { %4751 = dma.done.wait (%p5951_p6), %s294_s17, 100352  }
  0x6b   : > { %4753 = vsyncadd (%p5951_p6), %s294_s17, 4294866944  ;;  %p5952_p7 = pmov %p5950_p12 }
  0x6d   : > { %4755 = dma.done.wait (%p5952_p7), [#allocation7], 16   ;;  %p5953_p4 = pmov %p5952_p7 }
  0x6f   : > { %4757 = vsyncadd (%p5953_p4), [#allocation7], 4294967280  ;;  %p5954_p0 = pmov %p5953_p4 }
  0x71   : > { %4759 = dma.done.wait (%p5954_p0), [#allocation10], 32   ;;  %p5955_p9 = pmov %p5954_p0 }
  0x72   : > { %p5956_p1 = scmp.ne.s32.totalorder %s4855_s28, 0 }
  0x73   : > { %4761 = vsyncadd (%p5955_p9), [#allocation10], 4294967264 }
  0x74   : > { %339 = sbr.rel (%p5956_p1) target bundleno = 123 (0x7b), region = 72 }
  0x79   : > { %v4789_v0 = vmov 0.0  }
  0x7a   : > { %340 = vst [vmem:[#allocation2] sm:$0x3] %v4789_v0 }
  0x7b PF: > { %v391_v1 = vld [vmem:[%s4977_s12 + $0xf8] sm:$0xff]  ;;  %v390_v5 = vld [vmem:[%s4977_s12 + $0xf0] sm:$0xff]  ;;  %v389_v9 = vld [vmem:[%s4977_s12 + $0xe8] sm:$0xff]  ;;  %s341_s29 = smul.u32 6272, %s4855_s28  ;;  %v4790_v31 = vmov 1983009808   ;;  %v1161_v33 = vlaneseq }
  0x7c   : > { %v423_v2 = vld [vmem:[%s4977_s12 + $0x1f8] sm:$0xff]  ;;  %3501 = vmatprep.subr.mxu0 %v391_v1  ;;  %v422_v6 = vld [vmem:[%s4977_s12 + $0x1f0] sm:$0xff]  ;;  %v421_v10 = vld [vmem:[%s4977_s12 + $0x1e8] sm:$0xff]  ;;  %v1159_v32 = vunpack.c.l.s4 %v4790_v31  ;;  %vm4792_vm0 = vmmov 0   ;;  %p3491_p5 = scmp.ne.s32.totalorder %s4855_s28, 23 }
  0x7d   : > { %v375_v3 = vld [vmem:[%s4977_s12 + $0x78] sm:$0xff]  ;;  %3536 = vmatprep.subr.mxu1 %v423_v2  ;;  %v374_v7 = vld [vmem:[%s4977_s12 + $0x70] sm:$0xff]  ;;  %v373_v11 = vld [vmem:[%s4977_s12 + $0x68] sm:$0xff]  ;;  %s5024_s30 = sshra.s32 %s341_s29, 7  ;;  %v1162_v43 = vshrl.u32 %v1161_v33, 7 }
  0x7e   : > { %v407_v4 = vld [vmem:[%s4977_s12 + $0x178] sm:$0xff]  ;;  %3502 = vmatpush3.msra.mxu0 %v375_v3  ;;  %v406_v8 = vld [vmem:[%s4977_s12 + $0x170] sm:$0xff]  ;;  %v405_v12 = vld [vmem:[%s4977_s12 + $0x168] sm:$0xff]  ;;  %s3489_s23 = sshll.u32 %s5024_s30, 1  ;;  %v1160_v42 = vunpack.c.0.s8 %v1159_v32 }
  0x7f   : > { %3537 = vmatpush3.msra.mxu1 %v407_v4  ;;  %3503 = vmatprep.subr.mxu0 %v390_v5  ;;  %v388_v13 = vld [vmem:[%s4977_s12 + $0xe0] sm:$0xff]  ;;  %v387_v17 = vld [vmem:[%s4977_s12 + $0xd8] sm:$0xff]  ;;  %v386_v21 = vld [vmem:[%s4977_s12 + $0xd0] sm:$0xff]  ;;  %s5047_s9 = scalar_lea.vmem [#allocation3], %s3489_s23 }
  0x80   : > { %3538 = vmatprep.subr.mxu1 %v422_v6  ;;  %3504 = vmatpush3.msra.mxu0 %v374_v7  ;;  %v420_v14 = vld [vmem:[%s4977_s12 + $0x1e0] sm:$0xff]  ;;  %v419_v18 = vld [vmem:[%s4977_s12 + $0x1d8] sm:$0xff]  ;;  %v418_v22 = vld [vmem:[%s4977_s12 + $0x1d0] sm:$0xff]  ;;  %v5043_v52 = vsub.s32 %v1160_v42, %v1162_v43 }
  0x81   : > { %3539 = vmatpush3.msra.mxu1 %v406_v8  ;;  %3505 = vmatprep.subr.mxu0 %v389_v9  ;;  %v372_v15 = vld [vmem:[%s4977_s12 + $0x60] sm:$0xff]  ;;  %v371_v19 = vld [vmem:[%s4977_s12 + $0x58] sm:$0xff]  ;;  %v370_v23 = vld [vmem:[%s4977_s12 + $0x50] sm:$0xff] }
  0x82   : > { %3540 = vmatprep.subr.mxu1 %v421_v10  ;;  %v404_v16 = vld [vmem:[%s4977_s12 + $0x160] sm:$0xff]  ;;  %3506 = vmatpush3.msra.mxu0 %v373_v11  ;;  %v403_v20 = vld [vmem:[%s4977_s12 + $0x158] sm:$0xff]  ;;  %v402_v24 = vld [vmem:[%s4977_s12 + $0x150] sm:$0xff] }
  0x83   : > { %3541 = vmatpush3.msra.mxu1 %v405_v12  ;;  %3507 = vmatprep.subr.mxu0 %v388_v13  ;;  %v385_v25 = vld [vmem:[%s4977_s12 + $0xc8] sm:$0xff]  ;;  %v384_v29 = vld [vmem:[%s4977_s12 + $0xc0] sm:$0xff]  ;;  %v383_v36 = vld [vmem:[%s4977_s12 + $0xb8] sm:$0xff] }
  0x84   : > { %3542 = vmatprep.subr.mxu1 %v420_v14  ;;  %3508 = vmatpush3.msra.mxu0 %v372_v15  ;;  %v417_v26 = vld [vmem:[%s4977_s12 + $0x1c8] sm:$0xff]  ;;  %v416_v30 = vld [vmem:[%s4977_s12 + $0x1c0] sm:$0xff]  ;;  %v415_v37 = vld [vmem:[%s4977_s12 + $0x1b8] sm:$0xff] }
  0x85   : > { %3543 = vmatpush3.msra.mxu1 %v404_v16  ;;  %3509 = vmatprep.subr.mxu0 %v387_v17  ;;  %v369_v27 = vld [vmem:[%s4977_s12 + $0x48] sm:$0xff]  ;;  %v368_v34 = vld [vmem:[%s4977_s12 + $0x40] sm:$0xff]  ;;  %v367_v38 = vld [vmem:[%s4977_s12 + $0x38] sm:$0xff] }
  0x86   : > { %3544 = vmatprep.subr.mxu1 %v419_v18  ;;  %3510 = vmatpush3.msra.mxu0 %v371_v19  ;;  %v401_v28 = vld [vmem:[%s4977_s12 + $0x148] sm:$0xff]  ;;  %v400_v35 = vld [vmem:[%s4977_s12 + $0x140] sm:$0xff]  ;;  %v399_v39 = vld [vmem:[%s4977_s12 + $0x138] sm:$0xff] }
  0x87   : > { %3545 = vmatpush3.msra.mxu1 %v403_v20  ;;  %3511 = vmatprep.subr.mxu0 %v386_v21  ;;  %v382_v40 = vld [vmem:[%s4977_s12 + $0xb0] sm:$0xff]  ;;  %v381_v46 = vld [vmem:[%s4977_s12 + $0xa8] sm:$0xff]  ;;  %v380_v50 = vld [vmem:[%s4977_s12 + $0xa0] sm:$0xff] }
  0x88   : > { %3546 = vmatprep.subr.mxu1 %v418_v22  ;;  %3512 = vmatpush3.msra.mxu0 %v370_v23  ;;  %v414_v41 = vld [vmem:[%s4977_s12 + $0x1b0] sm:$0xff]  ;;  %v413_v47 = vld [vmem:[%s4977_s12 + $0x1a8] sm:$0xff]  ;;  %v412_v51 = vld [vmem:[%s4977_s12 + $0x1a0] sm:$0xff] }
  0x89   : > { %3547 = vmatpush3.msra.mxu1 %v402_v24  ;;  %3513 = vmatprep.subr.mxu0 %v385_v25  ;;  %v366_v44 = vld [vmem:[%s4977_s12 + $0x30] sm:$0xff]  ;;  %v365_v48 = vld [vmem:[%s4977_s12 + $0x28] sm:$0xff]  ;;  %v364_v53 = vld [vmem:[%s4977_s12 + $0x20] sm:$0xff] }
  0x8a   : > { %3548 = vmatprep.subr.mxu1 %v417_v26  ;;  %3514 = vmatpush3.msra.mxu0 %v369_v27  ;;  %v398_v45 = vld [vmem:[%s4977_s12 + $0x130] sm:$0xff]  ;;  %v397_v49 = vld [vmem:[%s4977_s12 + $0x128] sm:$0xff]  ;;  %v396_v54 = vld [vmem:[%s4977_s12 + $0x120] sm:$0xff] }
  0x8b   : > { %3549 = vmatpush3.msra.mxu1 %v401_v28  ;;  %3515 = vmatprep.subr.mxu0 %v384_v29  ;;  %v346_v55 = vld [vmem:[%s5047_s9] sm:$0xff]  ;;  %v379_v56 = vld [vmem:[%s4977_s12 + $0x98] sm:$0xff]  ;;  %v376_v7 = vld [vmem:[%s4977_s12 + $0x80] sm:$0xff] }
  0x8c   : > { %3550 = vmatprep.subr.mxu1 %v416_v30  ;;  %3516 = vmatpush3.msra.mxu0 %v368_v34  ;;  %v411_v57 = vld [vmem:[%s4977_s12 + $0x198] sm:$0xff]  ;;  %v1157_v58 = vcombine.high %v346_v55, %v346_v55  ;;  %v378_v61 = vld [vmem:[%s4977_s12 + $0x90] sm:$0xff]  ;;  %v1164_v63 = vrot.slane %v346_v55, %v5043_v52  ;;  %v377_v3 = vld [vmem:[%s4977_s12 + $0x88] sm:$0xff] }
  0x8d   : > { %3551 = vmatpush3.msra.mxu1 %v400_v35  ;;  %3517 = vmatprep.subr.mxu0 %v383_v36  ;;  %v363_v59 = vld [vmem:[%s4977_s12 + $0x18] sm:$0xff]  ;;  %v410_v62 = vld [vmem:[%s4977_s12 + $0x190] sm:$0xff]  ;;  %v409_v4 = vld [vmem:[%s4977_s12 + $0x188] sm:$0xff] }
  0x8e   : > { %3552 = vmatprep.subr.mxu1 %v415_v37  ;;  %3518 = vmatpush3.msra.mxu0 %v367_v38  ;;  %v395_v60 = vld [vmem:[%s4977_s12 + $0x118] sm:$0xff]  ;;  %v362_v0 = vld [vmem:[%s4977_s12 + $0x10] sm:$0xff]  ;;  %v1171_v2 = vrot.slane %v1157_v58, %v5043_v52  ;;  %v361_v5 = vld [vmem:[%s4977_s12 + $0x8] sm:$0xff]  ;;  %v1172_v9 = vcombine.high %v1164_v63, %v1164_v63 }
  0x8f   : > { %3553 = vmatpush3.msra.mxu1 %v399_v39  ;;  %3519 = vmatprep.subr.mxu0 %v382_v40  ;;  %v394_v1 = vld [vmem:[%s4977_s12 + $0x110] sm:$0xff]  ;;  %v393_v6 = vld [vmem:[%s4977_s12 + $0x108] sm:$0xff]  ;;  %v408_v8 = vld [vmem:[%s4977_s12 + $0x180] sm:$0xff] }
  0x90   : > { %3554 = vmatprep.subr.mxu1 %v414_v41  ;;  %3520 = vmatpush3.msra.mxu0 %v366_v44  ;;  %v360_v10 = vld [vmem:[%s4977_s12] sm:$0xff]  ;;  %v1173_v11 = vcombine.high %v1171_v2, %v1171_v2  ;;  %v455_v13 = vld [vmem:[%s4977_s12 + $0x2f8] sm:$0xff]  ;;  %v454_v17 = vld [vmem:[%s4977_s12 + $0x2f0] sm:$0xff] }
  0x91   : > { %3555 = vmatpush3.msra.mxu1 %v398_v45  ;;  %3521 = vmatprep.subr.mxu0 %v381_v46  ;;  %v392_v12 = vld [vmem:[%s4977_s12 + $0x100] sm:$0xff]  ;;  %v487_v14 = vld [vmem:[%s4977_s12 + $0x3f8] sm:$0xff]  ;;  %v486_v18 = vld [vmem:[%s4977_s12 + $0x3f0] sm:$0xff] }
  0x92   : > { %3556 = vmatprep.subr.mxu1 %v413_v47  ;;  %3522 = vmatpush3.msra.mxu0 %v365_v48  ;;  %v439_v15 = vld [vmem:[%s4977_s12 + $0x278] sm:$0xff]  ;;  %v438_v19 = vld [vmem:[%s4977_s12 + $0x270] sm:$0xff]  ;;  %v453_v21 = vld [vmem:[%s4977_s12 + $0x2e8] sm:$0xff] }
  0x93   : > { %3557 = vmatpush3.msra.mxu1 %v397_v49  ;;  %3523 = vmatprep.subr.mxu0 %v380_v50  ;;  %v471_v16 = vld [vmem:[%s4977_s12 + $0x378] sm:$0xff]  ;;  %v470_v20 = vld [vmem:[%s4977_s12 + $0x370] sm:$0xff]  ;;  %v485_v22 = vld [vmem:[%s4977_s12 + $0x3e8] sm:$0xff] }
  0x94   : > { %3558 = vmatprep.subr.mxu1 %v412_v51  ;;  %3524 = vmatpush3.msra.mxu0 %v364_v53  ;;  %v437_v23 = vld [vmem:[%s4977_s12 + $0x268] sm:$0xff]  ;;  %v452_v25 = vld [vmem:[%s4977_s12 + $0x2e0] sm:$0xff]  ;;  %v451_v29 = vld [vmem:[%s4977_s12 + $0x2d8] sm:$0xff] }
  0x95   : > { %3559 = vmatpush3.msra.mxu1 %v396_v54  ;;  %3525 = vmatprep.subr.mxu0 %v379_v56  ;;  %v469_v24 = vld [vmem:[%s4977_s12 + $0x368] sm:$0xff]  ;;  %v484_v26 = vld [vmem:[%s4977_s12 + $0x3e0] sm:$0xff]  ;;  %v483_v30 = vld [vmem:[%s4977_s12 + $0x3d8] sm:$0xff] }
  0x96   : > { %3560 = vmatprep.subr.mxu1 %v411_v57  ;;  %3526 = vmatpush3.msra.mxu0 %v363_v59  ;;  %v436_v27 = vld [vmem:[%s4977_s12 + $0x260] sm:$0xff]  ;;  %v435_v31 = vld [vmem:[%s4977_s12 + $0x258] sm:$0xff]  ;;  %v450_v33 = vld [vmem:[%s4977_s12 + $0x2d0] sm:$0xff] }
  0x97   : > { %3561 = vmatpush3.msra.mxu1 %v395_v60  ;;  %3527 = vmatprep.subr.mxu0 %v378_v61  ;;  %v468_v28 = vld [vmem:[%s4977_s12 + $0x360] sm:$0xff]  ;;  %v467_v32 = vld [vmem:[%s4977_s12 + $0x358] sm:$0xff]  ;;  %v482_v34 = vld [vmem:[%s4977_s12 + $0x3d0] sm:$0xff] }
  0x98   : > { %3562 = vmatprep.subr.mxu1 %v410_v62  ;;  %3528 = vmatpush3.msra.mxu0 %v362_v0  ;;  %v434_v35 = vld [vmem:[%s4977_s12 + $0x250] sm:$0xff]  ;;  %v449_v37 = vld [vmem:[%s4977_s12 + $0x2c8] sm:$0xff]  ;;  %v448_v41 = vld [vmem:[%s4977_s12 + $0x2c0] sm:$0xff] }
  0x99   : > { %3563 = vmatpush3.msra.mxu1 %v394_v1  ;;  %3529 = vmatprep.subr.mxu0 %v377_v3  ;;  %v466_v36 = vld [vmem:[%s4977_s12 + $0x350] sm:$0xff]  ;;  %v481_v38 = vld [vmem:[%s4977_s12 + $0x3c8] sm:$0xff]  ;;  %v480_v42 = vld [vmem:[%s4977_s12 + $0x3c0] sm:$0xff] }
  0x9a   : > { %3564 = vmatprep.subr.mxu1 %v409_v4  ;;  %3530 = vmatpush3.msra.mxu0 %v361_v5  ;;  %v433_v39 = vld [vmem:[%s4977_s12 + $0x248] sm:$0xff]  ;;  %v432_v43 = vld [vmem:[%s4977_s12 + $0x240] sm:$0xff]  ;;  %v447_v45 = vld [vmem:[%s4977_s12 + $0x2b8] sm:$0xff] }
  0x9b   : > { %3565 = vmatpush3.msra.mxu1 %v393_v6  ;;  %3531 = vmatprep.subr.mxu0 %v376_v7  ;;  %v465_v40 = vld [vmem:[%s4977_s12 + $0x348] sm:$0xff]  ;;  %v464_v44 = vld [vmem:[%s4977_s12 + $0x340] sm:$0xff]  ;;  %v479_v46 = vld [vmem:[%s4977_s12 + $0x3b8] sm:$0xff] }
  0x9c   : > { %3566 = vmatprep.subr.mxu1 %v408_v8  ;;  %3532 = vmatpush3.msra.mxu0 %v360_v10  ;;  %v431_v47 = vld [vmem:[%s4977_s12 + $0x238] sm:$0xff]  ;;  %v446_v49 = vld [vmem:[%s4977_s12 + $0x2b0] sm:$0xff]  ;;  %v445_v54 = vld [vmem:[%s4977_s12 + $0x2a8] sm:$0xff] }
  0x9d   : > { %1481 = vmatprep.mubr.f32.mxu0 %v1172_v9  ;;  %3567 = vmatpush3.msra.mxu1 %v392_v12  ;;  %v463_v48 = vld [vmem:[%s4977_s12 + $0x338] sm:$0xff]  ;;  %v478_v50 = vld [vmem:[%s4977_s12 + $0x3b0] sm:$0xff]  ;;  %v477_v55 = vld [vmem:[%s4977_s12 + $0x3a8] sm:$0xff] }
  0x9e   : > { %1551 = vmatprep.mubr.f32.mxu1 %v1173_v11  ;;  %1482 = vmatmul.mubr.f32.vlgmr.msra.gmra.mxu0 %v1164_v63  ;;  %v430_v51 = vld [vmem:[%s4977_s12 + $0x230] sm:$0xff]  ;;  %v429_v56 = vld [vmem:[%s4977_s12 + $0x228] sm:$0xff]  ;;  %v444_v59 = vld [vmem:[%s4977_s12 + $0x2a0] sm:$0xff] }
  0x9f   : > { %1552 = vmatmul.mubr.f32.vlgmr.msra.gmra.mxu1 %v1171_v2  ;;  %3571 = vmatprep.subr.mxu0 %v455_v13  ;;  %v462_v53 = vld [vmem:[%s4977_s12 + $0x330] sm:$0xff]  ;;  %v461_v57 = vld [vmem:[%s4977_s12 + $0x328] sm:$0xff]  ;;  %v476_v60 = vld [vmem:[%s4977_s12 + $0x3a0] sm:$0xff] }
  0xa0   : > { %3606 = vmatprep.subr.mxu1 %v487_v14  ;;  %3572 = vmatpush3.msra.mxu0 %v439_v15  ;;  %v347_v58 = vld [vmem:[%s5047_s9 + $0x8] sm:$0xff]  ;;  %v428_v61 = vld [vmem:[%s4977_s12 + $0x220] sm:$0xff]  ;;  %v441_v9 = vld [vmem:[%s4977_s12 + $0x288] sm:$0xff] }
  0xa1   : > { %3607 = vmatpush3.msra.mxu1 %v471_v16  ;;  %3573 = vmatprep.subr.mxu0 %v454_v17  ;;  %v460_v62 = vld [vmem:[%s4977_s12 + $0x320] sm:$0xff]  ;;  %v443_v63 = vld [vmem:[%s4977_s12 + $0x298] sm:$0xff]  ;;  %v1181_v1 = vrot.slane %v347_v58, %v5043_v52  ;;  %v1174_v2 = vcombine.high %v347_v58, %v347_v58  ;;  %v442_v5 = vld [vmem:[%s4977_s12 + $0x290] sm:$0xff] }
  0xa2   : > { %3608 = vmatprep.subr.mxu1 %v486_v18  ;;  %3574 = vmatpush3.msra.mxu0 %v438_v19  ;;  %v475_v0 = vld [vmem:[%s4977_s12 + $0x398] sm:$0xff]  ;;  %v474_v6 = vld [vmem:[%s4977_s12 + $0x390] sm:$0xff]  ;;  %v473_v10 = vld [vmem:[%s4977_s12 + $0x388] sm:$0xff] }
  0xa3   : > { %3609 = vmatpush3.msra.mxu1 %v470_v20  ;;  %3575 = vmatprep.subr.mxu0 %v453_v21  ;;  %v427_v3 = vld [vmem:[%s4977_s12 + $0x218] sm:$0xff]  ;;  %v426_v7 = vld [vmem:[%s4977_s12 + $0x210] sm:$0xff]  ;;  %v1189_v11 = vcombine.high %v1181_v1, %v1181_v1  ;;  %v1188_v12 = vrot.slane %v1174_v2, %v5043_v52  ;;  %v425_v13 = vld [vmem:[%s4977_s12 + $0x208] sm:$0xff] }
  0xa4   : > { %3610 = vmatprep.subr.mxu1 %v485_v22  ;;  %3576 = vmatpush3.msra.mxu0 %v437_v23  ;;  %v459_v4 = vld [vmem:[%s4977_s12 + $0x318] sm:$0xff]  ;;  %v458_v8 = vld [vmem:[%s4977_s12 + $0x310] sm:$0xff]  ;;  %v440_v14 = vld [vmem:[%s4977_s12 + $0x280] sm:$0xff] }
  0xa5   : > { %3611 = vmatpush3.msra.mxu1 %v469_v24  ;;  %3577 = vmatprep.subr.mxu0 %v452_v25  ;;  %v457_v15 = vld [vmem:[%s4977_s12 + $0x308] sm:$0xff]  ;;  %v424_v16 = vld [vmem:[%s4977_s12 + $0x200] sm:$0xff]  ;;  %v519_v18 = vld [vmem:[%s4977_s12 + $0x4f8] sm:$0xff]  ;;  %v1190_v19 = vcombine.high %v1188_v12, %v1188_v12 }
  0xa6   : > { %3612 = vmatprep.subr.mxu1 %v484_v26  ;;  %3578 = vmatpush3.msra.mxu0 %v436_v27  ;;  %v472_v17 = vld [vmem:[%s4977_s12 + $0x380] sm:$0xff]  ;;  %v503_v21 = vld [vmem:[%s4977_s12 + $0x478] sm:$0xff]  ;;  %v518_v22 = vld [vmem:[%s4977_s12 + $0x4f0] sm:$0xff] }
  0xa7   : > { %3613 = vmatpush3.msra.mxu1 %v468_v28  ;;  %3579 = vmatprep.subr.mxu0 %v451_v29  ;;  %v456_v20 = vld [vmem:[%s4977_s12 + $0x300] sm:$0xff]  ;;  %v551_v23 = vld [vmem:[%s4977_s12 + $0x5f8] sm:$0xff]  ;;  %v502_v24 = vld [vmem:[%s4977_s12 + $0x470] sm:$0xff] }
  0xa8   : > { %3614 = vmatprep.subr.mxu1 %v483_v30  ;;  %3580 = vmatpush3.msra.mxu0 %v435_v31  ;;  %v535_v25 = vld [vmem:[%s4977_s12 + $0x578] sm:$0xff]  ;;  %v517_v26 = vld [vmem:[%s4977_s12 + $0x4e8] sm:$0xff]  ;;  %v550_v27 = vld [vmem:[%s4977_s12 + $0x5f0] sm:$0xff] }
  0xa9   : > { %3615 = vmatpush3.msra.mxu1 %v467_v32  ;;  %3581 = vmatprep.subr.mxu0 %v450_v33  ;;  %v501_v28 = vld [vmem:[%s4977_s12 + $0x468] sm:$0xff]  ;;  %v534_v29 = vld [vmem:[%s4977_s12 + $0x570] sm:$0xff]  ;;  %v516_v30 = vld [vmem:[%s4977_s12 + $0x4e0] sm:$0xff] }
  0xaa   : > { %3616 = vmatprep.subr.mxu1 %v482_v34  ;;  %3582 = vmatpush3.msra.mxu0 %v434_v35  ;;  %v549_v31 = vld [vmem:[%s4977_s12 + $0x5e8] sm:$0xff]  ;;  %v500_v32 = vld [vmem:[%s4977_s12 + $0x460] sm:$0xff]  ;;  %v515_v34 = vld [vmem:[%s4977_s12 + $0x4d8] sm:$0xff] }
  0xab   : > { %3617 = vmatpush3.msra.mxu1 %v466_v36  ;;  %3583 = vmatprep.subr.mxu0 %v449_v37  ;;  %v533_v33 = vld [vmem:[%s4977_s12 + $0x568] sm:$0xff]  ;;  %v548_v35 = vld [vmem:[%s4977_s12 + $0x5e0] sm:$0xff]  ;;  %v499_v36 = vld [vmem:[%s4977_s12 + $0x458] sm:$0xff] }
  0xac   : > { %3618 = vmatprep.subr.mxu1 %v481_v38  ;;  %3584 = vmatpush3.msra.mxu0 %v433_v39  ;;  %v532_v37 = vld [vmem:[%s4977_s12 + $0x560] sm:$0xff]  ;;  %v514_v38 = vld [vmem:[%s4977_s12 + $0x4d0] sm:$0xff]  ;;  %v547_v39 = vld [vmem:[%s4977_s12 + $0x5d8] sm:$0xff] }
  0xad   : > { %3619 = vmatpush3.msra.mxu1 %v465_v40  ;;  %3585 = vmatprep.subr.mxu0 %v448_v41  ;;  %v498_v40 = vld [vmem:[%s4977_s12 + $0x450] sm:$0xff]  ;;  %v531_v41 = vld [vmem:[%s4977_s12 + $0x558] sm:$0xff]  ;;  %v492_v2 = vld [vmem:[%s4977_s12 + $0x420] sm:$0xff] }
  0xae   : > { %3620 = vmatprep.subr.mxu1 %v480_v42  ;;  %3586 = vmatpush3.msra.mxu0 %v432_v43  ;;  %v513_v42 = vld [vmem:[%s4977_s12 + $0x4c8] sm:$0xff]  ;;  %v546_v43 = vld [vmem:[%s4977_s12 + $0x5d0] sm:$0xff]  ;;  %v527_v58 = vld [vmem:[%s4977_s12 + $0x538] sm:$0xff] }
  0xaf   : > { %3621 = vmatpush3.msra.mxu1 %v464_v44  ;;  %3587 = vmatprep.subr.mxu0 %v447_v45  ;;  %v497_v44 = vld [vmem:[%s4977_s12 + $0x448] sm:$0xff]  ;;  %v530_v45 = vld [vmem:[%s4977_s12 + $0x550] sm:$0xff] }
  0xb0   : > { %3622 = vmatprep.subr.mxu1 %v479_v46  ;;  %3588 = vmatpush3.msra.mxu0 %v431_v47  ;;  %v512_v46 = vld [vmem:[%s4977_s12 + $0x4c0] sm:$0xff]  ;;  %v545_v47 = vld [vmem:[%s4977_s12 + $0x5c8] sm:$0xff] }
  0xb1   : > { %3623 = vmatpush3.msra.mxu1 %v463_v48  ;;  %3589 = vmatprep.subr.mxu0 %v446_v49  ;;  %v496_v48 = vld [vmem:[%s4977_s12 + $0x440] sm:$0xff]  ;;  %v529_v49 = vld [vmem:[%s4977_s12 + $0x548] sm:$0xff] }
  0xb2   : > { %3624 = vmatprep.subr.mxu1 %v478_v50  ;;  %3590 = vmatpush3.msra.mxu0 %v430_v51  ;;  %v511_v50 = vld [vmem:[%s4977_s12 + $0x4b8] sm:$0xff]  ;;  %v544_v51 = vld [vmem:[%s4977_s12 + $0x5c0] sm:$0xff] }
  0xb3   : > { %3625 = vmatpush3.msra.mxu1 %v462_v53  ;;  %3591 = vmatprep.subr.mxu0 %v445_v54  ;;  %v495_v53 = vld [vmem:[%s4977_s12 + $0x438] sm:$0xff]  ;;  %v528_v54 = vld [vmem:[%s4977_s12 + $0x540] sm:$0xff] }
  0xb4   : > { %3626 = vmatprep.subr.mxu1 %v477_v55  ;;  %3592 = vmatpush3.msra.mxu0 %v429_v56  ;;  %v510_v55 = vld [vmem:[%s4977_s12 + $0x4b0] sm:$0xff]  ;;  %v543_v56 = vld [vmem:[%s4977_s12 + $0x5b8] sm:$0xff] }
  0xb5   : > { %3627 = vmatpush3.msra.mxu1 %v461_v57  ;;  %3593 = vmatprep.subr.mxu0 %v444_v59  ;;  %v494_v57 = vld [vmem:[%s4977_s12 + $0x430] sm:$0xff]  ;;  %v509_v59 = vld [vmem:[%s4977_s12 + $0x4a8] sm:$0xff] }
  0xb6   : > { %3628 = vmatprep.subr.mxu1 %v476_v60  ;;  %3594 = vmatpush3.msra.mxu0 %v428_v61  ;;  %v542_v60 = vld [vmem:[%s4977_s12 + $0x5b0] sm:$0xff]  ;;  %v493_v61 = vld [vmem:[%s4977_s12 + $0x428] sm:$0xff] }
  0xb7   : > { %3629 = vmatpush3.msra.mxu1 %v460_v62  ;;  %3595 = vmatprep.subr.mxu0 %v443_v63  ;;  %v526_v62 = vld [vmem:[%s4977_s12 + $0x530] sm:$0xff]  ;;  %v508_v63 = vld [vmem:[%s4977_s12 + $0x4a0] sm:$0xff] }
  0xb8   : > { %3630 = vmatprep.subr.mxu1 %v475_v0  ;;  %3596 = vmatpush3.msra.mxu0 %v427_v3  ;;  %v541_v0 = vld [vmem:[%s4977_s12 + $0x5a8] sm:$0xff] }
  0xb9   : > { %3631 = vmatpush3.msra.mxu1 %v459_v4  ;;  %3597 = vmatprep.subr.mxu0 %v442_v5  ;;  %v525_v3 = vld [vmem:[%s4977_s12 + $0x528] sm:$0xff]  ;;  %v507_v4 = vld [vmem:[%s4977_s12 + $0x498] sm:$0xff]  ;;  %v540_v5 = vld [vmem:[%s4977_s12 + $0x5a0] sm:$0xff] }
  0xba   : > { %3632 = vmatprep.subr.mxu1 %v474_v6  ;;  %3598 = vmatpush3.msra.mxu0 %v426_v7  ;;  %v491_v6 = vld [vmem:[%s4977_s12 + $0x418] sm:$0xff]  ;;  %v524_v7 = vld [vmem:[%s4977_s12 + $0x520] sm:$0xff] }
  0xbb   : > { %3633 = vmatpush3.msra.mxu1 %v458_v8  ;;  %3599 = vmatprep.subr.mxu0 %v441_v9  ;;  %v506_v9 = vld [vmem:[%s4977_s12 + $0x490] sm:$0xff] }
  0xbc   : > { %3634 = vmatprep.subr.mxu1 %v473_v10  ;;  %3600 = vmatpush3.msra.mxu0 %v425_v13  ;;  %v539_v10 = vld [vmem:[%s4977_s12 + $0x598] sm:$0xff] }
  0xbd   : > { %1621 = vmatprep.mubr.f32.mxu0 %v1189_v11  ;;  %3601 = vmatprep.subr.mxu0 %v440_v14  ;;  %v523_v13 = vld [vmem:[%s4977_s12 + $0x518] sm:$0xff]  ;;  %v505_v14 = vld [vmem:[%s4977_s12 + $0x488] sm:$0xff] }
  0xbe   : > { %3635 = vmatpush3.msra.mxu1 %v457_v15  ;;  %3602 = vmatpush3.msra.mxu0 %v424_v16  ;;  %v538_v15 = vld [vmem:[%s4977_s12 + $0x590] sm:$0xff]  ;;  %v489_v16 = vld [vmem:[%s4977_s12 + $0x408] sm:$0xff] }
  0xbf   : > { %3636 = vmatprep.subr.mxu1 %v472_v17  ;;  %1622 = vmatmul.mubr.f32.vlgmr.msra.gmra.mxu0 %v1181_v1  ;;  %v348_v1 = vld [vmem:[%s5047_s9 + $0x10] sm:$0xff]  ;;  %v522_v17 = vld [vmem:[%s4977_s12 + $0x510] sm:$0xff] }
  0xc0   : > { %3641 = vmatprep.subr.mxu0 %v519_v18  ;;  %3637 = vmatpush3.msra.mxu1 %v456_v20  ;;  %v1191_v8 = vcombine.high %v348_v1, %v348_v1  ;;  %v1198_v11 = vrot.slane %v348_v1, %v5043_v52  ;;  %v537_v20 = vld [vmem:[%s4977_s12 + $0x588] sm:$0xff]  ;;  %v591_v1 = vld [vmem:[%s4977_s12 + $0x738] sm:$0xff] }
  0xc1   : > { %1691 = vmatprep.mubr.f32.mxu1 %v1190_v19  ;;  %3642 = vmatpush3.msra.mxu0 %v503_v21  ;;  %v504_v19 = vld [vmem:[%s4977_s12 + $0x480] sm:$0xff] }
  0xc2   : > { %1692 = vmatmul.mubr.f32.vlgmr.msra.gmra.mxu1 %v1188_v12  ;;  %3643 = vmatprep.subr.mxu0 %v518_v22  ;;  %v490_v12 = vld [vmem:[%s4977_s12 + $0x410] sm:$0xff]  ;;  %v1205_v18 = vrot.slane %v1191_v8, %v5043_v52  ;;  %v1206_v21 = vcombine.high %v1198_v11, %v1198_v11  ;;  %v488_v22 = vld [vmem:[%s4977_s12 + $0x400] sm:$0xff] }
  0xc3   : > { %3676 = vmatprep.subr.mxu1 %v551_v23  ;;  %3644 = vmatpush3.msra.mxu0 %v502_v24  ;;  %v521_v23 = vld [vmem:[%s4977_s12 + $0x508] sm:$0xff]  ;;  %v536_v24 = vld [vmem:[%s4977_s12 + $0x580] sm:$0xff] }
  0xc4   : > { %3677 = vmatpush3.msra.mxu1 %v535_v25  ;;  %3645 = vmatprep.subr.mxu0 %v517_v26  ;;  %v583_v25 = vld [vmem:[%s4977_s12 + $0x6f8] sm:$0xff]  ;;  %v1207_v26 = vcombine.high %v1205_v18, %v1205_v18  ;;  %v349_v8 = vld [vmem:[%s5047_s9 + $0x18] sm:$0xff] }
  0xc5   : > { %3678 = vmatprep.subr.mxu1 %v550_v27  ;;  %3646 = vmatpush3.msra.mxu0 %v501_v28  ;;  %v520_v27 = vld [vmem:[%s4977_s12 + $0x500] sm:$0xff]  ;;  %v567_v28 = vld [vmem:[%s4977_s12 + $0x678] sm:$0xff] }
  0xc6   : > { %3679 = vmatpush3.msra.mxu1 %v534_v29  ;;  %3647 = vmatprep.subr.mxu0 %v516_v30  ;;  %v582_v29 = vld [vmem:[%s4977_s12 + $0x6f0] sm:$0xff]  ;;  %v615_v30 = vld [vmem:[%s4977_s12 + $0x7f8] sm:$0xff] }
  0xc7   : > { %3680 = vmatprep.subr.mxu1 %v549_v31  ;;  %3648 = vmatpush3.msra.mxu0 %v500_v32  ;;  %v566_v31 = vld [vmem:[%s4977_s12 + $0x670] sm:$0xff]  ;;  %v599_v32 = vld [vmem:[%s4977_s12 + $0x778] sm:$0xff] }
  0xc8   : > { %3681 = vmatpush3.msra.mxu1 %v533_v33  ;;  %3649 = vmatprep.subr.mxu0 %v515_v34  ;;  %v581_v33 = vld [vmem:[%s4977_s12 + $0x6e8] sm:$0xff]  ;;  %v614_v34 = vld [vmem:[%s4977_s12 + $0x7f0] sm:$0xff] }
  0xc9   : > { %3682 = vmatprep.subr.mxu1 %v548_v35  ;;  %3650 = vmatpush3.msra.mxu0 %v499_v36  ;;  %v565_v35 = vld [vmem:[%s4977_s12 + $0x668] sm:$0xff]  ;;  %v598_v36 = vld [vmem:[%s4977_s12 + $0x770] sm:$0xff] }
  0xca   : > { %3683 = vmatpush3.msra.mxu1 %v532_v37  ;;  %3651 = vmatprep.subr.mxu0 %v514_v38  ;;  %v580_v37 = vld [vmem:[%s4977_s12 + $0x6e0] sm:$0xff]  ;;  %v613_v38 = vld [vmem:[%s4977_s12 + $0x7e8] sm:$0xff] }
  0xcb   : > { %3684 = vmatprep.subr.mxu1 %v547_v39  ;;  %3652 = vmatpush3.msra.mxu0 %v498_v40  ;;  %v564_v39 = vld [vmem:[%s4977_s12 + $0x660] sm:$0xff]  ;;  %v597_v40 = vld [vmem:[%s4977_s12 + $0x768] sm:$0xff] }
  0xcc   : > { %3685 = vmatpush3.msra.mxu1 %v531_v41  ;;  %3653 = vmatprep.subr.mxu0 %v513_v42  ;;  %v579_v41 = vld [vmem:[%s4977_s12 + $0x6d8] sm:$0xff]  ;;  %v612_v42 = vld [vmem:[%s4977_s12 + $0x7e0] sm:$0xff] }
  0xcd   : > { %3686 = vmatprep.subr.mxu1 %v546_v43  ;;  %3654 = vmatpush3.msra.mxu0 %v497_v44  ;;  %v563_v43 = vld [vmem:[%s4977_s12 + $0x658] sm:$0xff]  ;;  %v596_v44 = vld [vmem:[%s4977_s12 + $0x760] sm:$0xff] }
  0xce   : > { %3687 = vmatpush3.msra.mxu1 %v530_v45  ;;  %3655 = vmatprep.subr.mxu0 %v512_v46  ;;  %v578_v45 = vld [vmem:[%s4977_s12 + $0x6d0] sm:$0xff]  ;;  %v611_v46 = vld [vmem:[%s4977_s12 + $0x7d8] sm:$0xff] }
  0xcf   : > { %3688 = vmatprep.subr.mxu1 %v545_v47  ;;  %3656 = vmatpush3.msra.mxu0 %v496_v48  ;;  %v562_v47 = vld [vmem:[%s4977_s12 + $0x650] sm:$0xff]  ;;  %v595_v48 = vld [vmem:[%s4977_s12 + $0x758] sm:$0xff] }
  0xd0   : > { %3689 = vmatpush3.msra.mxu1 %v529_v49  ;;  %3657 = vmatprep.subr.mxu0 %v511_v50  ;;  %v577_v49 = vld [vmem:[%s4977_s12 + $0x6c8] sm:$0xff]  ;;  %v610_v50 = vld [vmem:[%s4977_s12 + $0x7d0] sm:$0xff] }
  0xd1   : > { %3690 = vmatprep.subr.mxu1 %v544_v51  ;;  %3658 = vmatpush3.msra.mxu0 %v495_v53  ;;  %v561_v51 = vld [vmem:[%s4977_s12 + $0x648] sm:$0xff]  ;;  %v594_v53 = vld [vmem:[%s4977_s12 + $0x750] sm:$0xff] }
  0xd2   : > { %3691 = vmatpush3.msra.mxu1 %v528_v54  ;;  %3659 = vmatprep.subr.mxu0 %v510_v55  ;;  %v576_v54 = vld [vmem:[%s4977_s12 + $0x6c0] sm:$0xff]  ;;  %v609_v55 = vld [vmem:[%s4977_s12 + $0x7c8] sm:$0xff] }
  0xd3   : > { %3692 = vmatprep.subr.mxu1 %v543_v56  ;;  %3660 = vmatpush3.msra.mxu0 %v494_v57  ;;  %v560_v56 = vld [vmem:[%s4977_s12 + $0x640] sm:$0xff]  ;;  %v593_v57 = vld [vmem:[%s4977_s12 + $0x748] sm:$0xff] }
  0xd4   : > { %3693 = vmatpush3.msra.mxu1 %v527_v58  ;;  %3661 = vmatprep.subr.mxu0 %v509_v59  ;;  %v575_v58 = vld [vmem:[%s4977_s12 + $0x6b8] sm:$0xff]  ;;  %v608_v59 = vld [vmem:[%s4977_s12 + $0x7c0] sm:$0xff] }
  0xd5   : > { %3694 = vmatprep.subr.mxu1 %v542_v60  ;;  %3662 = vmatpush3.msra.mxu0 %v493_v61  ;;  %v559_v60 = vld [vmem:[%s4977_s12 + $0x638] sm:$0xff]  ;;  %v592_v61 = vld [vmem:[%s4977_s12 + $0x740] sm:$0xff] }
  0xd6   : > { %3695 = vmatpush3.msra.mxu1 %v526_v62  ;;  %3663 = vmatprep.subr.mxu0 %v508_v63  ;;  %v574_v62 = vld [vmem:[%s4977_s12 + $0x6b0] sm:$0xff]  ;;  %v607_v63 = vld [vmem:[%s4977_s12 + $0x7b8] sm:$0xff] }
  0xd7   : > { %3696 = vmatprep.subr.mxu1 %v541_v0  ;;  %3664 = vmatpush3.msra.mxu0 %v492_v2  ;;  %v558_v0 = vld [vmem:[%s4977_s12 + $0x630] sm:$0xff]  ;;  %v573_v2 = vld [vmem:[%s4977_s12 + $0x6a8] sm:$0xff] }
  0xd8   : > { %3697 = vmatpush3.msra.mxu1 %v525_v3  ;;  %3665 = vmatprep.subr.mxu0 %v507_v4  ;;  %v606_v3 = vld [vmem:[%s4977_s12 + $0x7b0] sm:$0xff]  ;;  %v557_v4 = vld [vmem:[%s4977_s12 + $0x628] sm:$0xff] }
  0xd9   : > { %3698 = vmatprep.subr.mxu1 %v540_v5  ;;  %3666 = vmatpush3.msra.mxu0 %v491_v6  ;;  %v590_v5 = vld [vmem:[%s4977_s12 + $0x730] sm:$0xff]  ;;  %v572_v6 = vld [vmem:[%s4977_s12 + $0x6a0] sm:$0xff] }
  0xda   : > { %3699 = vmatpush3.msra.mxu1 %v524_v7  ;;  %3667 = vmatprep.subr.mxu0 %v506_v9  ;;  %v605_v7 = vld [vmem:[%s4977_s12 + $0x7a8] sm:$0xff]  ;;  %v556_v9 = vld [vmem:[%s4977_s12 + $0x620] sm:$0xff] }
  0xdb   : > { %3700 = vmatprep.subr.mxu1 %v539_v10  ;;  %3668 = vmatpush3.msra.mxu0 %v490_v12  ;;  %v589_v10 = vld [vmem:[%s4977_s12 + $0x728] sm:$0xff]  ;;  %v604_v12 = vld [vmem:[%s4977_s12 + $0x7a0] sm:$0xff] }
  0xdc   : > { %3701 = vmatpush3.msra.mxu1 %v523_v13  ;;  %3669 = vmatprep.subr.mxu0 %v505_v14  ;;  %v555_v13 = vld [vmem:[%s4977_s12 + $0x618] sm:$0xff]  ;;  %v588_v14 = vld [vmem:[%s4977_s12 + $0x720] sm:$0xff] }
  0xdd   : > { %3702 = vmatprep.subr.mxu1 %v538_v15  ;;  %3670 = vmatpush3.msra.mxu0 %v489_v16  ;;  %v1208_v15 = vcombine.high %v349_v8, %v349_v8  ;;  %v570_v16 = vld [vmem:[%s4977_s12 + $0x690] sm:$0xff] }
  0xde   : > { %3703 = vmatpush3.msra.mxu1 %v522_v17  ;;  %3671 = vmatprep.subr.mxu0 %v504_v19  ;;  %v603_v17 = vld [vmem:[%s4977_s12 + $0x798] sm:$0xff]  ;;  %v554_v19 = vld [vmem:[%s4977_s12 + $0x610] sm:$0xff] }
  0xdf   : > { %3704 = vmatprep.subr.mxu1 %v537_v20  ;;  %3672 = vmatpush3.msra.mxu0 %v488_v22  ;;  %v587_v20 = vld [vmem:[%s4977_s12 + $0x718] sm:$0xff]  ;;  %v602_v22 = vld [vmem:[%s4977_s12 + $0x790] sm:$0xff] }
  0xe0   : > { %1761 = vmatprep.mubr.f32.mxu0 %v1206_v21  ;;  %3705 = vmatpush3.msra.mxu1 %v521_v23  ;;  %v569_v21 = vld [vmem:[%s4977_s12 + $0x688] sm:$0xff] }
  0xe1   : > { %1762 = vmatmul.mubr.f32.vlgmr.msra.gmra.mxu0 %v1198_v11  ;;  %3706 = vmatprep.subr.mxu1 %v536_v24  ;;  %v571_v11 = vld [vmem:[%s4977_s12 + $0x698] sm:$0xff]  ;;  %v553_v23 = vld [vmem:[%s4977_s12 + $0x608] sm:$0xff]  ;;  %v586_v24 = vld [vmem:[%s4977_s12 + $0x710] sm:$0xff] }
  0xe2   : > { %3711 = vmatprep.subr.mxu0 %v583_v25  ;;  %3707 = vmatpush3.msra.mxu1 %v520_v27  ;;  %v1222_v25 = vrot.slane %v1208_v15, %v5043_v52  ;;  %v601_v27 = vld [vmem:[%s4977_s12 + $0x788] sm:$0xff] }
  0xe3   : > { %1831 = vmatprep.mubr.f32.mxu1 %v1207_v26  ;;  %3712 = vmatpush3.msra.mxu0 %v567_v28  ;;  %v568_v26 = vld [vmem:[%s4977_s12 + $0x680] sm:$0xff]  ;;  %v350_v15 = vld [vmem:[%s5047_s9 + $0x20] sm:$0xff] }
  0xe4   : > { %1832 = vmatmul.mubr.f32.vlgmr.msra.gmra.mxu1 %v1205_v18  ;;  %3713 = vmatprep.subr.mxu0 %v582_v29  ;;  %v1215_v18 = vrot.slane %v349_v8, %v5043_v52  ;;  %v552_v29 = vld [vmem:[%s4977_s12 + $0x600] sm:$0xff]  ;;  %v655_v8 = vld [vmem:[%s4977_s12 + $0x938] sm:$0xff] }
  0xe5   : > { %3746 = vmatprep.subr.mxu1 %v615_v30  ;;  %3714 = vmatpush3.msra.mxu0 %v566_v31  ;;  %v585_v30 = vld [vmem:[%s4977_s12 + $0x708] sm:$0xff]  ;;  %v600_v31 = vld [vmem:[%s4977_s12 + $0x780] sm:$0xff] }
  0xe6   : > { %3747 = vmatpush3.msra.mxu1 %v599_v32  ;;  %3715 = vmatprep.subr.mxu0 %v581_v33  ;;  %v1223_v28 = vcombine.high %v1215_v18, %v1215_v18  ;;  %v647_v32 = vld [vmem:[%s4977_s12 + $0x8f8] sm:$0xff]  ;;  %v1224_v33 = vcombine.high %v1222_v25, %v1222_v25 }
  0xe7   : > { %3748 = vmatprep.subr.mxu1 %v614_v34  ;;  %3716 = vmatpush3.msra.mxu0 %v565_v35  ;;  %v584_v34 = vld [vmem:[%s4977_s12 + $0x700] sm:$0xff]  ;;  %v631_v35 = vld [vmem:[%s4977_s12 + $0x878] sm:$0xff] }
  0xe8   : > { %3749 = vmatpush3.msra.mxu1 %v598_v36  ;;  %3717 = vmatprep.subr.mxu0 %v580_v37  ;;  %v646_v36 = vld [vmem:[%s4977_s12 + $0x8f0] sm:$0xff]  ;;  %v679_v37 = vld [vmem:[%s4977_s12 + $0x9f8] sm:$0xff] }
  0xe9   : > { %3750 = vmatprep.subr.mxu1 %v613_v38  ;;  %3718 = vmatpush3.msra.mxu0 %v564_v39  ;;  %v630_v38 = vld [vmem:[%s4977_s12 + $0x870] sm:$0xff]  ;;  %v663_v39 = vld [vmem:[%s4977_s12 + $0x978] sm:$0xff] }
  0xea   : > { %3751 = vmatpush3.msra.mxu1 %v597_v40  ;;  %3719 = vmatprep.subr.mxu0 %v579_v41  ;;  %v645_v40 = vld [vmem:[%s4977_s12 + $0x8e8] sm:$0xff]  ;;  %v678_v41 = vld [vmem:[%s4977_s12 + $0x9f0] sm:$0xff] }
  0xeb   : > { %3752 = vmatprep.subr.mxu1 %v612_v42  ;;  %3720 = vmatpush3.msra.mxu0 %v563_v43  ;;  %v629_v42 = vld [vmem:[%s4977_s12 + $0x868] sm:$0xff]  ;;  %v662_v43 = vld [vmem:[%s4977_s12 + $0x970] sm:$0xff] }
  0xec   : > { %3753 = vmatpush3.msra.mxu1 %v596_v44  ;;  %3721 = vmatprep.subr.mxu0 %v578_v45  ;;  %v644_v44 = vld [vmem:[%s4977_s12 + $0x8e0] sm:$0xff]  ;;  %v677_v45 = vld [vmem:[%s4977_s12 + $0x9e8] sm:$0xff] }
  0xed   : > { %3754 = vmatprep.subr.mxu1 %v611_v46  ;;  %3722 = vmatpush3.msra.mxu0 %v562_v47  ;;  %v628_v46 = vld [vmem:[%s4977_s12 + $0x860] sm:$0xff]  ;;  %v661_v47 = vld [vmem:[%s4977_s12 + $0x968] sm:$0xff] }
  0xee   : > { %3755 = vmatpush3.msra.mxu1 %v595_v48  ;;  %3723 = vmatprep.subr.mxu0 %v577_v49  ;;  %v643_v48 = vld [vmem:[%s4977_s12 + $0x8d8] sm:$0xff]  ;;  %v676_v49 = vld [vmem:[%s4977_s12 + $0x9e0] sm:$0xff] }
  0xef   : > { %3756 = vmatprep.subr.mxu1 %v610_v50  ;;  %3724 = vmatpush3.msra.mxu0 %v561_v51  ;;  %v627_v50 = vld [vmem:[%s4977_s12 + $0x858] sm:$0xff]  ;;  %v660_v51 = vld [vmem:[%s4977_s12 + $0x960] sm:$0xff] }
  0xf0   : > { %3757 = vmatpush3.msra.mxu1 %v594_v53  ;;  %3725 = vmatprep.subr.mxu0 %v576_v54  ;;  %v642_v53 = vld [vmem:[%s4977_s12 + $0x8d0] sm:$0xff]  ;;  %v675_v54 = vld [vmem:[%s4977_s12 + $0x9d8] sm:$0xff] }
  0xf1   : > { %3758 = vmatprep.subr.mxu1 %v609_v55  ;;  %3726 = vmatpush3.msra.mxu0 %v560_v56  ;;  %v626_v55 = vld [vmem:[%s4977_s12 + $0x850] sm:$0xff]  ;;  %v659_v56 = vld [vmem:[%s4977_s12 + $0x958] sm:$0xff] }
  0xf2   : > { %3759 = vmatpush3.msra.mxu1 %v593_v57  ;;  %3727 = vmatprep.subr.mxu0 %v575_v58  ;;  %v641_v57 = vld [vmem:[%s4977_s12 + $0x8c8] sm:$0xff]  ;;  %v674_v58 = vld [vmem:[%s4977_s12 + $0x9d0] sm:$0xff] }
  0xf3   : > { %3760 = vmatprep.subr.mxu1 %v608_v59  ;;  %3728 = vmatpush3.msra.mxu0 %v559_v60  ;;  %v625_v59 = vld [vmem:[%s4977_s12 + $0x848] sm:$0xff]  ;;  %v658_v60 = vld [vmem:[%s4977_s12 + $0x950] sm:$0xff] }
  0xf4   : > { %3761 = vmatpush3.msra.mxu1 %v592_v61  ;;  %3729 = vmatprep.subr.mxu0 %v574_v62  ;;  %v640_v61 = vld [vmem:[%s4977_s12 + $0x8c0] sm:$0xff]  ;;  %v673_v62 = vld [vmem:[%s4977_s12 + $0x9c8] sm:$0xff] }
  0xf5   : > { %3762 = vmatprep.subr.mxu1 %v607_v63  ;;  %3730 = vmatpush3.msra.mxu0 %v558_v0  ;;  %v624_v63 = vld [vmem:[%s4977_s12 + $0x840] sm:$0xff]  ;;  %v657_v0 = vld [vmem:[%s4977_s12 + $0x948] sm:$0xff] }
  0xf6   : > { %3763 = vmatpush3.msra.mxu1 %v591_v1  ;;  %3731 = vmatprep.subr.mxu0 %v573_v2  ;;  %v639_v1 = vld [vmem:[%s4977_s12 + $0x8b8] sm:$0xff]  ;;  %v672_v2 = vld [vmem:[%s4977_s12 + $0x9c0] sm:$0xff] }
  0xf7   : > { %3764 = vmatprep.subr.mxu1 %v606_v3  ;;  %3732 = vmatpush3.msra.mxu0 %v557_v4  ;;  %v623_v3 = vld [vmem:[%s4977_s12 + $0x838] sm:$0xff]  ;;  %v656_v4 = vld [vmem:[%s4977_s12 + $0x940] sm:$0xff] }
  0xf8   : > { %3765 = vmatpush3.msra.mxu1 %v590_v5  ;;  %3733 = vmatprep.subr.mxu0 %v572_v6  ;;  %v638_v5 = vld [vmem:[%s4977_s12 + $0x8b0] sm:$0xff]  ;;  %v671_v6 = vld [vmem:[%s4977_s12 + $0x9b8] sm:$0xff] }
  0xf9   : > { %3766 = vmatprep.subr.mxu1 %v605_v7  ;;  %3734 = vmatpush3.msra.mxu0 %v556_v9  ;;  %v622_v7 = vld [vmem:[%s4977_s12 + $0x830] sm:$0xff]  ;;  %v637_v9 = vld [vmem:[%s4977_s12 + $0x8a8] sm:$0xff] }
  0xfa   : > { %3767 = vmatpush3.msra.mxu1 %v589_v10  ;;  %3735 = vmatprep.subr.mxu0 %v571_v11  ;;  %v670_v10 = vld [vmem:[%s4977_s12 + $0x9b0] sm:$0xff]  ;;  %v621_v11 = vld [vmem:[%s4977_s12 + $0x828] sm:$0xff] }
  0xfb   : > { %3768 = vmatprep.subr.mxu1 %v604_v12  ;;  %3736 = vmatpush3.msra.mxu0 %v555_v13  ;;  %v654_v12 = vld [vmem:[%s4977_s12 + $0x930] sm:$0xff]  ;;  %v636_v13 = vld [vmem:[%s4977_s12 + $0x8a0] sm:$0xff] }
  0xfc   : > { %3769 = vmatpush3.msra.mxu1 %v588_v14  ;;  %3737 = vmatprep.subr.mxu0 %v570_v16  ;;  %v669_v14 = vld [vmem:[%s4977_s12 + $0x9a8] sm:$0xff]  ;;  %v620_v16 = vld [vmem:[%s4977_s12 + $0x820] sm:$0xff] }
  0xfd   : > { %3770 = vmatprep.subr.mxu1 %v603_v17  ;;  %3738 = vmatpush3.msra.mxu0 %v554_v19  ;;  %v653_v17 = vld [vmem:[%s4977_s12 + $0x928] sm:$0xff]  ;;  %v668_v19 = vld [vmem:[%s4977_s12 + $0x9a0] sm:$0xff] }
  0xfe   : > { %3771 = vmatpush3.msra.mxu1 %v587_v20  ;;  %3739 = vmatprep.subr.mxu0 %v569_v21  ;;  %v619_v20 = vld [vmem:[%s4977_s12 + $0x818] sm:$0xff]  ;;  %v652_v21 = vld [vmem:[%s4977_s12 + $0x920] sm:$0xff] }
  0xff   : > { %3772 = vmatprep.subr.mxu1 %v602_v22  ;;  %3740 = vmatpush3.msra.mxu0 %v553_v23  ;;  %v1225_v22 = vcombine.high %v350_v15, %v350_v15  ;;  %v634_v23 = vld [vmem:[%s4977_s12 + $0x890] sm:$0xff] }
 0x100   : > { %3773 = vmatpush3.msra.mxu1 %v586_v24  ;;  %3741 = vmatprep.subr.mxu0 %v568_v26  ;;  %v667_v24 = vld [vmem:[%s4977_s12 + $0x998] sm:$0xff]  ;;  %v618_v26 = vld [vmem:[%s4977_s12 + $0x810] sm:$0xff] }
 0x101   : > { %3774 = vmatprep.subr.mxu1 %v601_v27  ;;  %3742 = vmatpush3.msra.mxu0 %v552_v29  ;;  %v651_v27 = vld [vmem:[%s4977_s12 + $0x918] sm:$0xff]  ;;  %v666_v29 = vld [vmem:[%s4977_s12 + $0x990] sm:$0xff] }
 0x102   : > { %1901 = vmatprep.mubr.f32.mxu0 %v1223_v28  ;;  %3775 = vmatpush3.msra.mxu1 %v585_v30  ;;  %v633_v28 = vld [vmem:[%s4977_s12 + $0x888] sm:$0xff] }
 0x103   : > { %1902 = vmatmul.mubr.f32.vlgmr.msra.gmra.mxu0 %v1215_v18  ;;  %3776 = vmatprep.subr.mxu1 %v600_v31  ;;  %v635_v18 = vld [vmem:[%s4977_s12 + $0x898] sm:$0xff]  ;;  %v617_v30 = vld [vmem:[%s4977_s12 + $0x808] sm:$0xff]  ;;  %v650_v31 = vld [vmem:[%s4977_s12 + $0x910] sm:$0xff] }
 0x104   : > { %3781 = vmatprep.subr.mxu0 %v647_v32  ;;  %3777 = vmatpush3.msra.mxu1 %v584_v34  ;;  %v1239_v32 = vrot.slane %v1225_v22, %v5043_v52  ;;  %v665_v34 = vld [vmem:[%s4977_s12 + $0x988] sm:$0xff]  ;;  %v351_v22 = vld [vmem:[%s5047_s9 + $0x28] sm:$0xff] }
 0x105   : > { %1971 = vmatprep.mubr.f32.mxu1 %v1224_v33  ;;  %3782 = vmatpush3.msra.mxu0 %v631_v35  ;;  %v632_v33 = vld [vmem:[%s4977_s12 + $0x880] sm:$0xff] }
 0x106   : > { %1972 = vmatmul.mubr.f32.vlgmr.msra.gmra.mxu1 %v1222_v25  ;;  %3783 = vmatprep.subr.mxu0 %v646_v36  ;;  %v1232_v25 = vrot.slane %v350_v15, %v5043_v52  ;;  %v616_v36 = vld [vmem:[%s4977_s12 + $0x800] sm:$0xff]  ;;  %v719_v15 = vld [vmem:[%s4977_s12 + $0xb38] sm:$0xff] }
 0x107   : > { %3816 = vmatprep.subr.mxu1 %v679_v37  ;;  %3784 = vmatpush3.msra.mxu0 %v630_v38  ;;  %v649_v37 = vld [vmem:[%s4977_s12 + $0x908] sm:$0xff]  ;;  %v664_v38 = vld [vmem:[%s4977_s12 + $0x980] sm:$0xff] }
 0x108   : > { %3817 = vmatpush3.msra.mxu1 %v663_v39  ;;  %3785 = vmatprep.subr.mxu0 %v645_v40  ;;  %v1240_v35 = vcombine.high %v1232_v25, %v1232_v25  ;;  %v711_v39 = vld [vmem:[%s4977_s12 + $0xaf8] sm:$0xff]  ;;  %v1241_v40 = vcombine.high %v1239_v32, %v1239_v32 }
 0x109   : > { %3818 = vmatprep.subr.mxu1 %v678_v41  ;;  %3786 = vmatpush3.msra.mxu0 %v629_v42  ;;  %v648_v41 = vld [vmem:[%s4977_s12 + $0x900] sm:$0xff]  ;;  %v695_v42 = vld [vmem:[%s4977_s12 + $0xa78] sm:$0xff] }
 0x10a   : > { %3819 = vmatpush3.msra.mxu1 %v662_v43  ;;  %3787 = vmatprep.subr.mxu0 %v644_v44  ;;  %v710_v43 = vld [vmem:[%s4977_s12 + $0xaf0] sm:$0xff]  ;;  %v743_v44 = vld [vmem:[%s4977_s12 + $0xbf8] sm:$0xff] }
 0x10b   : > { %3820 = vmatprep.subr.mxu1 %v677_v45  ;;  %3788 = vmatpush3.msra.mxu0 %v628_v46  ;;  %v694_v45 = vld [vmem:[%s4977_s12 + $0xa70] sm:$0xff]  ;;  %v727_v46 = vld [vmem:[%s4977_s12 + $0xb78] sm:$0xff] }
 0x10c   : > { %3821 = vmatpush3.msra.mxu1 %v661_v47  ;;  %3789 = vmatprep.subr.mxu0 %v643_v48  ;;  %v709_v47 = vld [vmem:[%s4977_s12 + $0xae8] sm:$0xff]  ;;  %v742_v48 = vld [vmem:[%s4977_s12 + $0xbf0] sm:$0xff] }
 0x10d   : > { %3822 = vmatprep.subr.mxu1 %v676_v49  ;;  %3790 = vmatpush3.msra.mxu0 %v627_v50  ;;  %v693_v49 = vld [vmem:[%s4977_s12 + $0xa68] sm:$0xff]  ;;  %v726_v50 = vld [vmem:[%s4977_s12 + $0xb70] sm:$0xff] }
 0x10e   : > { %3823 = vmatpush3.msra.mxu1 %v660_v51  ;;  %3791 = vmatprep.subr.mxu0 %v642_v53  ;;  %v708_v51 = vld [vmem:[%s4977_s12 + $0xae0] sm:$0xff]  ;;  %v741_v53 = vld [vmem:[%s4977_s12 + $0xbe8] sm:$0xff] }
 0x10f   : > { %3824 = vmatprep.subr.mxu1 %v675_v54  ;;  %3792 = vmatpush3.msra.mxu0 %v626_v55  ;;  %v692_v54 = vld [vmem:[%s4977_s12 + $0xa60] sm:$0xff]  ;;  %v725_v55 = vld [vmem:[%s4977_s12 + $0xb68] sm:$0xff] }
 0x110   : > { %3825 = vmatpush3.msra.mxu1 %v659_v56  ;;  %3793 = vmatprep.subr.mxu0 %v641_v57  ;;  %v707_v56 = vld [vmem:[%s4977_s12 + $0xad8] sm:$0xff]  ;;  %v740_v57 = vld [vmem:[%s4977_s12 + $0xbe0] sm:$0xff] }
 0x111   : > { %3826 = vmatprep.subr.mxu1 %v674_v58  ;;  %3794 = vmatpush3.msra.mxu0 %v625_v59  ;;  %v691_v58 = vld [vmem:[%s4977_s12 + $0xa58] sm:$0xff]  ;;  %v724_v59 = vld [vmem:[%s4977_s12 + $0xb60] sm:$0xff] }
 0x112   : > { %3827 = vmatpush3.msra.mxu1 %v658_v60  ;;  %3795 = vmatprep.subr.mxu0 %v640_v61  ;;  %v706_v60 = vld [vmem:[%s4977_s12 + $0xad0] sm:$0xff]  ;;  %v739_v61 = vld [vmem:[%s4977_s12 + $0xbd8] sm:$0xff] }
 0x113   : > { %3828 = vmatprep.subr.mxu1 %v673_v62  ;;  %3796 = vmatpush3.msra.mxu0 %v624_v63  ;;  %v690_v62 = vld [vmem:[%s4977_s12 + $0xa50] sm:$0xff]  ;;  %v723_v63 = vld [vmem:[%s4977_s12 + $0xb58] sm:$0xff] }
 0x114   : > { %3829 = vmatpush3.msra.mxu1 %v657_v0  ;;  %3797 = vmatprep.subr.mxu0 %v639_v1  ;;  %v705_v0 = vld [vmem:[%s4977_s12 + $0xac8] sm:$0xff]  ;;  %v738_v1 = vld [vmem:[%s4977_s12 + $0xbd0] sm:$0xff] }
 0x115   : > { %3830 = vmatprep.subr.mxu1 %v672_v2  ;;  %3798 = vmatpush3.msra.mxu0 %v623_v3  ;;  %v689_v2 = vld [vmem:[%s4977_s12 + $0xa48] sm:$0xff]  ;;  %v722_v3 = vld [vmem:[%s4977_s12 + $0xb50] sm:$0xff] }
 0x116   : > { %3831 = vmatpush3.msra.mxu1 %v656_v4  ;;  %3799 = vmatprep.subr.mxu0 %v638_v5  ;;  %v704_v4 = vld [vmem:[%s4977_s12 + $0xac0] sm:$0xff]  ;;  %v737_v5 = vld [vmem:[%s4977_s12 + $0xbc8] sm:$0xff] }
 0x117   : > { %3832 = vmatprep.subr.mxu1 %v671_v6  ;;  %3800 = vmatpush3.msra.mxu0 %v622_v7  ;;  %v688_v6 = vld [vmem:[%s4977_s12 + $0xa40] sm:$0xff]  ;;  %v721_v7 = vld [vmem:[%s4977_s12 + $0xb48] sm:$0xff] }
 0x118   : > { %3833 = vmatpush3.msra.mxu1 %v655_v8  ;;  %3801 = vmatprep.subr.mxu0 %v637_v9  ;;  %v703_v8 = vld [vmem:[%s4977_s12 + $0xab8] sm:$0xff]  ;;  %v736_v9 = vld [vmem:[%s4977_s12 + $0xbc0] sm:$0xff] }
 0x119   : > { %3834 = vmatprep.subr.mxu1 %v670_v10  ;;  %3802 = vmatpush3.msra.mxu0 %v621_v11  ;;  %v687_v10 = vld [vmem:[%s4977_s12 + $0xa38] sm:$0xff]  ;;  %v720_v11 = vld [vmem:[%s4977_s12 + $0xb40] sm:$0xff] }
 0x11a   : > { %3835 = vmatpush3.msra.mxu1 %v654_v12  ;;  %3803 = vmatprep.subr.mxu0 %v636_v13  ;;  %v702_v12 = vld [vmem:[%s4977_s12 + $0xab0] sm:$0xff]  ;;  %v735_v13 = vld [vmem:[%s4977_s12 + $0xbb8] sm:$0xff] }
 0x11b   : > { %3836 = vmatprep.subr.mxu1 %v669_v14  ;;  %3804 = vmatpush3.msra.mxu0 %v620_v16  ;;  %v686_v14 = vld [vmem:[%s4977_s12 + $0xa30] sm:$0xff]  ;;  %v701_v16 = vld [vmem:[%s4977_s12 + $0xaa8] sm:$0xff] }
 0x11c   : > { %3837 = vmatpush3.msra.mxu1 %v653_v17  ;;  %3805 = vmatprep.subr.mxu0 %v635_v18  ;;  %v734_v17 = vld [vmem:[%s4977_s12 + $0xbb0] sm:$0xff]  ;;  %v685_v18 = vld [vmem:[%s4977_s12 + $0xa28] sm:$0xff] }
 0x11d   : > { %3838 = vmatprep.subr.mxu1 %v668_v19  ;;  %3806 = vmatpush3.msra.mxu0 %v619_v20  ;;  %v718_v19 = vld [vmem:[%s4977_s12 + $0xb30] sm:$0xff]  ;;  %v700_v20 = vld [vmem:[%s4977_s12 + $0xaa0] sm:$0xff] }
 0x11e   : > { %3839 = vmatpush3.msra.mxu1 %v652_v21  ;;  %3807 = vmatprep.subr.mxu0 %v634_v23  ;;  %v733_v21 = vld [vmem:[%s4977_s12 + $0xba8] sm:$0xff]  ;;  %v684_v23 = vld [vmem:[%s4977_s12 + $0xa20] sm:$0xff] }
 0x11f   : > { %3840 = vmatprep.subr.mxu1 %v667_v24  ;;  %3808 = vmatpush3.msra.mxu0 %v618_v26  ;;  %v717_v24 = vld [vmem:[%s4977_s12 + $0xb28] sm:$0xff]  ;;  %v732_v26 = vld [vmem:[%s4977_s12 + $0xba0] sm:$0xff] }
 0x120   : > { %3841 = vmatpush3.msra.mxu1 %v651_v27  ;;  %3809 = vmatprep.subr.mxu0 %v633_v28  ;;  %v683_v27 = vld [vmem:[%s4977_s12 + $0xa18] sm:$0xff]  ;;  %v716_v28 = vld [vmem:[%s4977_s12 + $0xb20] sm:$0xff] }
 0x121   : > { %3842 = vmatprep.subr.mxu1 %v666_v29  ;;  %3810 = vmatpush3.msra.mxu0 %v617_v30  ;;  %v1242_v29 = vcombine.high %v351_v22, %v351_v22  ;;  %v698_v30 = vld [vmem:[%s4977_s12 + $0xa90] sm:$0xff] }
 0x122   : > { %3843 = vmatpush3.msra.mxu1 %v650_v31  ;;  %3811 = vmatprep.subr.mxu0 %v632_v33  ;;  %v731_v31 = vld [vmem:[%s4977_s12 + $0xb98] sm:$0xff]  ;;  %v682_v33 = vld [vmem:[%s4977_s12 + $0xa10] sm:$0xff] }
 0x123   : > { %3844 = vmatprep.subr.mxu1 %v665_v34  ;;  %3812 = vmatpush3.msra.mxu0 %v616_v36  ;;  %v715_v34 = vld [vmem:[%s4977_s12 + $0xb18] sm:$0xff]  ;;  %v730_v36 = vld [vmem:[%s4977_s12 + $0xb90] sm:$0xff] }
 0x124   : > { %2041 = vmatprep.mubr.f32.mxu0 %v1240_v35  ;;  %3845 = vmatpush3.msra.mxu1 %v649_v37  ;;  %v697_v35 = vld [vmem:[%s4977_s12 + $0xa88] sm:$0xff] }
 0x125   : > { %2042 = vmatmul.mubr.f32.vlgmr.msra.gmra.mxu0 %v1232_v25  ;;  %3846 = vmatprep.subr.mxu1 %v664_v38  ;;  %v699_v25 = vld [vmem:[%s4977_s12 + $0xa98] sm:$0xff]  ;;  %v681_v37 = vld [vmem:[%s4977_s12 + $0xa08] sm:$0xff]  ;;  %v714_v38 = vld [vmem:[%s4977_s12 + $0xb10] sm:$0xff] }
 0x126   : > { %3851 = vmatprep.subr.mxu0 %v711_v39  ;;  %3847 = vmatpush3.msra.mxu1 %v648_v41  ;;  %v1256_v39 = vrot.slane %v1242_v29, %v5043_v52  ;;  %v729_v41 = vld [vmem:[%s4977_s12 + $0xb88] sm:$0xff]  ;;  %v352_v29 = vld [vmem:[%s5047_s9 + $0x30] sm:$0xff] }
 0x127   : > { %2111 = vmatprep.mubr.f32.mxu1 %v1241_v40  ;;  %3852 = vmatpush3.msra.mxu0 %v695_v42  ;;  %v696_v40 = vld [vmem:[%s4977_s12 + $0xa80] sm:$0xff] }
 0x128   : > { %2112 = vmatmul.mubr.f32.vlgmr.msra.gmra.mxu1 %v1239_v32  ;;  %3853 = vmatprep.subr.mxu0 %v710_v43  ;;  %v1249_v32 = vrot.slane %v351_v22, %v5043_v52  ;;  %v680_v43 = vld [vmem:[%s4977_s12 + $0xa00] sm:$0xff]  ;;  %v783_v22 = vld [vmem:[%s4977_s12 + $0xd38] sm:$0xff] }
 0x129   : > { %3886 = vmatprep.subr.mxu1 %v743_v44  ;;  %3854 = vmatpush3.msra.mxu0 %v694_v45  ;;  %v713_v44 = vld [vmem:[%s4977_s12 + $0xb08] sm:$0xff]  ;;  %v728_v45 = vld [vmem:[%s4977_s12 + $0xb80] sm:$0xff] }
 0x12a   : > { %3887 = vmatpush3.msra.mxu1 %v727_v46  ;;  %3855 = vmatprep.subr.mxu0 %v709_v47  ;;  %v1257_v42 = vcombine.high %v1249_v32, %v1249_v32  ;;  %v775_v46 = vld [vmem:[%s4977_s12 + $0xcf8] sm:$0xff]  ;;  %v1258_v47 = vcombine.high %v1256_v39, %v1256_v39 }
 0x12b   : > { %3888 = vmatprep.subr.mxu1 %v742_v48  ;;  %3856 = vmatpush3.msra.mxu0 %v693_v49  ;;  %v712_v48 = vld [vmem:[%s4977_s12 + $0xb00] sm:$0xff]  ;;  %v759_v49 = vld [vmem:[%s4977_s12 + $0xc78] sm:$0xff] }
 0x12c   : > { %3889 = vmatpush3.msra.mxu1 %v726_v50  ;;  %3857 = vmatprep.subr.mxu0 %v708_v51  ;;  %v774_v50 = vld [vmem:[%s4977_s12 + $0xcf0] sm:$0xff]  ;;  %v807_v51 = vld [vmem:[%s4977_s12 + $0xdf8] sm:$0xff] }
 0x12d   : > { %3890 = vmatprep.subr.mxu1 %v741_v53  ;;  %3858 = vmatpush3.msra.mxu0 %v692_v54  ;;  %v758_v53 = vld [vmem:[%s4977_s12 + $0xc70] sm:$0xff]  ;;  %v791_v54 = vld [vmem:[%s4977_s12 + $0xd78] sm:$0xff] }
 0x12e   : > { %3891 = vmatpush3.msra.mxu1 %v725_v55  ;;  %3859 = vmatprep.subr.mxu0 %v707_v56  ;;  %v773_v55 = vld [vmem:[%s4977_s12 + $0xce8] sm:$0xff]  ;;  %v806_v56 = vld [vmem:[%s4977_s12 + $0xdf0] sm:$0xff] }
 0x12f   : > { %3892 = vmatprep.subr.mxu1 %v740_v57  ;;  %3860 = vmatpush3.msra.mxu0 %v691_v58  ;;  %v757_v57 = vld [vmem:[%s4977_s12 + $0xc68] sm:$0xff]  ;;  %v790_v58 = vld [vmem:[%s4977_s12 + $0xd70] sm:$0xff] }
 0x130   : > { %3893 = vmatpush3.msra.mxu1 %v724_v59  ;;  %3861 = vmatprep.subr.mxu0 %v706_v60  ;;  %v772_v59 = vld [vmem:[%s4977_s12 + $0xce0] sm:$0xff]  ;;  %v805_v60 = vld [vmem:[%s4977_s12 + $0xde8] sm:$0xff] }
 0x131   : > { %3894 = vmatprep.subr.mxu1 %v739_v61  ;;  %3862 = vmatpush3.msra.mxu0 %v690_v62  ;;  %v756_v61 = vld [vmem:[%s4977_s12 + $0xc60] sm:$0xff]  ;;  %v789_v62 = vld [vmem:[%s4977_s12 + $0xd68] sm:$0xff] }
 0x132   : > { %3895 = vmatpush3.msra.mxu1 %v723_v63  ;;  %3863 = vmatprep.subr.mxu0 %v705_v0  ;;  %v771_v63 = vld [vmem:[%s4977_s12 + $0xcd8] sm:$0xff]  ;;  %v804_v0 = vld [vmem:[%s4977_s12 + $0xde0] sm:$0xff] }
 0x133   : > { %3896 = vmatprep.subr.mxu1 %v738_v1  ;;  %3864 = vmatpush3.msra.mxu0 %v689_v2  ;;  %v755_v1 = vld [vmem:[%s4977_s12 + $0xc58] sm:$0xff]  ;;  %v788_v2 = vld [vmem:[%s4977_s12 + $0xd60] sm:$0xff] }
 0x134   : > { %3897 = vmatpush3.msra.mxu1 %v722_v3  ;;  %3865 = vmatprep.subr.mxu0 %v704_v4  ;;  %v770_v3 = vld [vmem:[%s4977_s12 + $0xcd0] sm:$0xff]  ;;  %v803_v4 = vld [vmem:[%s4977_s12 + $0xdd8] sm:$0xff] }
 0x135   : > { %3898 = vmatprep.subr.mxu1 %v737_v5  ;;  %3866 = vmatpush3.msra.mxu0 %v688_v6  ;;  %v754_v5 = vld [vmem:[%s4977_s12 + $0xc50] sm:$0xff]  ;;  %v787_v6 = vld [vmem:[%s4977_s12 + $0xd58] sm:$0xff] }
 0x136   : > { %3899 = vmatpush3.msra.mxu1 %v721_v7  ;;  %3867 = vmatprep.subr.mxu0 %v703_v8  ;;  %v769_v7 = vld [vmem:[%s4977_s12 + $0xcc8] sm:$0xff]  ;;  %v802_v8 = vld [vmem:[%s4977_s12 + $0xdd0] sm:$0xff] }
 0x137   : > { %3900 = vmatprep.subr.mxu1 %v736_v9  ;;  %3868 = vmatpush3.msra.mxu0 %v687_v10  ;;  %v753_v9 = vld [vmem:[%s4977_s12 + $0xc48] sm:$0xff]  ;;  %v786_v10 = vld [vmem:[%s4977_s12 + $0xd50] sm:$0xff] }
 0x138   : > { %3901 = vmatpush3.msra.mxu1 %v720_v11  ;;  %3869 = vmatprep.subr.mxu0 %v702_v12  ;;  %v768_v11 = vld [vmem:[%s4977_s12 + $0xcc0] sm:$0xff]  ;;  %v801_v12 = vld [vmem:[%s4977_s12 + $0xdc8] sm:$0xff] }
 0x139   : > { %3902 = vmatprep.subr.mxu1 %v735_v13  ;;  %3870 = vmatpush3.msra.mxu0 %v686_v14  ;;  %v752_v13 = vld [vmem:[%s4977_s12 + $0xc40] sm:$0xff]  ;;  %v785_v14 = vld [vmem:[%s4977_s12 + $0xd48] sm:$0xff] }
 0x13a   : > { %3903 = vmatpush3.msra.mxu1 %v719_v15  ;;  %3871 = vmatprep.subr.mxu0 %v701_v16  ;;  %v767_v15 = vld [vmem:[%s4977_s12 + $0xcb8] sm:$0xff]  ;;  %v800_v16 = vld [vmem:[%s4977_s12 + $0xdc0] sm:$0xff] }
 0x13b   : > { %3904 = vmatprep.subr.mxu1 %v734_v17  ;;  %3872 = vmatpush3.msra.mxu0 %v685_v18  ;;  %v751_v17 = vld [vmem:[%s4977_s12 + $0xc38] sm:$0xff]  ;;  %v784_v18 = vld [vmem:[%s4977_s12 + $0xd40] sm:$0xff] }
 0x13c   : > { %3905 = vmatpush3.msra.mxu1 %v718_v19  ;;  %3873 = vmatprep.subr.mxu0 %v700_v20  ;;  %v766_v19 = vld [vmem:[%s4977_s12 + $0xcb0] sm:$0xff]  ;;  %v799_v20 = vld [vmem:[%s4977_s12 + $0xdb8] sm:$0xff] }
 0x13d   : > { %3906 = vmatprep.subr.mxu1 %v733_v21  ;;  %3874 = vmatpush3.msra.mxu0 %v684_v23  ;;  %v750_v21 = vld [vmem:[%s4977_s12 + $0xc30] sm:$0xff]  ;;  %v765_v23 = vld [vmem:[%s4977_s12 + $0xca8] sm:$0xff] }
 0x13e   : > { %3907 = vmatpush3.msra.mxu1 %v717_v24  ;;  %3875 = vmatprep.subr.mxu0 %v699_v25  ;;  %v798_v24 = vld [vmem:[%s4977_s12 + $0xdb0] sm:$0xff]  ;;  %v749_v25 = vld [vmem:[%s4977_s12 + $0xc28] sm:$0xff] }
 0x13f   : > { %3908 = vmatprep.subr.mxu1 %v732_v26  ;;  %3876 = vmatpush3.msra.mxu0 %v683_v27  ;;  %v782_v26 = vld [vmem:[%s4977_s12 + $0xd30] sm:$0xff]  ;;  %v764_v27 = vld [vmem:[%s4977_s12 + $0xca0] sm:$0xff] }
 0x140   : > { %3909 = vmatpush3.msra.mxu1 %v716_v28  ;;  %3877 = vmatprep.subr.mxu0 %v698_v30  ;;  %v797_v28 = vld [vmem:[%s4977_s12 + $0xda8] sm:$0xff]  ;;  %v748_v30 = vld [vmem:[%s4977_s12 + $0xc20] sm:$0xff] }
 0x141   : > { %3910 = vmatprep.subr.mxu1 %v731_v31  ;;  %3878 = vmatpush3.msra.mxu0 %v682_v33  ;;  %v781_v31 = vld [vmem:[%s4977_s12 + $0xd28] sm:$0xff]  ;;  %v796_v33 = vld [vmem:[%s4977_s12 + $0xda0] sm:$0xff] }
 0x142   : > { %3911 = vmatpush3.msra.mxu1 %v715_v34  ;;  %3879 = vmatprep.subr.mxu0 %v697_v35  ;;  %v747_v34 = vld [vmem:[%s4977_s12 + $0xc18] sm:$0xff]  ;;  %v780_v35 = vld [vmem:[%s4977_s12 + $0xd20] sm:$0xff] }
 0x143   : > { %3912 = vmatprep.subr.mxu1 %v730_v36  ;;  %3880 = vmatpush3.msra.mxu0 %v681_v37  ;;  %v1259_v36 = vcombine.high %v352_v29, %v352_v29  ;;  %v762_v37 = vld [vmem:[%s4977_s12 + $0xc90] sm:$0xff] }
 0x144   : > { %3913 = vmatpush3.msra.mxu1 %v714_v38  ;;  %3881 = vmatprep.subr.mxu0 %v696_v40  ;;  %v795_v38 = vld [vmem:[%s4977_s12 + $0xd98] sm:$0xff]  ;;  %v746_v40 = vld [vmem:[%s4977_s12 + $0xc10] sm:$0xff] }
 0x145   : > { %3914 = vmatprep.subr.mxu1 %v729_v41  ;;  %3882 = vmatpush3.msra.mxu0 %v680_v43  ;;  %v779_v41 = vld [vmem:[%s4977_s12 + $0xd18] sm:$0xff]  ;;  %v794_v43 = vld [vmem:[%s4977_s12 + $0xd90] sm:$0xff] }
 0x146   : > { %2181 = vmatprep.mubr.f32.mxu0 %v1257_v42  ;;  %3915 = vmatpush3.msra.mxu1 %v713_v44  ;;  %v761_v42 = vld [vmem:[%s4977_s12 + $0xc88] sm:$0xff] }
 0x147   : > { %2182 = vmatmul.mubr.f32.vlgmr.msra.gmra.mxu0 %v1249_v32  ;;  %3916 = vmatprep.subr.mxu1 %v728_v45  ;;  %v763_v32 = vld [vmem:[%s4977_s12 + $0xc98] sm:$0xff]  ;;  %v745_v44 = vld [vmem:[%s4977_s12 + $0xc08] sm:$0xff]  ;;  %v778_v45 = vld [vmem:[%s4977_s12 + $0xd10] sm:$0xff] }
 0x148   : > { %3921 = vmatprep.subr.mxu0 %v775_v46  ;;  %3917 = vmatpush3.msra.mxu1 %v712_v48  ;;  %v1273_v46 = vrot.slane %v1259_v36, %v5043_v52  ;;  %v793_v48 = vld [vmem:[%s4977_s12 + $0xd88] sm:$0xff] }
 0x149   : > { %2251 = vmatprep.mubr.f32.mxu1 %v1258_v47  ;;  %3922 = vmatpush3.msra.mxu0 %v759_v49  ;;  %v760_v47 = vld [vmem:[%s4977_s12 + $0xc80] sm:$0xff] }
 0x14a   : > { %2252 = vmatmul.mubr.f32.vlgmr.msra.gmra.mxu1 %v1256_v39  ;;  %3923 = vmatprep.subr.mxu0 %v774_v50  ;;  %v1266_v39 = vrot.slane %v352_v29, %v5043_v52  ;;  %v744_v50 = vld [vmem:[%s4977_s12 + $0xc00] sm:$0xff]  ;;  %v847_v29 = vld [vmem:[%s4977_s12 + $0xf38] sm:$0xff] }
 0x14b   : > { %3956 = vmatprep.subr.mxu1 %v807_v51  ;;  %3924 = vmatpush3.msra.mxu0 %v758_v53  ;;  %v777_v51 = vld [vmem:[%s4977_s12 + $0xd08] sm:$0xff]  ;;  %v792_v53 = vld [vmem:[%s4977_s12 + $0xd80] sm:$0xff] }
 0x14c   : > { %3957 = vmatpush3.msra.mxu1 %v791_v54  ;;  %3925 = vmatprep.subr.mxu0 %v773_v55  ;;  %v1274_v49 = vcombine.high %v1266_v39, %v1266_v39  ;;  %v839_v54 = vld [vmem:[%s4977_s12 + $0xef8] sm:$0xff]  ;;  %v1275_v55 = vcombine.high %v1273_v46, %v1273_v46  ;;  %v353_v36 = vld [vmem:[%s5047_s9 + $0x38] sm:$0xff] }
 0x14d   : > { %3958 = vmatprep.subr.mxu1 %v806_v56  ;;  %3926 = vmatpush3.msra.mxu0 %v757_v57  ;;  %v776_v56 = vld [vmem:[%s4977_s12 + $0xd00] sm:$0xff]  ;;  %v823_v57 = vld [vmem:[%s4977_s12 + $0xe78] sm:$0xff] }
 0x14e   : > { %3959 = vmatpush3.msra.mxu1 %v790_v58  ;;  %3927 = vmatprep.subr.mxu0 %v772_v59  ;;  %v838_v58 = vld [vmem:[%s4977_s12 + $0xef0] sm:$0xff]  ;;  %v871_v59 = vld [vmem:[%s4977_s12 + $0xff8] sm:$0xff] }
 0x14f   : > { %3960 = vmatprep.subr.mxu1 %v805_v60  ;;  %3928 = vmatpush3.msra.mxu0 %v756_v61  ;;  %v822_v60 = vld [vmem:[%s4977_s12 + $0xe70] sm:$0xff]  ;;  %v855_v61 = vld [vmem:[%s4977_s12 + $0xf78] sm:$0xff] }
 0x150   : > { %3961 = vmatpush3.msra.mxu1 %v789_v62  ;;  %3929 = vmatprep.subr.mxu0 %v771_v63  ;;  %v837_v62 = vld [vmem:[%s4977_s12 + $0xee8] sm:$0xff]  ;;  %v870_v63 = vld [vmem:[%s4977_s12 + $0xff0] sm:$0xff] }
 0x151   : > { %3962 = vmatprep.subr.mxu1 %v804_v0  ;;  %3930 = vmatpush3.msra.mxu0 %v755_v1  ;;  %v821_v0 = vld [vmem:[%s4977_s12 + $0xe68] sm:$0xff]  ;;  %v854_v1 = vld [vmem:[%s4977_s12 + $0xf70] sm:$0xff] }
 0x152   : > { %3963 = vmatpush3.msra.mxu1 %v788_v2  ;;  %3931 = vmatprep.subr.mxu0 %v770_v3  ;;  %v836_v2 = vld [vmem:[%s4977_s12 + $0xee0] sm:$0xff]  ;;  %v869_v3 = vld [vmem:[%s4977_s12 + $0xfe8] sm:$0xff] }
 0x153   : > { %3964 = vmatprep.subr.mxu1 %v803_v4  ;;  %3932 = vmatpush3.msra.mxu0 %v754_v5  ;;  %v820_v4 = vld [vmem:[%s4977_s12 + $0xe60] sm:$0xff]  ;;  %v853_v5 = vld [vmem:[%s4977_s12 + $0xf68] sm:$0xff] }
 0x154   : > { %3965 = vmatpush3.msra.mxu1 %v787_v6  ;;  %3933 = vmatprep.subr.mxu0 %v769_v7  ;;  %v835_v6 = vld [vmem:[%s4977_s12 + $0xed8] sm:$0xff]  ;;  %v868_v7 = vld [vmem:[%s4977_s12 + $0xfe0] sm:$0xff] }
 0x155   : > { %3966 = vmatprep.subr.mxu1 %v802_v8  ;;  %3934 = vmatpush3.msra.mxu0 %v753_v9  ;;  %v819_v8 = vld [vmem:[%s4977_s12 + $0xe58] sm:$0xff]  ;;  %v852_v9 = vld [vmem:[%s4977_s12 + $0xf60] sm:$0xff] }
 0x156   : > { %3967 = vmatpush3.msra.mxu1 %v786_v10  ;;  %3935 = vmatprep.subr.mxu0 %v768_v11  ;;  %v834_v10 = vld [vmem:[%s4977_s12 + $0xed0] sm:$0xff]  ;;  %v867_v11 = vld [vmem:[%s4977_s12 + $0xfd8] sm:$0xff] }
 0x157   : > { %3968 = vmatprep.subr.mxu1 %v801_v12  ;;  %3936 = vmatpush3.msra.mxu0 %v752_v13  ;;  %v818_v12 = vld [vmem:[%s4977_s12 + $0xe50] sm:$0xff]  ;;  %v851_v13 = vld [vmem:[%s4977_s12 + $0xf58] sm:$0xff] }
 0x158   : > { %3969 = vmatpush3.msra.mxu1 %v785_v14  ;;  %3937 = vmatprep.subr.mxu0 %v767_v15  ;;  %v833_v14 = vld [vmem:[%s4977_s12 + $0xec8] sm:$0xff]  ;;  %v866_v15 = vld [vmem:[%s4977_s12 + $0xfd0] sm:$0xff] }
 0x159   : > { %3970 = vmatprep.subr.mxu1 %v800_v16  ;;  %3938 = vmatpush3.msra.mxu0 %v751_v17  ;;  %v817_v16 = vld [vmem:[%s4977_s12 + $0xe48] sm:$0xff]  ;;  %v850_v17 = vld [vmem:[%s4977_s12 + $0xf50] sm:$0xff] }
 0x15a   : > { %3971 = vmatpush3.msra.mxu1 %v784_v18  ;;  %3939 = vmatprep.subr.mxu0 %v766_v19  ;;  %v832_v18 = vld [vmem:[%s4977_s12 + $0xec0] sm:$0xff]  ;;  %v865_v19 = vld [vmem:[%s4977_s12 + $0xfc8] sm:$0xff] }
 0x15b   : > { %3972 = vmatprep.subr.mxu1 %v799_v20  ;;  %3940 = vmatpush3.msra.mxu0 %v750_v21  ;;  %v816_v20 = vld [vmem:[%s4977_s12 + $0xe40] sm:$0xff]  ;;  %v849_v21 = vld [vmem:[%s4977_s12 + $0xf48] sm:$0xff] }
 0x15c   : > { %3973 = vmatpush3.msra.mxu1 %v783_v22  ;;  %3941 = vmatprep.subr.mxu0 %v765_v23  ;;  %v831_v22 = vld [vmem:[%s4977_s12 + $0xeb8] sm:$0xff]  ;;  %v864_v23 = vld [vmem:[%s4977_s12 + $0xfc0] sm:$0xff] }
 0x15d   : > { %3974 = vmatprep.subr.mxu1 %v798_v24  ;;  %3942 = vmatpush3.msra.mxu0 %v749_v25  ;;  %v815_v24 = vld [vmem:[%s4977_s12 + $0xe38] sm:$0xff]  ;;  %v848_v25 = vld [vmem:[%s4977_s12 + $0xf40] sm:$0xff] }
 0x15e   : > { %3975 = vmatpush3.msra.mxu1 %v782_v26  ;;  %3943 = vmatprep.subr.mxu0 %v764_v27  ;;  %v830_v26 = vld [vmem:[%s4977_s12 + $0xeb0] sm:$0xff]  ;;  %v863_v27 = vld [vmem:[%s4977_s12 + $0xfb8] sm:$0xff] }
 0x15f   : > { %3976 = vmatprep.subr.mxu1 %v797_v28  ;;  %3944 = vmatpush3.msra.mxu0 %v748_v30  ;;  %v814_v28 = vld [vmem:[%s4977_s12 + $0xe30] sm:$0xff]  ;;  %v829_v30 = vld [vmem:[%s4977_s12 + $0xea8] sm:$0xff] }
 0x160   : > { %3977 = vmatpush3.msra.mxu1 %v781_v31  ;;  %3945 = vmatprep.subr.mxu0 %v763_v32  ;;  %v862_v31 = vld [vmem:[%s4977_s12 + $0xfb0] sm:$0xff]  ;;  %v813_v32 = vld [vmem:[%s4977_s12 + $0xe28] sm:$0xff] }
 0x161   : > { %3978 = vmatprep.subr.mxu1 %v796_v33  ;;  %3946 = vmatpush3.msra.mxu0 %v747_v34  ;;  %v846_v33 = vld [vmem:[%s4977_s12 + $0xf30] sm:$0xff]  ;;  %v828_v34 = vld [vmem:[%s4977_s12 + $0xea0] sm:$0xff] }
 0x162   : > { %3979 = vmatpush3.msra.mxu1 %v780_v35  ;;  %3947 = vmatprep.subr.mxu0 %v762_v37  ;;  %v861_v35 = vld [vmem:[%s4977_s12 + $0xfa8] sm:$0xff]  ;;  %v812_v37 = vld [vmem:[%s4977_s12 + $0xe20] sm:$0xff] }
 0x163   : > { %3980 = vmatprep.subr.mxu1 %v795_v38  ;;  %3948 = vmatpush3.msra.mxu0 %v746_v40  ;;  %v845_v38 = vld [vmem:[%s4977_s12 + $0xf28] sm:$0xff]  ;;  %v860_v40 = vld [vmem:[%s4977_s12 + $0xfa0] sm:$0xff] }
 0x164   : > { %3981 = vmatpush3.msra.mxu1 %v779_v41  ;;  %3949 = vmatprep.subr.mxu0 %v761_v42  ;;  %v811_v41 = vld [vmem:[%s4977_s12 + $0xe18] sm:$0xff]  ;;  %v844_v42 = vld [vmem:[%s4977_s12 + $0xf20] sm:$0xff] }
 0x165   : > { %3982 = vmatprep.subr.mxu1 %v794_v43  ;;  %3950 = vmatpush3.msra.mxu0 %v745_v44  ;;  %v1276_v43 = vcombine.high %v353_v36, %v353_v36  ;;  %v826_v44 = vld [vmem:[%s4977_s12 + $0xe90] sm:$0xff] }
 0x166   : > { %3983 = vmatpush3.msra.mxu1 %v778_v45  ;;  %3951 = vmatprep.subr.mxu0 %v760_v47  ;;  %v859_v45 = vld [vmem:[%s4977_s12 + $0xf98] sm:$0xff]  ;;  %v810_v47 = vld [vmem:[%s4977_s12 + $0xe10] sm:$0xff] }
 0x167   : > { %3984 = vmatprep.subr.mxu1 %v793_v48  ;;  %3952 = vmatpush3.msra.mxu0 %v744_v50  ;;  %v843_v48 = vld [vmem:[%s4977_s12 + $0xf18] sm:$0xff]  ;;  %v858_v50 = vld [vmem:[%s4977_s12 + $0xf90] sm:$0xff] }
 0x168   : > { %2321 = vmatprep.mubr.f32.mxu0 %v1274_v49  ;;  %3985 = vmatpush3.msra.mxu1 %v777_v51  ;;  %v825_v49 = vld [vmem:[%s4977_s12 + $0xe88] sm:$0xff] }
 0x169   : > { %2322 = vmatmul.mubr.f32.vlgmr.msra.gmra.mxu0 %v1266_v39  ;;  %3986 = vmatprep.subr.mxu1 %v792_v53  ;;  %v827_v39 = vld [vmem:[%s4977_s12 + $0xe98] sm:$0xff]  ;;  %v809_v51 = vld [vmem:[%s4977_s12 + $0xe08] sm:$0xff]  ;;  %v842_v53 = vld [vmem:[%s4977_s12 + $0xf10] sm:$0xff] }
 0x16a   : > { %3991 = vmatprep.subr.mxu0 %v839_v54  ;;  %3987 = vmatpush3.msra.mxu1 %v776_v56  ;;  %v1290_v54 = vrot.slane %v1276_v43, %v5043_v52  ;;  %v857_v56 = vld [vmem:[%s4977_s12 + $0xf88] sm:$0xff] }
 0x16b   : > { %2391 = vmatprep.mubr.f32.mxu1 %v1275_v55  ;;  %3992 = vmatpush3.msra.mxu0 %v823_v57  ;;  %v824_v55 = vld [vmem:[%s4977_s12 + $0xe80] sm:$0xff]  ;;  %v354_v43 = vld [vmem:[%s5047_s9 + $0x40] sm:$0xff] }
 0x16c   : > { %2392 = vmatmul.mubr.f32.vlgmr.msra.gmra.mxu1 %v1273_v46  ;;  %3993 = vmatprep.subr.mxu0 %v838_v58  ;;  %v1283_v46 = vrot.slane %v353_v36, %v5043_v52  ;;  %v808_v58 = vld [vmem:[%s4977_s12 + $0xe00] sm:$0xff]  ;;  %v911_v36 = vld [vmem:[%s4977_s12 + $0x1138] sm:$0xff] }
 0x16d   : > { %4026 = vmatprep.subr.mxu1 %v871_v59  ;;  %3994 = vmatpush3.msra.mxu0 %v822_v60  ;;  %v841_v59 = vld [vmem:[%s4977_s12 + $0xf08] sm:$0xff]  ;;  %v856_v60 = vld [vmem:[%s4977_s12 + $0xf80] sm:$0xff] }
 0x16e   : > { %4027 = vmatpush3.msra.mxu1 %v855_v61  ;;  %3995 = vmatprep.subr.mxu0 %v837_v62  ;;  %v1291_v57 = vcombine.high %v1283_v46, %v1283_v46  ;;  %v903_v61 = vld [vmem:[%s4977_s12 + $0x10f8] sm:$0xff]  ;;  %v1292_v62 = vcombine.high %v1290_v54, %v1290_v54 }
 0x16f   : > { %4028 = vmatprep.subr.mxu1 %v870_v63  ;;  %3996 = vmatpush3.msra.mxu0 %v821_v0  ;;  %v840_v63 = vld [vmem:[%s4977_s12 + $0xf00] sm:$0xff]  ;;  %v887_v0 = vld [vmem:[%s4977_s12 + $0x1078] sm:$0xff] }
 0x170   : > { %4029 = vmatpush3.msra.mxu1 %v854_v1  ;;  %3997 = vmatprep.subr.mxu0 %v836_v2  ;;  %v902_v1 = vld [vmem:[%s4977_s12 + $0x10f0] sm:$0xff]  ;;  %v935_v2 = vld [vmem:[%s4977_s12 + $0x11f8] sm:$0xff] }
 0x171   : > { %4030 = vmatprep.subr.mxu1 %v869_v3  ;;  %3998 = vmatpush3.msra.mxu0 %v820_v4  ;;  %v886_v3 = vld [vmem:[%s4977_s12 + $0x1070] sm:$0xff]  ;;  %v919_v4 = vld [vmem:[%s4977_s12 + $0x1178] sm:$0xff] }
 0x172   : > { %4031 = vmatpush3.msra.mxu1 %v853_v5  ;;  %3999 = vmatprep.subr.mxu0 %v835_v6  ;;  %v901_v5 = vld [vmem:[%s4977_s12 + $0x10e8] sm:$0xff]  ;;  %v934_v6 = vld [vmem:[%s4977_s12 + $0x11f0] sm:$0xff] }
 0x173   : > { %4032 = vmatprep.subr.mxu1 %v868_v7  ;;  %4000 = vmatpush3.msra.mxu0 %v819_v8  ;;  %v885_v7 = vld [vmem:[%s4977_s12 + $0x1068] sm:$0xff]  ;;  %v918_v8 = vld [vmem:[%s4977_s12 + $0x1170] sm:$0xff] }
 0x174   : > { %4033 = vmatpush3.msra.mxu1 %v852_v9  ;;  %4001 = vmatprep.subr.mxu0 %v834_v10  ;;  %v900_v9 = vld [vmem:[%s4977_s12 + $0x10e0] sm:$0xff]  ;;  %v933_v10 = vld [vmem:[%s4977_s12 + $0x11e8] sm:$0xff] }
 0x175   : > { %4034 = vmatprep.subr.mxu1 %v867_v11  ;;  %4002 = vmatpush3.msra.mxu0 %v818_v12  ;;  %v884_v11 = vld [vmem:[%s4977_s12 + $0x1060] sm:$0xff]  ;;  %v917_v12 = vld [vmem:[%s4977_s12 + $0x1168] sm:$0xff] }
 0x176   : > { %4035 = vmatpush3.msra.mxu1 %v851_v13  ;;  %4003 = vmatprep.subr.mxu0 %v833_v14  ;;  %v899_v13 = vld [vmem:[%s4977_s12 + $0x10d8] sm:$0xff]  ;;  %v932_v14 = vld [vmem:[%s4977_s12 + $0x11e0] sm:$0xff] }
 0x177   : > { %4036 = vmatprep.subr.mxu1 %v866_v15  ;;  %4004 = vmatpush3.msra.mxu0 %v817_v16  ;;  %v883_v15 = vld [vmem:[%s4977_s12 + $0x1058] sm:$0xff]  ;;  %v916_v16 = vld [vmem:[%s4977_s12 + $0x1160] sm:$0xff] }
 0x178   : > { %4037 = vmatpush3.msra.mxu1 %v850_v17  ;;  %4005 = vmatprep.subr.mxu0 %v832_v18  ;;  %v898_v17 = vld [vmem:[%s4977_s12 + $0x10d0] sm:$0xff]  ;;  %v931_v18 = vld [vmem:[%s4977_s12 + $0x11d8] sm:$0xff] }
 0x179   : > { %4038 = vmatprep.subr.mxu1 %v865_v19  ;;  %4006 = vmatpush3.msra.mxu0 %v816_v20  ;;  %v882_v19 = vld [vmem:[%s4977_s12 + $0x1050] sm:$0xff]  ;;  %v915_v20 = vld [vmem:[%s4977_s12 + $0x1158] sm:$0xff] }
 0x17a   : > { %4039 = vmatpush3.msra.mxu1 %v849_v21  ;;  %4007 = vmatprep.subr.mxu0 %v831_v22  ;;  %v897_v21 = vld [vmem:[%s4977_s12 + $0x10c8] sm:$0xff]  ;;  %v930_v22 = vld [vmem:[%s4977_s12 + $0x11d0] sm:$0xff] }
 0x17b   : > { %4040 = vmatprep.subr.mxu1 %v864_v23  ;;  %4008 = vmatpush3.msra.mxu0 %v815_v24  ;;  %v881_v23 = vld [vmem:[%s4977_s12 + $0x1048] sm:$0xff]  ;;  %v914_v24 = vld [vmem:[%s4977_s12 + $0x1150] sm:$0xff] }
 0x17c   : > { %4041 = vmatpush3.msra.mxu1 %v848_v25  ;;  %4009 = vmatprep.subr.mxu0 %v830_v26  ;;  %v896_v25 = vld [vmem:[%s4977_s12 + $0x10c0] sm:$0xff]  ;;  %v929_v26 = vld [vmem:[%s4977_s12 + $0x11c8] sm:$0xff] }
 0x17d   : > { %4042 = vmatprep.subr.mxu1 %v863_v27  ;;  %4010 = vmatpush3.msra.mxu0 %v814_v28  ;;  %v880_v27 = vld [vmem:[%s4977_s12 + $0x1040] sm:$0xff]  ;;  %v913_v28 = vld [vmem:[%s4977_s12 + $0x1148] sm:$0xff] }
 0x17e   : > { %4043 = vmatpush3.msra.mxu1 %v847_v29  ;;  %4011 = vmatprep.subr.mxu0 %v829_v30  ;;  %v895_v29 = vld [vmem:[%s4977_s12 + $0x10b8] sm:$0xff]  ;;  %v928_v30 = vld [vmem:[%s4977_s12 + $0x11c0] sm:$0xff] }
 0x17f   : > { %4044 = vmatprep.subr.mxu1 %v862_v31  ;;  %4012 = vmatpush3.msra.mxu0 %v813_v32  ;;  %v879_v31 = vld [vmem:[%s4977_s12 + $0x1038] sm:$0xff]  ;;  %v912_v32 = vld [vmem:[%s4977_s12 + $0x1140] sm:$0xff] }
 0x180   : > { %4045 = vmatpush3.msra.mxu1 %v846_v33  ;;  %4013 = vmatprep.subr.mxu0 %v828_v34  ;;  %v894_v33 = vld [vmem:[%s4977_s12 + $0x10b0] sm:$0xff]  ;;  %v927_v34 = vld [vmem:[%s4977_s12 + $0x11b8] sm:$0xff] }
 0x181   : > { %4046 = vmatprep.subr.mxu1 %v861_v35  ;;  %4014 = vmatpush3.msra.mxu0 %v812_v37  ;;  %v878_v35 = vld [vmem:[%s4977_s12 + $0x1030] sm:$0xff]  ;;  %v893_v37 = vld [vmem:[%s4977_s12 + $0x10a8] sm:$0xff] }
 0x182   : > { %4047 = vmatpush3.msra.mxu1 %v845_v38  ;;  %4015 = vmatprep.subr.mxu0 %v827_v39  ;;  %v926_v38 = vld [vmem:[%s4977_s12 + $0x11b0] sm:$0xff]  ;;  %v877_v39 = vld [vmem:[%s4977_s12 + $0x1028] sm:$0xff] }
 0x183   : > { %4048 = vmatprep.subr.mxu1 %v860_v40  ;;  %4016 = vmatpush3.msra.mxu0 %v811_v41  ;;  %v910_v40 = vld [vmem:[%s4977_s12 + $0x1130] sm:$0xff]  ;;  %v892_v41 = vld [vmem:[%s4977_s12 + $0x10a0] sm:$0xff] }
 0x184   : > { %4049 = vmatpush3.msra.mxu1 %v844_v42  ;;  %4017 = vmatprep.subr.mxu0 %v826_v44  ;;  %v925_v42 = vld [vmem:[%s4977_s12 + $0x11a8] sm:$0xff]  ;;  %v876_v44 = vld [vmem:[%s4977_s12 + $0x1020] sm:$0xff] }
 0x185   : > { %4050 = vmatprep.subr.mxu1 %v859_v45  ;;  %4018 = vmatpush3.msra.mxu0 %v810_v47  ;;  %v909_v45 = vld [vmem:[%s4977_s12 + $0x1128] sm:$0xff]  ;;  %v924_v47 = vld [vmem:[%s4977_s12 + $0x11a0] sm:$0xff] }
 0x186   : > { %4051 = vmatpush3.msra.mxu1 %v843_v48  ;;  %4019 = vmatprep.subr.mxu0 %v825_v49  ;;  %v875_v48 = vld [vmem:[%s4977_s12 + $0x1018] sm:$0xff]  ;;  %v908_v49 = vld [vmem:[%s4977_s12 + $0x1120] sm:$0xff] }
 0x187   : > { %4052 = vmatprep.subr.mxu1 %v858_v50  ;;  %4020 = vmatpush3.msra.mxu0 %v809_v51  ;;  %v1293_v50 = vcombine.high %v354_v43, %v354_v43  ;;  %v890_v51 = vld [vmem:[%s4977_s12 + $0x1090] sm:$0xff] }
 0x188   : > { %4053 = vmatpush3.msra.mxu1 %v842_v53  ;;  %4021 = vmatprep.subr.mxu0 %v824_v55  ;;  %v923_v53 = vld [vmem:[%s4977_s12 + $0x1198] sm:$0xff]  ;;  %v874_v55 = vld [vmem:[%s4977_s12 + $0x1010] sm:$0xff] }
 0x189   : > { %4054 = vmatprep.subr.mxu1 %v857_v56  ;;  %4022 = vmatpush3.msra.mxu0 %v808_v58  ;;  %v907_v56 = vld [vmem:[%s4977_s12 + $0x1118] sm:$0xff]  ;;  %v922_v58 = vld [vmem:[%s4977_s12 + $0x1190] sm:$0xff] }
 0x18a   : > { %2461 = vmatprep.mubr.f32.mxu0 %v1291_v57  ;;  %4055 = vmatpush3.msra.mxu1 %v841_v59  ;;  %v889_v57 = vld [vmem:[%s4977_s12 + $0x1088] sm:$0xff] }
 0x18b   : > { %2462 = vmatmul.mubr.f32.vlgmr.msra.gmra.mxu0 %v1283_v46  ;;  %4056 = vmatprep.subr.mxu1 %v856_v60  ;;  %v891_v46 = vld [vmem:[%s4977_s12 + $0x1098] sm:$0xff]  ;;  %v873_v59 = vld [vmem:[%s4977_s12 + $0x1008] sm:$0xff]  ;;  %v906_v60 = vld [vmem:[%s4977_s12 + $0x1110] sm:$0xff] }
 0x18c   : > { %4061 = vmatprep.subr.mxu0 %v903_v61  ;;  %4057 = vmatpush3.msra.mxu1 %v840_v63  ;;  %v1307_v61 = vrot.slane %v1293_v50, %v5043_v52  ;;  %v921_v63 = vld [vmem:[%s4977_s12 + $0x1188] sm:$0xff]  ;;  %v355_v50 = vld [vmem:[%s5047_s9 + $0x48] sm:$0xff] }
 0x18d   : > { %2531 = vmatprep.mubr.f32.mxu1 %v1292_v62  ;;  %4062 = vmatpush3.msra.mxu0 %v887_v0  ;;  %v888_v62 = vld [vmem:[%s4977_s12 + $0x1080] sm:$0xff] }
 0x18e   : > { %2532 = vmatmul.mubr.f32.vlgmr.msra.gmra.mxu1 %v1290_v54  ;;  %4063 = vmatprep.subr.mxu0 %v902_v1  ;;  %v1300_v54 = vrot.slane %v354_v43, %v5043_v52  ;;  %v872_v1 = vld [vmem:[%s4977_s12 + $0x1000] sm:$0xff]  ;;  %v975_v43 = vld [vmem:[%s4977_s12 + $0x1338] sm:$0xff] }
 0x18f   : > { %4096 = vmatprep.subr.mxu1 %v935_v2  ;;  %4064 = vmatpush3.msra.mxu0 %v886_v3  ;;  %v905_v2 = vld [vmem:[%s4977_s12 + $0x1108] sm:$0xff]  ;;  %v920_v3 = vld [vmem:[%s4977_s12 + $0x1180] sm:$0xff] }
 0x190   : > { %4097 = vmatpush3.msra.mxu1 %v919_v4  ;;  %4065 = vmatprep.subr.mxu0 %v901_v5  ;;  %v1308_v0 = vcombine.high %v1300_v54, %v1300_v54  ;;  %v967_v4 = vld [vmem:[%s4977_s12 + $0x12f8] sm:$0xff]  ;;  %v1309_v5 = vcombine.high %v1307_v61, %v1307_v61 }
 0x191   : > { %4098 = vmatprep.subr.mxu1 %v934_v6  ;;  %4066 = vmatpush3.msra.mxu0 %v885_v7  ;;  %v904_v6 = vld [vmem:[%s4977_s12 + $0x1100] sm:$0xff]  ;;  %v951_v7 = vld [vmem:[%s4977_s12 + $0x1278] sm:$0xff] }
 0x192   : > { %4099 = vmatpush3.msra.mxu1 %v918_v8  ;;  %4067 = vmatprep.subr.mxu0 %v900_v9  ;;  %v966_v8 = vld [vmem:[%s4977_s12 + $0x12f0] sm:$0xff]  ;;  %v999_v9 = vld [vmem:[%s4977_s12 + $0x13f8] sm:$0xff] }
 0x193   : > { %4100 = vmatprep.subr.mxu1 %v933_v10  ;;  %4068 = vmatpush3.msra.mxu0 %v884_v11  ;;  %v950_v10 = vld [vmem:[%s4977_s12 + $0x1270] sm:$0xff]  ;;  %v983_v11 = vld [vmem:[%s4977_s12 + $0x1378] sm:$0xff] }
 0x194   : > { %4101 = vmatpush3.msra.mxu1 %v917_v12  ;;  %4069 = vmatprep.subr.mxu0 %v899_v13  ;;  %v965_v12 = vld [vmem:[%s4977_s12 + $0x12e8] sm:$0xff]  ;;  %v998_v13 = vld [vmem:[%s4977_s12 + $0x13f0] sm:$0xff] }
 0x195   : > { %4102 = vmatprep.subr.mxu1 %v932_v14  ;;  %4070 = vmatpush3.msra.mxu0 %v883_v15  ;;  %v949_v14 = vld [vmem:[%s4977_s12 + $0x1268] sm:$0xff]  ;;  %v982_v15 = vld [vmem:[%s4977_s12 + $0x1370] sm:$0xff] }
 0x196   : > { %4103 = vmatpush3.msra.mxu1 %v916_v16  ;;  %4071 = vmatprep.subr.mxu0 %v898_v17  ;;  %v964_v16 = vld [vmem:[%s4977_s12 + $0x12e0] sm:$0xff]  ;;  %v997_v17 = vld [vmem:[%s4977_s12 + $0x13e8] sm:$0xff] }
 0x197   : > { %4104 = vmatprep.subr.mxu1 %v931_v18  ;;  %4072 = vmatpush3.msra.mxu0 %v882_v19  ;;  %v948_v18 = vld [vmem:[%s4977_s12 + $0x1260] sm:$0xff]  ;;  %v981_v19 = vld [vmem:[%s4977_s12 + $0x1368] sm:$0xff] }
 0x198   : > { %4105 = vmatpush3.msra.mxu1 %v915_v20  ;;  %4073 = vmatprep.subr.mxu0 %v897_v21  ;;  %v963_v20 = vld [vmem:[%s4977_s12 + $0x12d8] sm:$0xff]  ;;  %v996_v21 = vld [vmem:[%s4977_s12 + $0x13e0] sm:$0xff] }
 0x199   : > { %4106 = vmatprep.subr.mxu1 %v930_v22  ;;  %4074 = vmatpush3.msra.mxu0 %v881_v23  ;;  %v947_v22 = vld [vmem:[%s4977_s12 + $0x1258] sm:$0xff]  ;;  %v980_v23 = vld [vmem:[%s4977_s12 + $0x1360] sm:$0xff] }
 0x19a   : > { %4107 = vmatpush3.msra.mxu1 %v914_v24  ;;  %4075 = vmatprep.subr.mxu0 %v896_v25  ;;  %v962_v24 = vld [vmem:[%s4977_s12 + $0x12d0] sm:$0xff]  ;;  %v995_v25 = vld [vmem:[%s4977_s12 + $0x13d8] sm:$0xff] }
 0x19b   : > { %4108 = vmatprep.subr.mxu1 %v929_v26  ;;  %4076 = vmatpush3.msra.mxu0 %v880_v27  ;;  %v946_v26 = vld [vmem:[%s4977_s12 + $0x1250] sm:$0xff]  ;;  %v979_v27 = vld [vmem:[%s4977_s12 + $0x1358] sm:$0xff] }
 0x19c   : > { %4109 = vmatpush3.msra.mxu1 %v913_v28  ;;  %4077 = vmatprep.subr.mxu0 %v895_v29  ;;  %v961_v28 = vld [vmem:[%s4977_s12 + $0x12c8] sm:$0xff]  ;;  %v994_v29 = vld [vmem:[%s4977_s12 + $0x13d0] sm:$0xff] }
 0x19d   : > { %4110 = vmatprep.subr.mxu1 %v928_v30  ;;  %4078 = vmatpush3.msra.mxu0 %v879_v31  ;;  %v945_v30 = vld [vmem:[%s4977_s12 + $0x1248] sm:$0xff]  ;;  %v978_v31 = vld [vmem:[%s4977_s12 + $0x1350] sm:$0xff] }
 0x19e   : > { %4111 = vmatpush3.msra.mxu1 %v912_v32  ;;  %4079 = vmatprep.subr.mxu0 %v894_v33  ;;  %v960_v32 = vld [vmem:[%s4977_s12 + $0x12c0] sm:$0xff]  ;;  %v993_v33 = vld [vmem:[%s4977_s12 + $0x13c8] sm:$0xff] }
 0x19f   : > { %4112 = vmatprep.subr.mxu1 %v927_v34  ;;  %4080 = vmatpush3.msra.mxu0 %v878_v35  ;;  %v944_v34 = vld [vmem:[%s4977_s12 + $0x1240] sm:$0xff]  ;;  %v977_v35 = vld [vmem:[%s4977_s12 + $0x1348] sm:$0xff] }
 0x1a0   : > { %4113 = vmatpush3.msra.mxu1 %v911_v36  ;;  %4081 = vmatprep.subr.mxu0 %v893_v37  ;;  %v959_v36 = vld [vmem:[%s4977_s12 + $0x12b8] sm:$0xff]  ;;  %v992_v37 = vld [vmem:[%s4977_s12 + $0x13c0] sm:$0xff] }
 0x1a1   : > { %4114 = vmatprep.subr.mxu1 %v926_v38  ;;  %4082 = vmatpush3.msra.mxu0 %v877_v39  ;;  %v943_v38 = vld [vmem:[%s4977_s12 + $0x1238] sm:$0xff]  ;;  %v976_v39 = vld [vmem:[%s4977_s12 + $0x1340] sm:$0xff] }
 0x1a2   : > { %4115 = vmatpush3.msra.mxu1 %v910_v40  ;;  %4083 = vmatprep.subr.mxu0 %v892_v41  ;;  %v958_v40 = vld [vmem:[%s4977_s12 + $0x12b0] sm:$0xff]  ;;  %v991_v41 = vld [vmem:[%s4977_s12 + $0x13b8] sm:$0xff] }
 0x1a3   : > { %4116 = vmatprep.subr.mxu1 %v925_v42  ;;  %4084 = vmatpush3.msra.mxu0 %v876_v44  ;;  %v942_v42 = vld [vmem:[%s4977_s12 + $0x1230] sm:$0xff]  ;;  %v957_v44 = vld [vmem:[%s4977_s12 + $0x12a8] sm:$0xff] }
 0x1a4   : > { %4117 = vmatpush3.msra.mxu1 %v909_v45  ;;  %4085 = vmatprep.subr.mxu0 %v891_v46  ;;  %v990_v45 = vld [vmem:[%s4977_s12 + $0x13b0] sm:$0xff]  ;;  %v941_v46 = vld [vmem:[%s4977_s12 + $0x1228] sm:$0xff] }
 0x1a5   : > { %4118 = vmatprep.subr.mxu1 %v924_v47  ;;  %4086 = vmatpush3.msra.mxu0 %v875_v48  ;;  %v974_v47 = vld [vmem:[%s4977_s12 + $0x1330] sm:$0xff]  ;;  %v956_v48 = vld [vmem:[%s4977_s12 + $0x12a0] sm:$0xff] }
 0x1a6   : > { %4119 = vmatpush3.msra.mxu1 %v908_v49  ;;  %4087 = vmatprep.subr.mxu0 %v890_v51  ;;  %v989_v49 = vld [vmem:[%s4977_s12 + $0x13a8] sm:$0xff]  ;;  %v940_v51 = vld [vmem:[%s4977_s12 + $0x1220] sm:$0xff] }
 0x1a7   : > { %4120 = vmatprep.subr.mxu1 %v923_v53  ;;  %4088 = vmatpush3.msra.mxu0 %v874_v55  ;;  %v973_v53 = vld [vmem:[%s4977_s12 + $0x1328] sm:$0xff]  ;;  %v988_v55 = vld [vmem:[%s4977_s12 + $0x13a0] sm:$0xff] }
 0x1a8   : > { %4121 = vmatpush3.msra.mxu1 %v907_v56  ;;  %4089 = vmatprep.subr.mxu0 %v889_v57  ;;  %v939_v56 = vld [vmem:[%s4977_s12 + $0x1218] sm:$0xff]  ;;  %v972_v57 = vld [vmem:[%s4977_s12 + $0x1320] sm:$0xff] }
 0x1a9   : > { %4122 = vmatprep.subr.mxu1 %v922_v58  ;;  %4090 = vmatpush3.msra.mxu0 %v873_v59  ;;  %v1310_v58 = vcombine.high %v355_v50, %v355_v50  ;;  %v954_v59 = vld [vmem:[%s4977_s12 + $0x1290] sm:$0xff] }
 0x1aa   : > { %4123 = vmatpush3.msra.mxu1 %v906_v60  ;;  %4091 = vmatprep.subr.mxu0 %v888_v62  ;;  %v987_v60 = vld [vmem:[%s4977_s12 + $0x1398] sm:$0xff]  ;;  %v938_v62 = vld [vmem:[%s4977_s12 + $0x1210] sm:$0xff] }
 0x1ab   : > { %4124 = vmatprep.subr.mxu1 %v921_v63  ;;  %4092 = vmatpush3.msra.mxu0 %v872_v1  ;;  %v971_v63 = vld [vmem:[%s4977_s12 + $0x1318] sm:$0xff]  ;;  %v986_v1 = vld [vmem:[%s4977_s12 + $0x1390] sm:$0xff] }
 0x1ac   : > { %2601 = vmatprep.mubr.f32.mxu0 %v1308_v0  ;;  %4125 = vmatpush3.msra.mxu1 %v905_v2  ;;  %v953_v0 = vld [vmem:[%s4977_s12 + $0x1288] sm:$0xff] }
 0x1ad   : > { %2602 = vmatmul.mubr.f32.vlgmr.msra.gmra.mxu0 %v1300_v54  ;;  %4126 = vmatprep.subr.mxu1 %v920_v3  ;;  %v955_v54 = vld [vmem:[%s4977_s12 + $0x1298] sm:$0xff]  ;;  %v937_v2 = vld [vmem:[%s4977_s12 + $0x1208] sm:$0xff]  ;;  %v970_v3 = vld [vmem:[%s4977_s12 + $0x1310] sm:$0xff] }
 0x1ae   : > { %4131 = vmatprep.subr.mxu0 %v967_v4  ;;  %4127 = vmatpush3.msra.mxu1 %v904_v6  ;;  %v1324_v4 = vrot.slane %v1310_v58, %v5043_v52  ;;  %v985_v6 = vld [vmem:[%s4977_s12 + $0x1388] sm:$0xff]  ;;  %v356_v58 = vld [vmem:[%s5047_s9 + $0x50] sm:$0xff] }
 0x1af   : > { %2671 = vmatprep.mubr.f32.mxu1 %v1309_v5  ;;  %4132 = vmatpush3.msra.mxu0 %v951_v7  ;;  %v952_v5 = vld [vmem:[%s4977_s12 + $0x1280] sm:$0xff] }
 0x1b0   : > { %2672 = vmatmul.mubr.f32.vlgmr.msra.gmra.mxu1 %v1307_v61  ;;  %4133 = vmatprep.subr.mxu0 %v966_v8  ;;  %v1317_v61 = vrot.slane %v355_v50, %v5043_v52  ;;  %v936_v8 = vld [vmem:[%s4977_s12 + $0x1200] sm:$0xff]  ;;  %v1039_v50 = vld [vmem:[%s4977_s12 + $0x1538] sm:$0xff] }
 0x1b1   : > { %4166 = vmatprep.subr.mxu1 %v999_v9  ;;  %4134 = vmatpush3.msra.mxu0 %v950_v10  ;;  %v969_v9 = vld [vmem:[%s4977_s12 + $0x1308] sm:$0xff]  ;;  %v984_v10 = vld [vmem:[%s4977_s12 + $0x1380] sm:$0xff] }
 0x1b2   : > { %4167 = vmatpush3.msra.mxu1 %v983_v11  ;;  %4135 = vmatprep.subr.mxu0 %v965_v12  ;;  %v1325_v7 = vcombine.high %v1317_v61, %v1317_v61  ;;  %v1031_v11 = vld [vmem:[%s4977_s12 + $0x14f8] sm:$0xff]  ;;  %v1326_v12 = vcombine.high %v1324_v4, %v1324_v4 }
 0x1b3   : > { %4168 = vmatprep.subr.mxu1 %v998_v13  ;;  %4136 = vmatpush3.msra.mxu0 %v949_v14  ;;  %v968_v13 = vld [vmem:[%s4977_s12 + $0x1300] sm:$0xff]  ;;  %v1015_v14 = vld [vmem:[%s4977_s12 + $0x1478] sm:$0xff] }
 0x1b4   : > { %4169 = vmatpush3.msra.mxu1 %v982_v15  ;;  %4137 = vmatprep.subr.mxu0 %v964_v16  ;;  %v1030_v15 = vld [vmem:[%s4977_s12 + $0x14f0] sm:$0xff]  ;;  %v1063_v16 = vld [vmem:[%s4977_s12 + $0x15f8] sm:$0xff] }
 0x1b5   : > { %4170 = vmatprep.subr.mxu1 %v997_v17  ;;  %4138 = vmatpush3.msra.mxu0 %v948_v18  ;;  %v1014_v17 = vld [vmem:[%s4977_s12 + $0x1470] sm:$0xff]  ;;  %v1047_v18 = vld [vmem:[%s4977_s12 + $0x1578] sm:$0xff] }
 0x1b6   : > { %4171 = vmatpush3.msra.mxu1 %v981_v19  ;;  %4139 = vmatprep.subr.mxu0 %v963_v20  ;;  %v1029_v19 = vld [vmem:[%s4977_s12 + $0x14e8] sm:$0xff]  ;;  %v1062_v20 = vld [vmem:[%s4977_s12 + $0x15f0] sm:$0xff] }
 0x1b7   : > { %4172 = vmatprep.subr.mxu1 %v996_v21  ;;  %4140 = vmatpush3.msra.mxu0 %v947_v22  ;;  %v1013_v21 = vld [vmem:[%s4977_s12 + $0x1468] sm:$0xff]  ;;  %v1046_v22 = vld [vmem:[%s4977_s12 + $0x1570] sm:$0xff] }
 0x1b8   : > { %4173 = vmatpush3.msra.mxu1 %v980_v23  ;;  %4141 = vmatprep.subr.mxu0 %v962_v24  ;;  %v1028_v23 = vld [vmem:[%s4977_s12 + $0x14e0] sm:$0xff]  ;;  %v1061_v24 = vld [vmem:[%s4977_s12 + $0x15e8] sm:$0xff] }
 0x1b9   : > { %4174 = vmatprep.subr.mxu1 %v995_v25  ;;  %4142 = vmatpush3.msra.mxu0 %v946_v26  ;;  %v1012_v25 = vld [vmem:[%s4977_s12 + $0x1460] sm:$0xff]  ;;  %v1045_v26 = vld [vmem:[%s4977_s12 + $0x1568] sm:$0xff] }
 0x1ba   : > { %4175 = vmatpush3.msra.mxu1 %v979_v27  ;;  %4143 = vmatprep.subr.mxu0 %v961_v28  ;;  %v1027_v27 = vld [vmem:[%s4977_s12 + $0x14d8] sm:$0xff]  ;;  %v1060_v28 = vld [vmem:[%s4977_s12 + $0x15e0] sm:$0xff] }
 0x1bb   : > { %4176 = vmatprep.subr.mxu1 %v994_v29  ;;  %4144 = vmatpush3.msra.mxu0 %v945_v30  ;;  %v1011_v29 = vld [vmem:[%s4977_s12 + $0x1458] sm:$0xff]  ;;  %v1044_v30 = vld [vmem:[%s4977_s12 + $0x1560] sm:$0xff] }
 0x1bc   : > { %4177 = vmatpush3.msra.mxu1 %v978_v31  ;;  %4145 = vmatprep.subr.mxu0 %v960_v32  ;;  %v1026_v31 = vld [vmem:[%s4977_s12 + $0x14d0] sm:$0xff]  ;;  %v1059_v32 = vld [vmem:[%s4977_s12 + $0x15d8] sm:$0xff] }
 0x1bd   : > { %4178 = vmatprep.subr.mxu1 %v993_v33  ;;  %4146 = vmatpush3.msra.mxu0 %v944_v34  ;;  %v1010_v33 = vld [vmem:[%s4977_s12 + $0x1450] sm:$0xff]  ;;  %v1043_v34 = vld [vmem:[%s4977_s12 + $0x1558] sm:$0xff] }
 0x1be   : > { %4179 = vmatpush3.msra.mxu1 %v977_v35  ;;  %4147 = vmatprep.subr.mxu0 %v959_v36  ;;  %v1025_v35 = vld [vmem:[%s4977_s12 + $0x14c8] sm:$0xff]  ;;  %v1058_v36 = vld [vmem:[%s4977_s12 + $0x15d0] sm:$0xff] }
 0x1bf   : > { %4180 = vmatprep.subr.mxu1 %v992_v37  ;;  %4148 = vmatpush3.msra.mxu0 %v943_v38  ;;  %v1009_v37 = vld [vmem:[%s4977_s12 + $0x1448] sm:$0xff]  ;;  %v1042_v38 = vld [vmem:[%s4977_s12 + $0x1550] sm:$0xff] }
 0x1c0   : > { %4181 = vmatpush3.msra.mxu1 %v976_v39  ;;  %4149 = vmatprep.subr.mxu0 %v958_v40  ;;  %v1024_v39 = vld [vmem:[%s4977_s12 + $0x14c0] sm:$0xff]  ;;  %v1057_v40 = vld [vmem:[%s4977_s12 + $0x15c8] sm:$0xff] }
 0x1c1   : > { %4182 = vmatprep.subr.mxu1 %v991_v41  ;;  %4150 = vmatpush3.msra.mxu0 %v942_v42  ;;  %v1008_v41 = vld [vmem:[%s4977_s12 + $0x1440] sm:$0xff]  ;;  %v1041_v42 = vld [vmem:[%s4977_s12 + $0x1548] sm:$0xff] }
 0x1c2   : > { %4183 = vmatpush3.msra.mxu1 %v975_v43  ;;  %4151 = vmatprep.subr.mxu0 %v957_v44  ;;  %v1023_v43 = vld [vmem:[%s4977_s12 + $0x14b8] sm:$0xff]  ;;  %v1056_v44 = vld [vmem:[%s4977_s12 + $0x15c0] sm:$0xff] }
 0x1c3   : > { %4184 = vmatprep.subr.mxu1 %v990_v45  ;;  %4152 = vmatpush3.msra.mxu0 %v941_v46  ;;  %v1007_v45 = vld [vmem:[%s4977_s12 + $0x1438] sm:$0xff]  ;;  %v1040_v46 = vld [vmem:[%s4977_s12 + $0x1540] sm:$0xff] }
 0x1c4   : > { %4185 = vmatpush3.msra.mxu1 %v974_v47  ;;  %4153 = vmatprep.subr.mxu0 %v956_v48  ;;  %v1022_v47 = vld [vmem:[%s4977_s12 + $0x14b0] sm:$0xff]  ;;  %v1055_v48 = vld [vmem:[%s4977_s12 + $0x15b8] sm:$0xff] }
 0x1c5   : > { %4186 = vmatprep.subr.mxu1 %v989_v49  ;;  %4154 = vmatpush3.msra.mxu0 %v940_v51  ;;  %v1006_v49 = vld [vmem:[%s4977_s12 + $0x1430] sm:$0xff]  ;;  %v1021_v51 = vld [vmem:[%s4977_s12 + $0x14a8] sm:$0xff] }
 0x1c6   : > { %4187 = vmatpush3.msra.mxu1 %v973_v53  ;;  %4155 = vmatprep.subr.mxu0 %v955_v54  ;;  %v1054_v53 = vld [vmem:[%s4977_s12 + $0x15b0] sm:$0xff]  ;;  %v1005_v54 = vld [vmem:[%s4977_s12 + $0x1428] sm:$0xff] }
 0x1c7   : > { %4188 = vmatprep.subr.mxu1 %v988_v55  ;;  %4156 = vmatpush3.msra.mxu0 %v939_v56  ;;  %v1038_v55 = vld [vmem:[%s4977_s12 + $0x1530] sm:$0xff]  ;;  %v1020_v56 = vld [vmem:[%s4977_s12 + $0x14a0] sm:$0xff] }
 0x1c8   : > { %4189 = vmatpush3.msra.mxu1 %v972_v57  ;;  %4157 = vmatprep.subr.mxu0 %v954_v59  ;;  %v1053_v57 = vld [vmem:[%s4977_s12 + $0x15a8] sm:$0xff]  ;;  %v1004_v59 = vld [vmem:[%s4977_s12 + $0x1420] sm:$0xff] }
 0x1c9   : > { %4190 = vmatprep.subr.mxu1 %v987_v60  ;;  %4158 = vmatpush3.msra.mxu0 %v938_v62  ;;  %v1037_v60 = vld [vmem:[%s4977_s12 + $0x1528] sm:$0xff]  ;;  %v1052_v62 = vld [vmem:[%s4977_s12 + $0x15a0] sm:$0xff] }
 0x1ca   : > { %4191 = vmatpush3.msra.mxu1 %v971_v63  ;;  %4159 = vmatprep.subr.mxu0 %v953_v0  ;;  %v1003_v63 = vld [vmem:[%s4977_s12 + $0x1418] sm:$0xff]  ;;  %v1036_v0 = vld [vmem:[%s4977_s12 + $0x1520] sm:$0xff] }
 0x1cb   : > { %4192 = vmatprep.subr.mxu1 %v986_v1  ;;  %4160 = vmatpush3.msra.mxu0 %v937_v2  ;;  %v1327_v1 = vcombine.high %v356_v58, %v356_v58  ;;  %v1018_v2 = vld [vmem:[%s4977_s12 + $0x1490] sm:$0xff] }
 0x1cc   : > { %4193 = vmatpush3.msra.mxu1 %v970_v3  ;;  %4161 = vmatprep.subr.mxu0 %v952_v5  ;;  %v1051_v3 = vld [vmem:[%s4977_s12 + $0x1598] sm:$0xff]  ;;  %v1002_v5 = vld [vmem:[%s4977_s12 + $0x1410] sm:$0xff] }
 0x1cd   : > { %4194 = vmatprep.subr.mxu1 %v985_v6  ;;  %4162 = vmatpush3.msra.mxu0 %v936_v8  ;;  %v1035_v6 = vld [vmem:[%s4977_s12 + $0x1518] sm:$0xff]  ;;  %v1050_v8 = vld [vmem:[%s4977_s12 + $0x1590] sm:$0xff] }
 0x1ce   : > { %2741 = vmatprep.mubr.f32.mxu0 %v1325_v7  ;;  %4195 = vmatpush3.msra.mxu1 %v969_v9  ;;  %v1017_v7 = vld [vmem:[%s4977_s12 + $0x1488] sm:$0xff] }
 0x1cf   : > { %2742 = vmatmul.mubr.f32.vlgmr.msra.gmra.mxu0 %v1317_v61  ;;  %4196 = vmatprep.subr.mxu1 %v984_v10  ;;  %v1019_v61 = vld [vmem:[%s4977_s12 + $0x1498] sm:$0xff]  ;;  %v1001_v9 = vld [vmem:[%s4977_s12 + $0x1408] sm:$0xff]  ;;  %v1034_v10 = vld [vmem:[%s4977_s12 + $0x1510] sm:$0xff] }
 0x1d0   : > { %4201 = vmatprep.subr.mxu0 %v1031_v11  ;;  %4197 = vmatpush3.msra.mxu1 %v968_v13  ;;  %v1341_v11 = vrot.slane %v1327_v1, %v5043_v52  ;;  %v1049_v13 = vld [vmem:[%s4977_s12 + $0x1588] sm:$0xff] }
 0x1d1   : > { %2811 = vmatprep.mubr.f32.mxu1 %v1326_v12  ;;  %4202 = vmatpush3.msra.mxu0 %v1015_v14  ;;  %v1016_v12 = vld [vmem:[%s4977_s12 + $0x1480] sm:$0xff] }
 0x1d2   : > { %2812 = vmatmul.mubr.f32.vlgmr.msra.gmra.mxu1 %v1324_v4  ;;  %4203 = vmatprep.subr.mxu0 %v1030_v15  ;;  %v1334_v4 = vrot.slane %v356_v58, %v5043_v52  ;;  %v1000_v15 = vld [vmem:[%s4977_s12 + $0x1400] sm:$0xff]  ;;  %v1103_v58 = vld [vmem:[%s4977_s12 + $0x1738] sm:$0xff] }
 0x1d3   : > { %4236 = vmatprep.subr.mxu1 %v1063_v16  ;;  %4204 = vmatpush3.msra.mxu0 %v1014_v17  ;;  %v1033_v16 = vld [vmem:[%s4977_s12 + $0x1508] sm:$0xff]  ;;  %v1048_v17 = vld [vmem:[%s4977_s12 + $0x1580] sm:$0xff] }
 0x1d4   : > { %4237 = vmatpush3.msra.mxu1 %v1047_v18  ;;  %4205 = vmatprep.subr.mxu0 %v1029_v19  ;;  %v1342_v14 = vcombine.high %v1334_v4, %v1334_v4  ;;  %v1095_v18 = vld [vmem:[%s4977_s12 + $0x16f8] sm:$0xff]  ;;  %v1343_v19 = vcombine.high %v1341_v11, %v1341_v11  ;;  %v357_v1 = vld [vmem:[%s5047_s9 + $0x58] sm:$0xff] }
 0x1d5   : > { %4238 = vmatprep.subr.mxu1 %v1062_v20  ;;  %4206 = vmatpush3.msra.mxu0 %v1013_v21  ;;  %v1032_v20 = vld [vmem:[%s4977_s12 + $0x1500] sm:$0xff]  ;;  %v1079_v21 = vld [vmem:[%s4977_s12 + $0x1678] sm:$0xff] }
 0x1d6   : > { %4239 = vmatpush3.msra.mxu1 %v1046_v22  ;;  %4207 = vmatprep.subr.mxu0 %v1028_v23  ;;  %v1094_v22 = vld [vmem:[%s4977_s12 + $0x16f0] sm:$0xff]  ;;  %v1127_v23 = vld [vmem:[%s4977_s12 + $0x17f8] sm:$0xff] }
 0x1d7   : > { %4240 = vmatprep.subr.mxu1 %v1061_v24  ;;  %4208 = vmatpush3.msra.mxu0 %v1012_v25  ;;  %v1078_v24 = vld [vmem:[%s4977_s12 + $0x1670] sm:$0xff]  ;;  %v1111_v25 = vld [vmem:[%s4977_s12 + $0x1778] sm:$0xff] }
 0x1d8   : > { %4241 = vmatpush3.msra.mxu1 %v1045_v26  ;;  %4209 = vmatprep.subr.mxu0 %v1027_v27  ;;  %v1093_v26 = vld [vmem:[%s4977_s12 + $0x16e8] sm:$0xff]  ;;  %v1126_v27 = vld [vmem:[%s4977_s12 + $0x17f0] sm:$0xff] }
 0x1d9   : > { %4242 = vmatprep.subr.mxu1 %v1060_v28  ;;  %4210 = vmatpush3.msra.mxu0 %v1011_v29  ;;  %v1077_v28 = vld [vmem:[%s4977_s12 + $0x1668] sm:$0xff]  ;;  %v1110_v29 = vld [vmem:[%s4977_s12 + $0x1770] sm:$0xff] }
 0x1da   : > { %4243 = vmatpush3.msra.mxu1 %v1044_v30  ;;  %4211 = vmatprep.subr.mxu0 %v1026_v31  ;;  %v1092_v30 = vld [vmem:[%s4977_s12 + $0x16e0] sm:$0xff]  ;;  %v1125_v31 = vld [vmem:[%s4977_s12 + $0x17e8] sm:$0xff] }
 0x1db   : > { %4244 = vmatprep.subr.mxu1 %v1059_v32  ;;  %4212 = vmatpush3.msra.mxu0 %v1010_v33  ;;  %v1076_v32 = vld [vmem:[%s4977_s12 + $0x1660] sm:$0xff]  ;;  %v1109_v33 = vld [vmem:[%s4977_s12 + $0x1768] sm:$0xff] }
 0x1dc   : > { %4245 = vmatpush3.msra.mxu1 %v1043_v34  ;;  %4213 = vmatprep.subr.mxu0 %v1025_v35  ;;  %v1091_v34 = vld [vmem:[%s4977_s12 + $0x16d8] sm:$0xff]  ;;  %v1124_v35 = vld [vmem:[%s4977_s12 + $0x17e0] sm:$0xff] }
 0x1dd   : > { %4246 = vmatprep.subr.mxu1 %v1058_v36  ;;  %4214 = vmatpush3.msra.mxu0 %v1009_v37  ;;  %v1075_v36 = vld [vmem:[%s4977_s12 + $0x1658] sm:$0xff]  ;;  %v1108_v37 = vld [vmem:[%s4977_s12 + $0x1760] sm:$0xff] }
 0x1de   : > { %4247 = vmatpush3.msra.mxu1 %v1042_v38  ;;  %4215 = vmatprep.subr.mxu0 %v1024_v39  ;;  %v1090_v38 = vld [vmem:[%s4977_s12 + $0x16d0] sm:$0xff]  ;;  %v1123_v39 = vld [vmem:[%s4977_s12 + $0x17d8] sm:$0xff] }
 0x1df   : > { %4248 = vmatprep.subr.mxu1 %v1057_v40  ;;  %4216 = vmatpush3.msra.mxu0 %v1008_v41  ;;  %v1074_v40 = vld [vmem:[%s4977_s12 + $0x1650] sm:$0xff]  ;;  %v1107_v41 = vld [vmem:[%s4977_s12 + $0x1758] sm:$0xff] }
 0x1e0   : > { %4249 = vmatpush3.msra.mxu1 %v1041_v42  ;;  %4217 = vmatprep.subr.mxu0 %v1023_v43  ;;  %v1089_v42 = vld [vmem:[%s4977_s12 + $0x16c8] sm:$0xff]  ;;  %v1122_v43 = vld [vmem:[%s4977_s12 + $0x17d0] sm:$0xff] }
 0x1e1   : > { %4250 = vmatprep.subr.mxu1 %v1056_v44  ;;  %4218 = vmatpush3.msra.mxu0 %v1007_v45  ;;  %v1073_v44 = vld [vmem:[%s4977_s12 + $0x1648] sm:$0xff]  ;;  %v1106_v45 = vld [vmem:[%s4977_s12 + $0x1750] sm:$0xff] }
 0x1e2   : > { %4251 = vmatpush3.msra.mxu1 %v1040_v46  ;;  %4219 = vmatprep.subr.mxu0 %v1022_v47  ;;  %v1088_v46 = vld [vmem:[%s4977_s12 + $0x16c0] sm:$0xff]  ;;  %v1121_v47 = vld [vmem:[%s4977_s12 + $0x17c8] sm:$0xff] }
 0x1e3   : > { %4252 = vmatprep.subr.mxu1 %v1055_v48  ;;  %4220 = vmatpush3.msra.mxu0 %v1006_v49  ;;  %v1072_v48 = vld [vmem:[%s4977_s12 + $0x1640] sm:$0xff]  ;;  %v1105_v49 = vld [vmem:[%s4977_s12 + $0x1748] sm:$0xff] }
 0x1e4   : > { %4253 = vmatpush3.msra.mxu1 %v1039_v50  ;;  %4221 = vmatprep.subr.mxu0 %v1021_v51  ;;  %v1087_v50 = vld [vmem:[%s4977_s12 + $0x16b8] sm:$0xff]  ;;  %v1120_v51 = vld [vmem:[%s4977_s12 + $0x17c0] sm:$0xff] }
 0x1e5   : > { %4254 = vmatprep.subr.mxu1 %v1054_v53  ;;  %4222 = vmatpush3.msra.mxu0 %v1005_v54  ;;  %v1071_v53 = vld [vmem:[%s4977_s12 + $0x1638] sm:$0xff]  ;;  %v1104_v54 = vld [vmem:[%s4977_s12 + $0x1740] sm:$0xff] }
 0x1e6   : > { %4255 = vmatpush3.msra.mxu1 %v1038_v55  ;;  %4223 = vmatprep.subr.mxu0 %v1020_v56  ;;  %v1086_v55 = vld [vmem:[%s4977_s12 + $0x16b0] sm:$0xff]  ;;  %v1119_v56 = vld [vmem:[%s4977_s12 + $0x17b8] sm:$0xff] }
 0x1e7   : > { %4256 = vmatprep.subr.mxu1 %v1053_v57  ;;  %4224 = vmatpush3.msra.mxu0 %v1004_v59  ;;  %v1070_v57 = vld [vmem:[%s4977_s12 + $0x1630] sm:$0xff]  ;;  %v1085_v59 = vld [vmem:[%s4977_s12 + $0x16a8] sm:$0xff] }
 0x1e8   : > { %4257 = vmatpush3.msra.mxu1 %v1037_v60  ;;  %4225 = vmatprep.subr.mxu0 %v1019_v61  ;;  %v1118_v60 = vld [vmem:[%s4977_s12 + $0x17b0] sm:$0xff]  ;;  %v1069_v61 = vld [vmem:[%s4977_s12 + $0x1628] sm:$0xff] }
 0x1e9   : > { %4258 = vmatprep.subr.mxu1 %v1052_v62  ;;  %4226 = vmatpush3.msra.mxu0 %v1003_v63  ;;  %v1102_v62 = vld [vmem:[%s4977_s12 + $0x1730] sm:$0xff]  ;;  %v1084_v63 = vld [vmem:[%s4977_s12 + $0x16a0] sm:$0xff] }
 0x1ea   : > { %4259 = vmatpush3.msra.mxu1 %v1036_v0  ;;  %4227 = vmatprep.subr.mxu0 %v1018_v2  ;;  %v1117_v0 = vld [vmem:[%s4977_s12 + $0x17a8] sm:$0xff]  ;;  %v1068_v2 = vld [vmem:[%s4977_s12 + $0x1620] sm:$0xff] }
 0x1eb   : > { %4260 = vmatprep.subr.mxu1 %v1051_v3  ;;  %4228 = vmatpush3.msra.mxu0 %v1002_v5  ;;  %v1101_v3 = vld [vmem:[%s4977_s12 + $0x1728] sm:$0xff]  ;;  %v1116_v5 = vld [vmem:[%s4977_s12 + $0x17a0] sm:$0xff] }
 0x1ec   : > { %4261 = vmatpush3.msra.mxu1 %v1035_v6  ;;  %4229 = vmatprep.subr.mxu0 %v1017_v7  ;;  %v1067_v6 = vld [vmem:[%s4977_s12 + $0x1618] sm:$0xff]  ;;  %v1100_v7 = vld [vmem:[%s4977_s12 + $0x1720] sm:$0xff] }
 0x1ed   : > { %4262 = vmatprep.subr.mxu1 %v1050_v8  ;;  %4230 = vmatpush3.msra.mxu0 %v1001_v9  ;;  %v1344_v8 = vcombine.high %v357_v1, %v357_v1  ;;  %v1082_v9 = vld [vmem:[%s4977_s12 + $0x1690] sm:$0xff] }
 0x1ee   : > { %4263 = vmatpush3.msra.mxu1 %v1034_v10  ;;  %4231 = vmatprep.subr.mxu0 %v1016_v12  ;;  %v1115_v10 = vld [vmem:[%s4977_s12 + $0x1798] sm:$0xff]  ;;  %v1066_v12 = vld [vmem:[%s4977_s12 + $0x1610] sm:$0xff] }
 0x1ef   : > { %4264 = vmatprep.subr.mxu1 %v1049_v13  ;;  %4232 = vmatpush3.msra.mxu0 %v1000_v15  ;;  %v1099_v13 = vld [vmem:[%s4977_s12 + $0x1718] sm:$0xff]  ;;  %v1114_v15 = vld [vmem:[%s4977_s12 + $0x1790] sm:$0xff] }
 0x1f0   : > { %2881 = vmatprep.mubr.f32.mxu0 %v1342_v14  ;;  %4265 = vmatpush3.msra.mxu1 %v1033_v16  ;;  %v1081_v14 = vld [vmem:[%s4977_s12 + $0x1688] sm:$0xff] }
 0x1f1   : > { %2882 = vmatmul.mubr.f32.vlgmr.msra.gmra.mxu0 %v1334_v4  ;;  %4266 = vmatprep.subr.mxu1 %v1048_v17  ;;  %v1083_v4 = vld [vmem:[%s4977_s12 + $0x1698] sm:$0xff]  ;;  %v1065_v16 = vld [vmem:[%s4977_s12 + $0x1608] sm:$0xff]  ;;  %v1098_v17 = vld [vmem:[%s4977_s12 + $0x1710] sm:$0xff] }
 0x1f2   : > { %4271 = vmatprep.subr.mxu0 %v1095_v18  ;;  %4267 = vmatpush3.msra.mxu1 %v1032_v20  ;;  %v1358_v18 = vrot.slane %v1344_v8, %v5043_v52  ;;  %v1113_v20 = vld [vmem:[%s4977_s12 + $0x1788] sm:$0xff] }
 0x1f3   : > { %2951 = vmatprep.mubr.f32.mxu1 %v1343_v19  ;;  %4272 = vmatpush3.msra.mxu0 %v1079_v21  ;;  %v1080_v19 = vld [vmem:[%s4977_s12 + $0x1680] sm:$0xff] }
 0x1f4   : > { %2952 = vmatmul.mubr.f32.vlgmr.msra.gmra.mxu1 %v1341_v11  ;;  %4273 = vmatprep.subr.mxu0 %v1094_v22  ;;  %v1351_v11 = vrot.slane %v357_v1, %v5043_v52  ;;  %v1064_v22 = vld [vmem:[%s4977_s12 + $0x1600] sm:$0xff] }
 0x1f5   : > { %4306 = vmatprep.subr.mxu1 %v1127_v23  ;;  %4274 = vmatpush3.msra.mxu0 %v1078_v24  ;;  %v1097_v23 = vld [vmem:[%s4977_s12 + $0x1708] sm:$0xff]  ;;  %v1112_v24 = vld [vmem:[%s4977_s12 + $0x1780] sm:$0xff] }
 0x1f6   : > { %4307 = vmatpush3.msra.mxu1 %v1111_v25  ;;  %4275 = vmatprep.subr.mxu0 %v1093_v26  ;;  %v1359_v21 = vcombine.high %v1351_v11, %v1351_v11  ;;  %v1360_v25 = vcombine.high %v1358_v18, %v1358_v18  ;;  %v1096_v52 = vld [vmem:[%s4977_s12 + $0x1700] sm:$0xff]  ;;  %v1143_v26 = vld [vmem:[%s4977_s12 + $0x1878] sm:$0xff] }
 0x1f7   : > { %4308 = vmatprep.subr.mxu1 %v1126_v27  ;;  %4276 = vmatpush3.msra.mxu0 %v1077_v28  ;;  %v4791_v27 = vmov 0.0   ;;  %v1142_v28 = vld [vmem:[%s4977_s12 + $0x1870] sm:$0xff] }
 0x1f8   : > { %4309 = vmatpush3.msra.mxu1 %v1110_v29  ;;  %4277 = vmatprep.subr.mxu0 %v1092_v30  ;;  %v1141_v29 = vld [vmem:[%s4977_s12 + $0x1868] sm:$0xff]  ;;  %v1140_v30 = vld [vmem:[%s4977_s12 + $0x1860] sm:$0xff] }
 0x1f9   : > { %4310 = vmatprep.subr.mxu1 %v1125_v31  ;;  %4278 = vmatpush3.msra.mxu0 %v1076_v32  ;;  %v1139_v31 = vld [vmem:[%s4977_s12 + $0x1858] sm:$0xff]  ;;  %v1138_v32 = vld [vmem:[%s4977_s12 + $0x1850] sm:$0xff] }
 0x1fa   : > { %4311 = vmatpush3.msra.mxu1 %v1109_v33  ;;  %4279 = vmatprep.subr.mxu0 %v1091_v34  ;;  %v1137_v33 = vld [vmem:[%s4977_s12 + $0x1848] sm:$0xff]  ;;  %v1136_v34 = vld [vmem:[%s4977_s12 + $0x1840] sm:$0xff] }
 0x1fb   : > { %4312 = vmatprep.subr.mxu1 %v1124_v35  ;;  %4280 = vmatpush3.msra.mxu0 %v1075_v36  ;;  %v1135_v35 = vld [vmem:[%s4977_s12 + $0x1838] sm:$0xff]  ;;  %v1134_v36 = vld [vmem:[%s4977_s12 + $0x1830] sm:$0xff] }
 0x1fc   : > { %4313 = vmatpush3.msra.mxu1 %v1108_v37  ;;  %4281 = vmatprep.subr.mxu0 %v1090_v38  ;;  %v1133_v37 = vld [vmem:[%s4977_s12 + $0x1828] sm:$0xff]  ;;  %v1132_v38 = vld [vmem:[%s4977_s12 + $0x1820] sm:$0xff] }
 0x1fd   : > { %4314 = vmatprep.subr.mxu1 %v1123_v39  ;;  %4282 = vmatpush3.msra.mxu0 %v1074_v40  ;;  %v1131_v39 = vld [vmem:[%s4977_s12 + $0x1818] sm:$0xff]  ;;  %v1130_v40 = vld [vmem:[%s4977_s12 + $0x1810] sm:$0xff] }
 0x1fe   : > { %4315 = vmatpush3.msra.mxu1 %v1107_v41  ;;  %4283 = vmatprep.subr.mxu0 %v1089_v42  ;;  %v1129_v41 = vld [vmem:[%s4977_s12 + $0x1808] sm:$0xff]  ;;  %v1128_v42 = vld [vmem:[%s4977_s12 + $0x1800] sm:$0xff] }
 0x1ff   : > { %4316 = vmatprep.subr.mxu1 %v1122_v43  ;;  %4284 = vmatpush3.msra.mxu0 %v1073_v44  ;;  %v3490_v43 = vld.sshfl [vmem:[%s5047_s9 + $0x60] sm:$0x3 pattern:$0x76325410]  ;;  %v3533_v44 = vpop.f32.mrf.mxu0 }
 0x200   : > { %4317 = vmatpush3.msra.mxu1 %v1106_v45  ;;  %4285 = vmatprep.subr.mxu0 %v1088_v46  ;;  %v3568_v45 = vpop.f32.mrf.mxu1 }
 0x201   : > { %4318 = vmatprep.subr.mxu1 %v1121_v47  ;;  %4286 = vmatpush3.msra.mxu0 %v1072_v48  ;;  %v3534_v46 = vpop.f32.mrf.mxu0 }
 0x202   : > { %4319 = vmatpush3.msra.mxu1 %v1105_v49  ;;  %4287 = vmatprep.subr.mxu0 %v1087_v50  ;;  %v3569_v48 = vpop.f32.mrf.mxu1 }
 0x203   : > { %4320 = vmatprep.subr.mxu1 %v1120_v51  ;;  %4288 = vmatpush3.msra.mxu0 %v1071_v53  ;;  %v3603_v47 = vpop.f32.mrf.mxu0  ;;  %v3535_v51 = vadd.f32 %v3534_v46, %v3533_v44  ;;  %v3570_v53 = vadd.f32 %v3569_v48, %v3568_v45 }
 0x204   : > { %4321 = vmatpush3.msra.mxu1 %v1104_v54  ;;  %4289 = vmatprep.subr.mxu0 %v1086_v55  ;;  %v3638_v50 = vpop.f32.mrf.mxu1 }
 0x205   : > { %4322 = vmatprep.subr.mxu1 %v1119_v56  ;;  %4290 = vmatpush3.msra.mxu0 %v1070_v57  ;;  %v3604_v49 = vpop.f32.mrf.mxu0  ;;  %v1554_v57 = vadd.f32 %v3570_v53, %v3535_v51 }
 0x206   : > { %4323 = vmatpush3.msra.mxu1 %v1103_v58  ;;  %4291 = vmatprep.subr.mxu0 %v1085_v59  ;;  %v3605_v55 = vadd.f32 %v3604_v49, %v3603_v47  ;;  %v3639_v56 = vpop.f32.mrf.mxu1 }
 0x207   : > { %4324 = vmatprep.subr.mxu1 %v1118_v60  ;;  %4292 = vmatpush3.msra.mxu0 %v1069_v61  ;;  %v3673_v54 = vpop.f32.mrf.mxu0  ;;  %v3640_v61 = vadd.f32 %v3639_v56, %v3638_v50 }
 0x208   : > { %4325 = vmatpush3.msra.mxu1 %v1102_v62  ;;  %4293 = vmatprep.subr.mxu0 %v1084_v63  ;;  %v3708_v59 = vpop.f32.mrf.mxu1  ;;  %v1624_v60 = vadd.f32 %v3605_v55, %v1554_v57 }
 0x209   : > { %4326 = vmatprep.subr.mxu1 %v1117_v0  ;;  %4294 = vmatpush3.msra.mxu0 %v1068_v2  ;;  %v3674_v58 = vpop.f32.mrf.mxu0 }
 0x20a   : > { %4327 = vmatpush3.msra.mxu1 %v1101_v3  ;;  %4295 = vmatprep.subr.mxu0 %v1083_v4  ;;  %v3675_v63 = vadd.f32 %v3674_v58, %v3673_v54  ;;  %v3709_v0 = vpop.f32.mrf.mxu1  ;;  %v1694_v1 = vadd.f32 %v3640_v61, %v1624_v60 }
 0x20b   : > { %4328 = vmatprep.subr.mxu1 %v1116_v5  ;;  %4296 = vmatpush3.msra.mxu0 %v1067_v6  ;;  %v3743_v62 = vpop.f32.mrf.mxu0  ;;  %v3710_v5 = vadd.f32 %v3709_v0, %v3708_v59 }
 0x20c   : > { %4329 = vmatpush3.msra.mxu1 %v1100_v7  ;;  %4297 = vmatprep.subr.mxu0 %v1082_v9  ;;  %v3778_v3 = vpop.f32.mrf.mxu1  ;;  %v1764_v4 = vadd.f32 %v3675_v63, %v1694_v1 }
 0x20d   : > { %4330 = vmatprep.subr.mxu1 %v1115_v10  ;;  %4298 = vmatpush3.msra.mxu0 %v1066_v12  ;;  %v3744_v2 = vpop.f32.mrf.mxu0 }
 0x20e   : > { %4331 = vmatpush3.msra.mxu1 %v1099_v13  ;;  %4299 = vmatprep.subr.mxu0 %v1081_v14  ;;  %v3745_v7 = vadd.f32 %v3744_v2, %v3743_v62  ;;  %v3779_v8 = vpop.f32.mrf.mxu1  ;;  %v1834_v9 = vadd.f32 %v3710_v5, %v1764_v4 }
 0x20f   : > { %4332 = vmatprep.subr.mxu1 %v1114_v15  ;;  %4300 = vmatpush3.msra.mxu0 %v1065_v16  ;;  %v3813_v6 = vpop.f32.mrf.mxu0  ;;  %v3780_v13 = vadd.f32 %v3779_v8, %v3778_v3 }
 0x210   : > { %4333 = vmatpush3.msra.mxu1 %v1098_v17  ;;  %4301 = vmatprep.subr.mxu0 %v1080_v19  ;;  %v1904_v12 = vadd.f32 %v3745_v7, %v1834_v9 }
 0x211   : > { %4334 = vmatprep.subr.mxu1 %v1113_v20  ;;  %4302 = vmatpush3.msra.mxu0 %v1064_v22  ;;  %v3814_v10 = vpop.f32.mrf.mxu0 }
 0x212   : > { %3021 = vmatprep.mubr.f32.mxu0 %v1359_v21  ;;  %4335 = vmatpush3.msra.mxu1 %v1097_v23  ;;  %v3815_v15 = vadd.f32 %v3814_v10, %v3813_v6  ;;  %v1974_v17 = vadd.f32 %v3780_v13, %v1904_v12  ;;  %v359_v12 = vld [vmem:[#allocation2] sm:$0x3] }
 0x213   : > { %3022 = vmatmul.mubr.f32.vlgmr.msra.gmra.mxu0 %v1351_v11  ;;  %4336 = vmatprep.subr.mxu1 %v1112_v24  ;;  %v3848_v11 = vpop.f32.mrf.mxu1  ;;  %v3883_v14 = vpop.f32.mrf.mxu0 }
 0x214   : > { %4380 = vmatprep.subr.mxu0 %v4791_v27  ;;  %4337 = vmatpush3.msra.mxu1 %v1096_v52  ;;  %v2044_v20 = vadd.f32 %v3815_v15, %v1974_v17 }
 0x215   : > { %3091 = vmatprep.mubr.f32.mxu1 %v1360_v25  ;;  %4381 = vmatpush3.msra.mxu0 %v1143_v26  ;;  %v3849_v16 = vpop.f32.mrf.mxu1 }
 0x216   : > { %3092 = vmatmul.mubr.f32.vlgmr.msra.gmra.mxu1 %v1358_v18  ;;  %4382 = vmatprep.subr.mxu0 %v4791_v27  ;;  %v3884_v18 = vpop.f32.mrf.mxu0  ;;  %v3850_v21 = vadd.f32 %v3849_v16, %v3848_v11 }
 0x217   : > { %4412 = vmatprep.mubr.msk.f32.mxu0 %vm4792_vm0, %v4791_v27  ;;  %4383 = vmatpush3.msra.mxu0 %v1142_v28  ;;  %v3918_v19 = vpop.f32.mrf.mxu1  ;;  %v3885_v23 = vadd.f32 %v3884_v18, %v3883_v14 }
 0x218   : > { %4384 = vmatprep.subr.mxu0 %v4791_v27  ;;  %v2114_v25 = vadd.f32 %v3850_v21, %v2044_v20 }
 0x219   : > { %4385 = vmatpush3.msra.mxu0 %v1141_v29  ;;  %v3919_v24 = vpop.f32.mrf.mxu1 }
 0x21a   : > { %4386 = vmatprep.subr.mxu0 %v4791_v27  ;;  %v3920_v28 = vadd.f32 %v3919_v24, %v3918_v19 }
 0x21b   : > { %4387 = vmatpush3.msra.mxu0 %v1140_v30 }
 0x21c   : > { %4388 = vmatprep.subr.mxu0 %v4791_v27 }
 0x21d   : > { %4389 = vmatpush3.msra.mxu0 %v1139_v31 }
 0x21e   : > { %4390 = vmatprep.subr.mxu0 %v4791_v27 }
 0x21f   : > { %4391 = vmatpush3.msra.mxu0 %v1138_v32 }
 0x220   : > { %4392 = vmatprep.subr.mxu0 %v4791_v27 }
 0x221   : > { %4393 = vmatpush3.msra.mxu0 %v1137_v33 }
 0x222   : > { %4394 = vmatprep.subr.mxu0 %v4791_v27 }
 0x223   : > { %4395 = vmatpush3.msra.mxu0 %v1136_v34 }
 0x224   : > { %4396 = vmatprep.subr.mxu0 %v4791_v27 }
 0x225   : > { %4397 = vmatpush3.msra.mxu0 %v1135_v35 }
 0x226   : > { %4398 = vmatprep.subr.mxu0 %v4791_v27 }
 0x227   : > { %4399 = vmatpush3.msra.mxu0 %v1134_v36 }
 0x228   : > { %4400 = vmatprep.subr.mxu0 %v4791_v27 }
 0x229   : > { %4401 = vmatpush3.msra.mxu0 %v1133_v37  ;;  %v3953_v22 = vpop.f32.mrf.mxu0 }
 0x22a   : > { %4402 = vmatprep.subr.mxu0 %v4791_v27 }
 0x22b   : > { %4403 = vmatpush3.msra.mxu0 %v1132_v38  ;;  %v3954_v52 = vpop.f32.mrf.mxu0 }
 0x22c   : > { %4404 = vmatprep.subr.mxu0 %v4791_v27  ;;  %v3988_v26 = vpop.f32.mrf.mxu1  ;;  %v3955_v30 = vadd.f32 %v3954_v52, %v3953_v22 }
 0x22d   : > { %4405 = vmatpush3.msra.mxu0 %v1131_v39 }
 0x22e   : > { %4406 = vmatprep.subr.mxu0 %v4791_v27  ;;  %v3989_v31 = vpop.f32.mrf.mxu1 }
 0x22f   : > { %4407 = vmatpush3.msra.mxu0 %v1130_v40  ;;  %v3990_v36 = vadd.f32 %v3989_v31, %v3988_v26 }
 0x230   : > { %4408 = vmatprep.subr.mxu0 %v4791_v27 }
 0x231   : > { %4409 = vmatpush3.msra.mxu0 %v1129_v41 }
 0x232   : > { %4410 = vmatprep.subr.mxu0 %v4791_v27  ;;  %v2184_v27 = vadd.f32 %v3885_v23, %v2114_v25 }
 0x233   : > { %4411 = vmatpush3.msra.mxu0 %v1128_v42 }
 0x234   : > { %4413 = vmatmul.mubr.f32.vlgmr.msra.gmra.mxu0 %v3490_v43  ;;  %v2254_v32 = vadd.f32 %v3920_v28, %v2184_v27 }
 0x236   : > { %v2324_v35 = vadd.f32 %v3955_v30, %v2254_v32 }
 0x238   : > { %v2394_v40 = vadd.f32 %v3990_v36, %v2324_v35 }
 0x24b   : > { %v4023_v29 = vpop.f32.mrf.mxu0 }
 0x24d   : > { %v4024_v33 = vpop.f32.mrf.mxu0 }
 0x24e   : > { %v4058_v34 = vpop.f32.mrf.mxu1  ;;  %v4025_v38 = vadd.f32 %v4024_v33, %v4023_v29 }
 0x250   : > { %v4059_v39 = vpop.f32.mrf.mxu1  ;;  %v2464_v43 = vadd.f32 %v4025_v38, %v2394_v40 }
 0x251   : > { %v4060_v44 = vadd.f32 %v4059_v39, %v4058_v34 }
 0x253   : > { %v2534_v48 = vadd.f32 %v4060_v44, %v2464_v43 }
 0x26d   : > { %v4093_v37 = vpop.f32.mrf.mxu0 }
 0x26f   : > { %v4094_v41 = vpop.f32.mrf.mxu0 }
 0x270   : > { %v4128_v42 = vpop.f32.mrf.mxu1  ;;  %v4095_v46 = vadd.f32 %v4094_v41, %v4093_v37 }
 0x272   : > { %v4129_v47 = vpop.f32.mrf.mxu1  ;;  %v2604_v51 = vadd.f32 %v4095_v46, %v2534_v48 }
 0x273   : > { %v4130_v53 = vadd.f32 %v4129_v47, %v4128_v42 }
 0x275   : > { %v2674_v57 = vadd.f32 %v4130_v53, %v2604_v51 }
 0x28f   : > { %v4163_v45 = vpop.f32.mrf.mxu0 }
 0x291   : > { %v4164_v49 = vpop.f32.mrf.mxu0 }
 0x292   : > { %v4198_v50 = vpop.f32.mrf.mxu1  ;;  %v4165_v55 = vadd.f32 %v4164_v49, %v4163_v45 }
 0x294   : > { %v4199_v56 = vpop.f32.mrf.mxu1  ;;  %v2744_v60 = vadd.f32 %v4165_v55, %v2674_v57 }
 0x295   : > { %v4200_v61 = vadd.f32 %v4199_v56, %v4198_v50 }
 0x297   : > { %v2814_v1 = vadd.f32 %v4200_v61, %v2744_v60 }
 0x2b1   : > { %v4233_v54 = vpop.f32.mrf.mxu0 }
 0x2b3   : > { %v4234_v58 = vpop.f32.mrf.mxu0 }
 0x2b4   : > { %v4268_v59 = vpop.f32.mrf.mxu1  ;;  %v4235_v63 = vadd.f32 %v4234_v58, %v4233_v54 }
 0x2b6   : > { %v4269_v0 = vpop.f32.mrf.mxu1  ;;  %v2884_v4 = vadd.f32 %v4235_v63, %v2814_v1 }
 0x2b7   : > { %v4270_v5 = vadd.f32 %v4269_v0, %v4268_v59 }
 0x2b9   : > { %v2954_v8 = vadd.f32 %v4270_v5, %v2884_v4 }
 0x2d3   : > { %v4303_v62 = vpop.f32.mrf.mxu0 }
 0x2d5   : > { %v4304_v2 = vpop.f32.mrf.mxu0 }
 0x2d6   : > { %v4338_v3 = vpop.f32.mrf.mxu1  ;;  %v4305_v6 = vadd.f32 %v4304_v2, %v4303_v62 }
 0x2d8   : > { %v4339_v7 = vpop.f32.mrf.mxu1  ;;  %v3024_v9 = vadd.f32 %v4305_v6, %v2954_v8 }
 0x2d9   : > { %v4340_v10 = vadd.f32 %v4339_v7, %v4338_v3 }
 0x2db   : > { %v3094_v11 = vadd.f32 %v4340_v10, %v3024_v9 }
 0x2f4   : > { %v3163_v13 = vpop.f32.mrf.mxu0 }
 0x2f5   : > { %v3164_v14 = vadd.f32 %v3163_v13, %v3094_v11  ;;  %3172 = sbr.rel (%p3491_p5) target bundleno = 1502 (0x5de), region = 76 }
 0x2f6   : > { %v4414_v15 = vpop.f32.mrf.mxu0 }
 0x2f7   : > { %v3167_v16 = vadd.f32 %v3164_v14, %v359_v12 }
 0x2f9   : > { %3168 = vst [vmem:[#allocation2] sm:$0x3] %v3167_v16 }
 0x2fa   : > { %v3198_v17 = vld [vmem:[%s5936_s3 + $0x78] sm:$0xff]  ;;  %v4793_v18 = vmov 0.0   ;;  %v3197_v19 = vld [vmem:[%s5936_s3 + $0x70] sm:$0xff]  ;;  %vm4794_vm1 = vmmov 0   ;;  %v3196_v20 = vld [vmem:[%s5936_s3 + $0x68] sm:$0xff]  ;;  %vm3288_vm2 = vcmask 261120  }
 0x2fb   : > { %4415 = vmatprep.subr.mxu0 %v4793_v18  ;;  %4447 = vmatprep.mubr.msk.f32.mxu0 %vm4794_vm1, %v4793_v18  ;;  %v3195_v21 = vld [vmem:[%s5936_s3 + $0x60] sm:$0xff]  ;;  %v3280_v22 = vld [vmem:[%s5938_s5 + $0x18] sm:$0xff]  ;;  %v3193_v24 = vld [vmem:[%s5936_s3 + $0x50] sm:$0xff]  ;;  %vm3362_vm3 = vcmask 9216  }
 0x2fc   : > { %4416 = vmatpush3.msra.mxu0 %v3198_v17  ;;  %4450 = vmatprep.subr.mxu1 %v4793_v18  ;;  %v3194_v23 = vld [vmem:[%s5936_s3 + $0x58] sm:$0xff]  ;;  %v3192_v25 = vld [vmem:[%s5936_s3 + $0x48] sm:$0xff]  ;;  %v3191_v52 = vld [vmem:[%s5936_s3 + $0x40] sm:$0xff] }
 0x2fd   : > { %4417 = vmatprep.subr.mxu0 %v4793_v18  ;;  %4458 = vmatprep.mubr.msk.f32.mxu1 %vm4794_vm1, %v4793_v18  ;;  %v3190_v26 = vld [vmem:[%s5936_s3 + $0x38] sm:$0xff]  ;;  %v3189_v27 = vld [vmem:[%s5936_s3 + $0x30] sm:$0xff]  ;;  %v3188_v28 = vld [vmem:[%s5936_s3 + $0x28] sm:$0xff] }
 0x2fe   : > { %4418 = vmatpush3.msra.mxu0 %v3197_v19  ;;  %4451 = vmatpush3.msra.mxu1 %v3280_v22  ;;  %v3187_v29 = vld [vmem:[%s5936_s3 + $0x20] sm:$0xff]  ;;  %v3492_v31 = vld [vmem:[#allocation8] ss:$0 sm:$0xff]  ;;  %v3186_v32 = vld [vmem:[%s5936_s3 + $0x18] sm:$0xff] }
 0x2ff   : > { %4419 = vmatprep.subr.mxu0 %v4793_v18  ;;  %4452 = vmatprep.subr.mxu1 %v4793_v18  ;;  %v3185_v33 = vld [vmem:[%s5936_s3 + $0x10] sm:$0xff]  ;;  %v3184_v35 = vld [vmem:[%s5936_s3 + $0x8] sm:$0xff]  ;;  %v3183_v36 = vld [vmem:[%s5936_s3] sm:$0xff] }
 0x300   : > { %4420 = vmatpush3.msra.mxu0 %v3196_v20  ;;  %v3173_v30 = vld [vmem:[#allocation2] sm:$0x3]  ;;  %v3279_v38 = vld [vmem:[%s5938_s5 + $0x10] sm:$0xff]  ;;  %v3278_v39 = vld [vmem:[%s5938_s5 + $0x8] sm:$0xff] }
 0x301   : > { %4421 = vmatprep.subr.mxu0 %v4793_v18  ;;  %v3181_v34 = vadd.f32 %v3492_v31, %v3173_v30  ;;  %4453 = vmatpush3.msra.mxu1 %v3279_v38  ;;  %v3277_v40 = vld [vmem:[%s5938_s5] sm:$0xff]  ;;  %v3493_v41 = vld [vmem:[#allocation9] ss:$0 sm:$0xff]  ;;  %v3494_v46 = vld [vmem:[#allocation11] ss:$0 sm:$0xff] }
 0x302   : > { %4422 = vmatpush3.msra.mxu0 %v3195_v21  ;;  %4454 = vmatprep.subr.mxu1 %v4793_v18 }
 0x303   : > { %4423 = vmatprep.subr.mxu0 %v4793_v18  ;;  %v3182_v37 = vmax.f32 %v3181_v34, 0.0  ;;  %4455 = vmatpush3.msra.mxu1 %v3278_v39 }
 0x304   : > { %4424 = vmatpush3.msra.mxu0 %v3194_v23  ;;  %4456 = vmatprep.subr.mxu1 %v4793_v18 }
 0x305   : > { %4425 = vmatprep.subr.mxu0 %v4793_v18  ;;  %4457 = vmatpush3.msra.mxu1 %v3277_v40 }
 0x306   : > { %4426 = vmatpush3.msra.mxu0 %v3193_v24 }
 0x307   : > { %4427 = vmatprep.subr.mxu0 %v4793_v18 }
 0x308   : > { %4428 = vmatpush3.msra.mxu0 %v3192_v25 }
 0x309   : > { %4429 = vmatprep.subr.mxu0 %v4793_v18 }
 0x30a   : > { %4430 = vmatpush3.msra.mxu0 %v3191_v52 }
 0x30b   : > { %4431 = vmatprep.subr.mxu0 %v4793_v18 }
 0x30c   : > { %4432 = vmatpush3.msra.mxu0 %v3190_v26 }
 0x30d   : > { %4433 = vmatprep.subr.mxu0 %v4793_v18 }
 0x30e   : > { %4434 = vmatpush3.msra.mxu0 %v3189_v27 }
 0x30f   : > { %4435 = vmatprep.subr.mxu0 %v4793_v18 }
 0x310   : > { %4436 = vmatpush3.msra.mxu0 %v3188_v28 }
 0x311   : > { %4437 = vmatprep.subr.mxu0 %v4793_v18 }
 0x312   : > { %4438 = vmatpush3.msra.mxu0 %v3187_v29 }
 0x313   : > { %4439 = vmatprep.subr.mxu0 %v4793_v18 }
 0x314   : > { %4440 = vmatpush3.msra.mxu0 %v3186_v32 }
 0x315   : > { %4441 = vmatprep.subr.mxu0 %v4793_v18 }
 0x316   : > { %4442 = vmatpush3.msra.mxu0 %v3185_v33 }
 0x317   : > { %4443 = vmatprep.subr.mxu0 %v4793_v18 }
 0x318   : > { %4444 = vmatpush3.msra.mxu0 %v3184_v35 }
 0x319   : > { %4445 = vmatprep.subr.mxu0 %v4793_v18 }
 0x31a   : > { %4446 = vmatpush3.msra.mxu0 %v3183_v36 }
 0x31b   : > { %4448 = vmatmul.mubr.f32.vlgmr.msra.gmra.mxu0 %v3182_v37 }
 0x3db   : > { %v3272_v42 = vpop.f32.mrf.mxu0 }
 0x3dc   : > { %v3273_v43 = vadd.f32 %v3493_v41, %v3272_v42 }
 0x3dd   : > { %v4449_v44 = vpop.f32.mrf.mxu0 }
 0x3de   : > { %v3276_v45 = vmax.f32 %v3273_v43, 0.0 }
 0x3e0   : > { %4459 = vmatmul.mubr.msk.f32.vlgmr.msra.gmra.mxu1 %vm3288_vm2, %v3276_v45 }
 0x4a0   : > { %v3358_v47 = vpop.f32.mrf.mxu1 }
 0x4a1   : > { %v3359_v48 = vadd.f32 %v3494_v46, %v3358_v47 }
 0x4a2   : > { %v4460_v49 = vpop.f32.mrf.mxu1 }
 0x4a3   : > { %v3363_v50 = vsel %vm3362_vm3, %v3359_v48, -inf }
 0x4a4   : > { %3364 = vmax.xlane.f32.xlu0 %v3363_v50 }
 0x52d   : > { %v3365_v51 = vpop.xlane.xlu0 %3364 }
 0x52e   : > { %v3366_v53 = vsub.f32 %v3359_v48, %v3365_v51 }
 0x530   : > { %v3367_v54 = vmul.f32 1.442695, %v3366_v53 }
 0x532   : > { %4570 = vpow2.f32 %v3367_v54 }
 0x53f   : > { %v4571_v55 = vpop.eup %4570 }
 0x540   : > { %v3369_v56 = vsel %vm3362_vm3, %v4571_v55, 0.0 }
 0x541   : > { %3370 = vadd.xlane.f32.xlu0 %v3369_v56 }
 0x5ca   : > { %v3371_v57 = vpop.xlane.xlu0 %3370 }
 0x5cb   : > { %4572 = vlog2.f32 %v3371_v57 }
 0x5d8   : > { %v4573_v58 = vpop.eup %4572 }
 0x5d9   : > { %v3373_v59 = vmul.f32 0.6931472, %v4573_v58 }
 0x5db   : > { %v3374_v60 = vsub.f32 %v3366_v53, %v3373_v59 }
 0x5dd   : > { %3375 = vst.msk [vmem:[#allocation12] sm:$0x3] %vm3362_vm3, %v3374_v60 }
 0x5de PF: > { %p4511_p2 = scmp.eq.s32.totalorder %s4855_s28, 23  ;;  %s4795_s21 = smov [#allocation12]  }
 0x5df   : > { %s3383_s22 = sshll.u32 %s4795_s21, 4  ;;  %s3384_s22 = int_to_ptr.vmem [resolvable:$true] %s3383_s22 }
 0x5e0   : > { %s4706_s24 = scalar_lea.vmem %s3384_s22, 32  ;;  %p4713_p10 = scmp.lt.s32.totalorder %s3384_s22, %s3384_s22 }
 0x5e1   : > { %p4707_p3 = scmp.ne.s32.totalorder %s3384_s22, %s4706_s24  ;;  %p4714_p13 = scmp.lt.s32.totalorder %s4706_s24, %s4706_s24 }
 0x5e3   : > { %p4708_p8 = pnand %p4707_p3, %p4511_p2  ;;  %p4715_p12 = por %p4714_p13, %p4713_p10 }
 0x5e5   : > { %p4709_p11 = pneg %p4708_p8 }
 0x5e7   : > { %p4716_p6 = pnand %p4715_p12, %p4709_p11 }
 0x5e9   : > { %4719 = shalt.err (!%p4716_p6)
}
 0x5ea   : > { %4482 = dma.vmem_to_hbm [thread:$0]  (%p4511_p2), %s3384_s22, 32, %s5940_s7, [#allocation5]  }
 0x5eb   : > { %4763 = dma.done.wait (%p4511_p2), [#allocation5], 32  }
 0x5ec   : > { %4765 = vsyncadd (%p4511_p2), [#allocation5], 4294967264 }
 0x5ed PF: > { %p20_p7 = scmp.ge.s32.totalorder %s4922_s14, 26   ;;  %s5957_s24 = smov %s4772_s25 }
 0x5ee   : > { %s5958_s25 = smov %s4776_s26  ;;  %s5959_s26 = smov %s4933_s19 }
 0x5ef   : > { %s5960_s27 = smov %s4922_s14  ;;  %22 = sbr.rel (!%p20_p7) target bundleno = 6 (0x6), region = 111 }
 0x5f4   :  { %3396 = vsyncpa [#allocation4], 1 }
 0x5f5   :  { %3398 = vsyncpa [#allocation4 + $0x1], 1 }
 0x5f6   :  { %3399 = vsyncpa [#allocation7], 1 }
 0x5f7   :  { %3401 = vsyncpa [#allocation7 + $0x1], 1 }
 0x5f8   :  { %3402 = vsyncpa [#allocation10], 1 }
 0x5f9   :  { %3403 = vsyncpa [#allocation5], 1 }
 0x5fa   :  { %3405 = vsyncpa [#allocation5 + $0x1], 1 }

</bundles_post_ra>
